<compile_context>
chip_gen: v6e
topology: v6e:2x2x1
jax: 0.10.0
libtpu: 0.0.40
codegen_flags: <defaults>
</compile_context>

<pallas_src>
import functools

import jax
import jax.numpy as jnp
from jax.experimental import pallas as pl
from jax.experimental.pallas import tpu as pltpu

_BN_EPS = 1e-5
_LRELU_SLOPE = 0.2
_MAX_TM = 4096


def _round_up(x, m):
    return (x + m - 1) // m * m


def _vmem_limit():
    """~3/4 of physical VMEM, capped at 96 MiB (=> ~96 MiB v5e/v6e, ~48 MiB v7x)."""
    try:
        cap = int(pltpu.get_tpu_info().vmem_capacity_bytes)
    except Exception:
        cap = 64 << 20  # conservative fallback (v7x-sized VMEM)
    return int(min(cap * 3 // 4, 96 << 20))


_VMEM_LIMIT = _vmem_limit()


def _pick_tm(m, k_pad, cout_pad, y_bytes):
    """Largest M-tile fitting the pipelined-buffer budget; multiple of 16;
    prefers a tile that divides m so no padded rows are materialized."""
    w_bytes = k_pad * cout_pad * 2                       # resident bf16 weight
    budget = max(4 << 20, _VMEM_LIMIT // 2 - 2 * w_bytes)
    per_row = 2 * k_pad * 2 + 2 * cout_pad * y_bytes     # double-buffered in/out rows
    cap = max(16, min(_MAX_TM, (budget // per_row) // 16 * 16))
    if m <= cap:
        return _round_up(m, 16)
    tm = cap
    while tm >= 16:
        if m % tm == 0:
            return tm
        tm -= 16
    return cap


# ----------------------------------------------------------------------------
# Pallas kernels
# ----------------------------------------------------------------------------
def _matmul_act_kernel(p_ref, w_ref, o_ref, *, act):
    """One (TILE_M, K) x (K, Cout) tile: matmul + activation."""
    y = jnp.dot(p_ref[...], w_ref[...], preferred_element_type=jnp.float32)
    if act == "lrelu":
        y = jnp.where(y > 0, y, _LRELU_SLOPE * y)
    o_ref[...] = y.astype(o_ref.dtype)


def _matmul_stats_kernel(p_ref, w_ref, y_ref, stat_ref):
    """Tile matmul; stores the raw conv output in bf16 and an (8, Cout) per-tile
    stats block: row 0 = per-channel sum, row 1 = per-channel sum-of-squares
    (f32, computed from the pre-cast f32 accumulator).  No cross-grid-step
    dependency, so the grid stays 'parallel' (dual-TC friendly on v7x)."""
    y = jnp.dot(p_ref[...], w_ref[...], preferred_element_type=jnp.float32)
    y_ref[...] = y.astype(y_ref.dtype)
    s = jnp.sum(y, axis=0, keepdims=True)
    ss = jnp.sum(y * y, axis=0, keepdims=True)
    row = jax.lax.broadcasted_iota(jnp.int32, stat_ref.shape, 0)
    stat_ref[...] = jnp.where(row == 0, s, jnp.where(row == 1, ss, 0.0))


def _bn_act_kernel(y_ref, scale_ref, shift_ref, o_ref):
    """y * scale + shift (folded BN affine) followed by LeakyReLU(0.2)."""
    y = y_ref[...].astype(jnp.float32) * scale_ref[...] + shift_ref[...]
    o_ref[...] = jnp.where(y > 0, y, _LRELU_SLOPE * y).astype(o_ref.dtype)


def _proj_sigmoid_kernel(p_ref, w_ref, o_ref):
    """Final 1-channel projection as a VPU reduction (no 128-wide Cout pad)."""
    y = jnp.sum(p_ref[...].astype(jnp.float32) * w_ref[...].astype(jnp.float32),
                axis=1, keepdims=True)
    o_ref[...] = jax.nn.sigmoid(y)


# ----------------------------------------------------------------------------
# pallas_call wrappers
# ----------------------------------------------------------------------------
def _matmul_act(patches, w, *, tm, act, out_dtype):
    m_pad, k_pad = patches.shape
    _, cout_pad = w.shape
    y_bytes = jnp.dtype(out_dtype).itemsize
    cost = pl.CostEstimate(
        flops=2 * m_pad * k_pad * cout_pad,
        transcendentals=0,
        bytes_accessed=m_pad * k_pad * 2 + k_pad * cout_pad * 2
        + m_pad * cout_pad * y_bytes,
    )
    return pl.pallas_call(
        functools.partial(_matmul_act_kernel, act=act),
        out_shape=jax.ShapeDtypeStruct((m_pad, cout_pad), out_dtype),
        grid=(m_pad // tm,),
        in_specs=[
            pl.BlockSpec((tm, k_pad), lambda i: (i, 0)),
            pl.BlockSpec((k_pad, cout_pad), lambda i: (0, 0)),   # resident weight
        ],
        out_specs=pl.BlockSpec((tm, cout_pad), lambda i: (i, 0)),
        compiler_params=pltpu.CompilerParams(
            dimension_semantics=("parallel",),
            vmem_limit_bytes=_VMEM_LIMIT,
        ),
        cost_estimate=cost,
    )(patches, w)


def _matmul_stats(patches, w, *, tm):
    m_pad, k_pad = patches.shape
    _, cout_pad = w.shape
    nt = m_pad // tm
    cost = pl.CostEstimate(
        flops=2 * m_pad * k_pad * cout_pad,
        transcendentals=0,
        bytes_accessed=m_pad * k_pad * 2 + k_pad * cout_pad * 2
        + m_pad * cout_pad * 2 + nt * 8 * cout_pad * 4,
    )
    return pl.pallas_call(
        _matmul_stats_kernel,
        out_shape=(
            jax.ShapeDtypeStruct((m_pad, cout_pad), jnp.bfloat16),   # raw conv out
            jax.ShapeDtypeStruct((nt * 8, cout_pad), jnp.float32),   # per-tile stats
        ),
        grid=(nt,),
        in_specs=[
            pl.BlockSpec((tm, k_pad), lambda i: (i, 0)),
            pl.BlockSpec((k_pad, cout_pad), lambda i: (0, 0)),       # resident weight
        ],
        out_specs=(
            pl.BlockSpec((tm, cout_pad), lambda i: (i, 0)),
            pl.BlockSpec((8, cout_pad), lambda i: (i, 0)),
        ),
        compiler_params=pltpu.CompilerParams(
            dimension_semantics=("parallel",),    # per-tile partials -> no serialization
            vmem_limit_bytes=_VMEM_LIMIT,
        ),
        cost_estimate=cost,
    )(patches, w)


def _bn_act(y, scale, shift, *, tm, out_dtype):
    m_pad, cout_pad = y.shape
    return pl.pallas_call(
        _bn_act_kernel,
        out_shape=jax.ShapeDtypeStruct((m_pad, cout_pad), out_dtype),
        grid=(m_pad // tm,),
        in_specs=[
            pl.BlockSpec((tm, cout_pad), lambda i: (i, 0)),
            pl.BlockSpec((1, cout_pad), lambda i: (0, 0)),
            pl.BlockSpec((1, cout_pad), lambda i: (0, 0)),
        ],
        out_specs=pl.BlockSpec((tm, cout_pad), lambda i: (i, 0)),
        compiler_params=pltpu.CompilerParams(
            dimension_semantics=("parallel",),
            vmem_limit_bytes=_VMEM_LIMIT,
        ),
    )(y, scale, shift)


# ----------------------------------------------------------------------------
# Plain-JAX glue: NHWC im2col, weight reshape, layer plumbing
# ----------------------------------------------------------------------------
def im2col_nhwc(x, k, stride, pad):
    """x: (N, H, W, C) -> patches (N*Ho*Wo, k*k*C), column order (kh, kw, c)."""
    N, H, W, C = x.shape
    if pad:
        x = jnp.pad(x, ((0, 0), (pad, pad), (pad, pad), (0, 0)))
    Ho = (H + 2 * pad - k) // stride + 1
    Wo = (W + 2 * pad - k) // stride + 1
    cols = []
    for kh in range(k):
        for kw in range(k):
            cols.append(x[:, kh: kh + stride * Ho: stride,
                          kw: kw + stride * Wo: stride, :])
    p = jnp.stack(cols, axis=3)                      # (N, Ho, Wo, k*k, C)
    return p.reshape(N * Ho * Wo, k * k * C), Ho, Wo


def conv_layer(x_nhwc, w_ochw, gamma, beta, *, stride, pad, use_bn, out_dtype):
    """x_nhwc: (N, H, W, Cin); w_ochw: (Cout, Cin, k, k) -> (N, Ho, Wo, Cout)."""
    N = x_nhwc.shape[0]
    Cout, Cin, k, _ = w_ochw.shape

    # Lane-align K *before* im2col: pad Cin to a multiple of 8 (k*k = 16, so
    # K = 16*cin_pad is a multiple of 128).  Cheap on the small input tensor;
    # avoids a full HBM re-pad of the big patch matrix (layer 1: Cin 3 -> 8).
    cin_pad = _round_up(Cin, 8)
    if cin_pad != Cin:
        x_nhwc = jnp.pad(x_nhwc, ((0, 0), (0, 0), (0, 0), (0, cin_pad - Cin)))
        w_ochw = jnp.pad(w_ochw, ((0, 0), (0, cin_pad - Cin), (0, 0), (0, 0)))

    patches, Ho, Wo = im2col_nhwc(x_nhwc, k, stride, pad)    # (M, k*k*cin_pad)
    M, K = patches.shape
    k_pad = _round_up(K, 128)
    cout_pad = _round_up(Cout, 128)

    tm = _pick_tm(M, k_pad, cout_pad, 2)        # bf16 output in both paths
    m_pad = _round_up(M, tm)

    patches = patches.astype(jnp.bfloat16)
    if (m_pad, k_pad) != (M, K):                # usually a no-op now
        patches = jnp.pad(patches, ((0, m_pad - M), (0, k_pad - K)))

    # (Cout, Cin, kh, kw) -> (kh, kw, Cin, Cout) -> (K, Cout), zero-padded.
    w_mat = w_ochw.transpose(2, 3, 1, 0).reshape(K, Cout)
    w_mat = jnp.pad(w_mat, ((0, k_pad - K), (0, cout_pad - Cout))).astype(jnp.bfloat16)

    if use_bn:
        y_raw, stats = _matmul_stats(patches, w_mat, tm=tm)
        # Tiny finalize in plain JAX: per-tile partials -> mean / rstd, then
        # fold BatchNorm affine (gamma, beta) into a single scale/shift.
        # Padded rows of `patches` are zero so they contribute 0 to the sums.
        st = stats.reshape(m_pad // tm, 8, cout_pad).sum(axis=0)
        mean = st[0] / M
        var = jnp.maximum(st[1] / M - mean * mean, 0.0)   # biased var (training mode)
        rstd = jax.lax.rsqrt(var + _BN_EPS)
        g = jnp.pad(gamma.astype(jnp.float32), (0, cout_pad - Cout))
        b = jnp.pad(beta.astype(jnp.float32), (0, cout_pad - Cout))
        scale = (g * rstd)[None, :]
        shift = (b - mean * g * rstd)[None, :]
        y = _bn_act(y_raw, scale, shift, tm=tm, out_dtype=out_dtype)
    else:
        y = _matmul_act(patches, w_mat, tm=tm, act="lrelu", out_dtype=out_dtype)

    y = y[:M, :Cout]
    return y.reshape(N, Ho, Wo, Cout)


def final_layer(x_nhwc, w_ochw):
    """4x4 stride-1 valid conv to a single channel + sigmoid -> flat (N*Ho*Wo,)."""
    Cout, Cin, k, _ = w_ochw.shape            # Cout == 1
    patches, Ho, Wo = im2col_nhwc(x_nhwc, k, 1, 0)           # (N*Ho*Wo, k*k*Cin)
    M, K = patches.shape
    k_pad = _round_up(K, 128)
    m_pad = _round_up(M, 16)                   # bf16 packs (16, 128)
    patches = patches.astype(jnp.bfloat16)
    if (m_pad, k_pad) != (M, K):
        patches = jnp.pad(patches, ((0, m_pad - M), (0, k_pad - K)))
    w_row = w_ochw.transpose(2, 3, 1, 0).reshape(K, Cout).T   # (1, K)
    w_row = jnp.pad(w_row, ((0, 0), (0, k_pad - K))).astype(jnp.bfloat16)
    out = pl.pallas_call(
        _proj_sigmoid_kernel,
        out_shape=jax.ShapeDtypeStruct((m_pad, 1), jnp.float32),
        grid=(1,),
        in_specs=[
            pl.BlockSpec((m_pad, k_pad), lambda i: (0, 0)),
            pl.BlockSpec((1, k_pad), lambda i: (0, 0)),
        ],
        out_specs=pl.BlockSpec((m_pad, 1), lambda i: (0, 0)),
        compiler_params=pltpu.CompilerParams(vmem_limit_bytes=_VMEM_LIMIT),
    )(patches, w_row)
    return out[:M, 0]                           # matches .view(-1, 1).squeeze(1)


# ----------------------------------------------------------------------------
# Discriminator parameters + forward
# ----------------------------------------------------------------------------
def init_params(key, nc, ndf):
    """Conv weights ~ N(0, 0.02); BatchNorm affine gamma=1, beta=0 (PyTorch default)."""
    conv_shapes = [
        (ndf, nc, 4, 4),
        (ndf * 2, ndf, 4, 4),
        (ndf * 4, ndf * 2, 4, 4),
        (ndf * 8, ndf * 4, 4, 4),
        (1, ndf * 8, 4, 4),
    ]
    keys = jax.random.split(key, len(conv_shapes))
    convs = [0.02 * jax.random.normal(k, s, dtype=jnp.float32)
             for k, s in zip(keys, conv_shapes)]
    bn_ch = [ndf * 2, ndf * 4, ndf * 8]
    return {
        "conv": convs,
        "bn_gamma": [jnp.ones((c,), jnp.float32) for c in bn_ch],
        "bn_beta": [jnp.zeros((c,), jnp.float32) for c in bn_ch],
    }


def discriminator_forward(params, x):
    """x: (N, nc, 64, 64) f32 NCHW -> (N,) f32 (== output.view(-1,1).squeeze(1))."""
    w1, w2, w3, w4, w5 = params["conv"]
    g2, g3, g4 = params["bn_gamma"]
    b2, b3, b4 = params["bn_beta"]
    # Single layout change: NCHW -> NHWC, bf16 activations between layers.
    h = jnp.transpose(x, (0, 2, 3, 1)).astype(jnp.bfloat16)
    h = conv_layer(h, w1, None, None, stride=2, pad=1, use_bn=False, out_dtype=jnp.bfloat16)
    h = conv_layer(h, w2, g2, b2, stride=2, pad=1, use_bn=True, out_dtype=jnp.bfloat16)
    h = conv_layer(h, w3, g3, b3, stride=2, pad=1, use_bn=True, out_dtype=jnp.bfloat16)
    h = conv_layer(h, w4, g4, b4, stride=2, pad=1, use_bn=True, out_dtype=jnp.bfloat16)
    return final_layer(h, w5)                  # (N,) float32 in [0, 1]


if __name__ == "__main__":
    nc, ndf, batch = 3, 8, 2   # small ndf; spatial must be 64 for this architecture
    key = jax.random.PRNGKey(0)
    k_x, k_p = jax.random.split(key)
    x = jax.random.normal(k_x, (batch, nc, 64, 64), dtype=jnp.float32)
    params = init_params(k_p, nc, ndf)

    out = jax.jit(discriminator_forward)(params, x)
    out = jax.block_until_ready(out)
    assert out.shape == (batch,)
    assert bool(jnp.all(jnp.isfinite(out)))
    assert bool(jnp.all((out >= 0.0) & (out <= 1.0)))
    print("KERNEL_OK")
</pallas_src>

<mosaic_0001>
module attributes {stable_mosaic.version = 11 : i64} {
  func.func @_matmul_act_kernel(%arg0: i32, %arg1: memref<2048x128xbf16, #tpu.memory_space<vmem>>, %arg2: memref<128x128xbf16, #tpu.memory_space<vmem>>, %arg3: memref<2048x128xbf16, #tpu.memory_space<vmem>>) attributes {dimension_semantics = [#tpu.dimension_semantics<parallel>], iteration_bounds = array<i64: 1>, scalar_prefetch = 0 : i64, scratch_operands = 0 : i64, tpu.core_type = #tpu.core_type<tc>, window_params = [{transform_indices = @transform_0, window_bounds = array<i64: 2048, 128>}, {pipeline_mode = #tpu.pipeline_mode<synchronous>, transform_indices = @transform_1, window_bounds = array<i64: 128, 128>}, {transform_indices = @transform_2, window_bounds = array<i64: 2048, 128>}]} {
    %c0 = arith.constant 0 : index
    %c0_0 = arith.constant 0 : index
    %0 = vector.load %arg1[%c0, %c0_0] : memref<2048x128xbf16, #tpu.memory_space<vmem>>, vector<2048x128xbf16>
    %c0_1 = arith.constant 0 : index
    %c0_2 = arith.constant 0 : index
    %1 = vector.load %arg2[%c0_1, %c0_2] : memref<128x128xbf16, #tpu.memory_space<vmem>>, vector<128x128xbf16>
    %cst = arith.constant dense<0.000000e+00> : vector<2048x128xf32>
    %2 = tpu.matmul %0, %1, %cst {dimension_numbers = #tpu.dot_dimension_numbers<[1], [0], [0], [1], [0, 0, 1, 1], [], []>} : vector<2048x128xbf16>, vector<128x128xbf16>, vector<2048x128xf32> -> vector<2048x128xf32>
    %cst_3 = arith.constant 0.000000e+00 : f32
    %3 = vector.broadcast %cst_3 : f32 to vector<2048x128xf32>
    %4 = arith.cmpf ogt, %2, %3 : vector<2048x128xf32>
    %cst_4 = arith.constant 2.000000e-01 : f32
    %5 = vector.broadcast %cst_4 : f32 to vector<2048x128xf32>
    %6 = arith.mulf %5, %2 : vector<2048x128xf32>
    %7 = arith.select %4, %2, %6 : vector<2048x128xi1>, vector<2048x128xf32>
    %8 = arith.truncf %7 : vector<2048x128xf32> to vector<2048x128xbf16>
    %c0_5 = arith.constant 0 : index
    %c0_6 = arith.constant 0 : index
    %9 = vector.load %arg3[%c0_5, %c0_6] : memref<2048x128xbf16, #tpu.memory_space<vmem>>, vector<2048x128xbf16>
    tpu.vector_store %arg3[%c0_5, %c0_6], %8 {strides = array<i32>} : memref<2048x128xbf16, #tpu.memory_space<vmem>>, vector<2048x128xbf16>,
    return
  }
  func.func @transform_0(%arg0: i32) -> (i32, i32) {
    %c0_i32 = arith.constant 0 : i32
    %c0_i32_0 = arith.constant 0 : i32
    return %arg0, %c0_i32 : i32, i32
  }
  func.func @transform_1(%arg0: i32) -> (i32, i32) {
    %c0_i32 = arith.constant 0 : i32
    %c0_i32_0 = arith.constant 0 : i32
    %c0_i32_1 = arith.constant 0 : i32
    return %c0_i32, %c0_i32_0 : i32, i32
  }
  func.func @transform_2(%arg0: i32) -> (i32, i32) {
    %c0_i32 = arith.constant 0 : i32
    %c0_i32_0 = arith.constant 0 : i32
    return %arg0, %c0_i32 : i32, i32
  }
}

module attributes {stable_mosaic.version = 11 : i64} {
  func.func @_matmul_stats_kernel(%arg0: i32, %arg1: memref<512x128xbf16, #tpu.memory_space<vmem>>, %arg2: memref<128x128xbf16, #tpu.memory_space<vmem>>, %arg3: memref<512x128xbf16, #tpu.memory_space<vmem>>, %arg4: memref<8x128xf32, #tpu.memory_space<vmem>>) attributes {dimension_semantics = [#tpu.dimension_semantics<parallel>], iteration_bounds = array<i64: 1>, scalar_prefetch = 0 : i64, scratch_operands = 0 : i64, tpu.core_type = #tpu.core_type<tc>, window_params = [{transform_indices = @transform_0, window_bounds = array<i64: 512, 128>}, {pipeline_mode = #tpu.pipeline_mode<synchronous>, transform_indices = @transform_1, window_bounds = array<i64: 128, 128>}, {transform_indices = @transform_2, window_bounds = array<i64: 512, 128>}, {transform_indices = @transform_3, window_bounds = array<i64: 8, 128>}]} {
    %c0 = arith.constant 0 : index
    %c0_0 = arith.constant 0 : index
    %0 = vector.load %arg1[%c0, %c0_0] : memref<512x128xbf16, #tpu.memory_space<vmem>>, vector<512x128xbf16>
    %c0_1 = arith.constant 0 : index
    %c0_2 = arith.constant 0 : index
    %1 = vector.load %arg2[%c0_1, %c0_2] : memref<128x128xbf16, #tpu.memory_space<vmem>>, vector<128x128xbf16>
    %cst = arith.constant dense<0.000000e+00> : vector<512x128xf32>
    %2 = tpu.matmul %0, %1, %cst {dimension_numbers = #tpu.dot_dimension_numbers<[1], [0], [0], [1], [0, 0, 1, 1], [], []>} : vector<512x128xbf16>, vector<128x128xbf16>, vector<512x128xf32> -> vector<512x128xf32>
    %3 = arith.truncf %2 : vector<512x128xf32> to vector<512x128xbf16>
    %c0_3 = arith.constant 0 : index
    %c0_4 = arith.constant 0 : index
    %4 = vector.load %arg3[%c0_3, %c0_4] : memref<512x128xbf16, #tpu.memory_space<vmem>>, vector<512x128xbf16>
    tpu.vector_store %arg3[%c0_3, %c0_4], %3 {strides = array<i32>} : memref<512x128xbf16, #tpu.memory_space<vmem>>, vector<512x128xbf16>,
    %cst_5 = arith.constant dense<0.000000e+00> : vector<128xf32>
    %5 = vector.multi_reduction <add>, %2, %cst_5 [0] : vector<512x128xf32> to vector<128xf32>
    %6 = vector.shape_cast %5 : vector<128xf32> to vector<1x128xf32>
    %7 = arith.mulf %2, %2 : vector<512x128xf32>
    %cst_6 = arith.constant dense<0.000000e+00> : vector<128xf32>
    %8 = vector.multi_reduction <add>, %7, %cst_6 [0] : vector<512x128xf32> to vector<128xf32>
    %9 = vector.shape_cast %8 : vector<128xf32> to vector<1x128xf32>
    %10 = tpu.iota {dimensions = array<i32: 0>} : vector<8x128xi32>
    %c0_i32 = arith.constant 0 : i32
    %11 = vector.broadcast %c0_i32 : i32 to vector<8x128xi32>
    %12 = arith.cmpi eq, %10, %11 : vector<8x128xi32>
    %c1_i32 = arith.constant 1 : i32
    %13 = vector.broadcast %c1_i32 : i32 to vector<8x128xi32>
    %14 = arith.cmpi eq, %10, %13 : vector<8x128xi32>
    %cst_7 = arith.constant 0.000000e+00 : f32
    %15 = vector.shape_cast %9 : vector<1x128xf32> to vector<1x128xf32>
    %16 = vector.broadcast %15 : vector<1x128xf32> to vector<8x128xf32>
    %17 = vector.broadcast %cst_7 : f32 to vector<8x128xf32>
    %18 = arith.select %14, %16, %17 : vector<8x128xi1>, vector<8x128xf32>
    %19 = vector.shape_cast %6 : vector<1x128xf32> to vector<1x128xf32>
    %20 = vector.broadcast %19 : vector<1x128xf32> to vector<8x128xf32>
    %21 = arith.select %12, %20, %18 : vector<8x128xi1>, vector<8x128xf32>
    %c0_8 = arith.constant 0 : index
    %c0_9 = arith.constant 0 : index
    %22 = vector.load %arg4[%c0_8, %c0_9] : memref<8x128xf32, #tpu.memory_space<vmem>>, vector<8x128xf32>
    tpu.vector_store %arg4[%c0_8, %c0_9], %21 {strides = array<i32>} : memref<8x128xf32, #tpu.memory_space<vmem>>, vector<8x128xf32>,
    return
  }
  func.func @transform_0(%arg0: i32) -> (i32, i32) {
    %c0_i32 = arith.constant 0 : i32
    %c0_i32_0 = arith.constant 0 : i32
    return %arg0, %c0_i32 : i32, i32
  }
  func.func @transform_1(%arg0: i32) -> (i32, i32) {
    %c0_i32 = arith.constant 0 : i32
    %c0_i32_0 = arith.constant 0 : i32
    %c0_i32_1 = arith.constant 0 : i32
    return %c0_i32, %c0_i32_0 : i32, i32
  }
  func.func @transform_2(%arg0: i32) -> (i32, i32) {
    %c0_i32 = arith.constant 0 : i32
    %c0_i32_0 = arith.constant 0 : i32
    return %arg0, %c0_i32 : i32, i32
  }
  func.func @transform_3(%arg0: i32) -> (i32, i32) {
    %c0_i32 = arith.constant 0 : i32
    %c0_i32_0 = arith.constant 0 : i32
    return %arg0, %c0_i32 : i32, i32
  }
}

module attributes {stable_mosaic.version = 11 : i64} {
  func.func @_bn_act_kernel(%arg0: i32, %arg1: memref<512x128xbf16, #tpu.memory_space<vmem>>, %arg2: memref<1x128xf32, #tpu.memory_space<vmem>>, %arg3: memref<1x128xf32, #tpu.memory_space<vmem>>, %arg4: memref<512x128xbf16, #tpu.memory_space<vmem>>) attributes {dimension_semantics = [#tpu.dimension_semantics<parallel>], iteration_bounds = array<i64: 1>, scalar_prefetch = 0 : i64, scratch_operands = 0 : i64, tpu.core_type = #tpu.core_type<tc>, window_params = [{transform_indices = @transform_0, window_bounds = array<i64: 512, 128>}, {pipeline_mode = #tpu.pipeline_mode<synchronous>, transform_indices = @transform_1, window_bounds = array<i64: 1, 128>}, {pipeline_mode = #tpu.pipeline_mode<synchronous>, transform_indices = @transform_2, window_bounds = array<i64: 1, 128>}, {transform_indices = @transform_3, window_bounds = array<i64: 512, 128>}]} {
    %c0 = arith.constant 0 : index
    %c0_0 = arith.constant 0 : index
    %0 = vector.load %arg1[%c0, %c0_0] : memref<512x128xbf16, #tpu.memory_space<vmem>>, vector<512x128xbf16>
    %1 = arith.extf %0 : vector<512x128xbf16> to vector<512x128xf32>
    %c0_1 = arith.constant 0 : index
    %c0_2 = arith.constant 0 : index
    %2 = vector.load %arg2[%c0_1, %c0_2] : memref<1x128xf32, #tpu.memory_space<vmem>>, vector<1x128xf32>
    %3 = vector.broadcast %2 : vector<1x128xf32> to vector<512x128xf32>
    %4 = arith.mulf %1, %3 : vector<512x128xf32>
    %c0_3 = arith.constant 0 : index
    %c0_4 = arith.constant 0 : index
    %5 = vector.load %arg3[%c0_3, %c0_4] : memref<1x128xf32, #tpu.memory_space<vmem>>, vector<1x128xf32>
    %6 = vector.broadcast %5 : vector<1x128xf32> to vector<512x128xf32>
    %7 = arith.addf %4, %6 : vector<512x128xf32>
    %cst = arith.constant 0.000000e+00 : f32
    %8 = vector.broadcast %cst : f32 to vector<512x128xf32>
    %9 = arith.cmpf ogt, %7, %8 : vector<512x128xf32>
    %cst_5 = arith.constant 2.000000e-01 : f32
    %10 = vector.broadcast %cst_5 : f32 to vector<512x128xf32>
    %11 = arith.mulf %10, %7 : vector<512x128xf32>
    %12 = arith.select %9, %7, %11 : vector<512x128xi1>, vector<512x128xf32>
    %13 = arith.truncf %12 : vector<512x128xf32> to vector<512x128xbf16>
    %c0_6 = arith.constant 0 : index
    %c0_7 = arith.constant 0 : index
    %14 = vector.load %arg4[%c0_6, %c0_7] : memref<512x128xbf16, #tpu.memory_space<vmem>>, vector<512x128xbf16>
    tpu.vector_store %arg4[%c0_6, %c0_7], %13 {strides = array<i32>} : memref<512x128xbf16, #tpu.memory_space<vmem>>, vector<512x128xbf16>,
    return
  }
  func.func @transform_0(%arg0: i32) -> (i32, i32) {
    %c0_i32 = arith.constant 0 : i32
    %c0_i32_0 = arith.constant 0 : i32
    return %arg0, %c0_i32 : i32, i32
  }
  func.func @transform_1(%arg0: i32) -> (i32, i32) {
    %c0_i32 = arith.constant 0 : i32
    %c0_i32_0 = arith.constant 0 : i32
    %c0_i32_1 = arith.constant 0 : i32
    return %c0_i32, %c0_i32_0 : i32, i32
  }
  func.func @transform_2(%arg0: i32) -> (i32, i32) {
    %c0_i32 = arith.constant 0 : i32
    %c0_i32_0 = arith.constant 0 : i32
    %c0_i32_1 = arith.constant 0 : i32
    return %c0_i32, %c0_i32_0 : i32, i32
  }
  func.func @transform_3(%arg0: i32) -> (i32, i32) {
    %c0_i32 = arith.constant 0 : i32
    %c0_i32_0 = arith.constant 0 : i32
    return %arg0, %c0_i32 : i32, i32
  }
}

module attributes {stable_mosaic.version = 11 : i64} {
  func.func @_matmul_stats_kernel(%arg0: i32, %arg1: memref<128x256xbf16, #tpu.memory_space<vmem>>, %arg2: memref<256x128xbf16, #tpu.memory_space<vmem>>, %arg3: memref<128x128xbf16, #tpu.memory_space<vmem>>, %arg4: memref<8x128xf32, #tpu.memory_space<vmem>>) attributes {dimension_semantics = [#tpu.dimension_semantics<parallel>], iteration_bounds = array<i64: 1>, scalar_prefetch = 0 : i64, scratch_operands = 0 : i64, tpu.core_type = #tpu.core_type<tc>, window_params = [{transform_indices = @transform_0, window_bounds = array<i64: 128, 256>}, {pipeline_mode = #tpu.pipeline_mode<synchronous>, transform_indices = @transform_1, window_bounds = array<i64: 256, 128>}, {transform_indices = @transform_2, window_bounds = array<i64: 128, 128>}, {transform_indices = @transform_3, window_bounds = array<i64: 8, 128>}]} {
    %c0 = arith.constant 0 : index
    %c0_0 = arith.constant 0 : index
    %0 = vector.load %arg1[%c0, %c0_0] : memref<128x256xbf16, #tpu.memory_space<vmem>>, vector<128x256xbf16>
    %c0_1 = arith.constant 0 : index
    %c0_2 = arith.constant 0 : index
    %1 = vector.load %arg2[%c0_1, %c0_2] : memref<256x128xbf16, #tpu.memory_space<vmem>>, vector<256x128xbf16>
    %cst = arith.constant dense<0.000000e+00> : vector<128x128xf32>
    %2 = tpu.matmul %0, %1, %cst {dimension_numbers = #tpu.dot_dimension_numbers<[1], [0], [0], [1], [0, 0, 1, 1], [], []>} : vector<128x256xbf16>, vector<256x128xbf16>, vector<128x128xf32> -> vector<128x128xf32>
    %3 = arith.truncf %2 : vector<128x128xf32> to vector<128x128xbf16>
    %c0_3 = arith.constant 0 : index
    %c0_4 = arith.constant 0 : index
    %4 = vector.load %arg3[%c0_3, %c0_4] : memref<128x128xbf16, #tpu.memory_space<vmem>>, vector<128x128xbf16>
    tpu.vector_store %arg3[%c0_3, %c0_4], %3 {strides = array<i32>} : memref<128x128xbf16, #tpu.memory_space<vmem>>, vector<128x128xbf16>,
    %cst_5 = arith.constant dense<0.000000e+00> : vector<128xf32>
    %5 = vector.multi_reduction <add>, %2, %cst_5 [0] : vector<128x128xf32> to vector<128xf32>
    %6 = vector.shape_cast %5 : vector<128xf32> to vector<1x128xf32>
    %7 = arith.mulf %2, %2 : vector<128x128xf32>
    %cst_6 = arith.constant dense<0.000000e+00> : vector<128xf32>
    %8 = vector.multi_reduction <add>, %7, %cst_6 [0] : vector<128x128xf32> to vector<128xf32>
    %9 = vector.shape_cast %8 : vector<128xf32> to vector<1x128xf32>
    %10 = tpu.iota {dimensions = array<i32: 0>} : vector<8x128xi32>
    %c0_i32 = arith.constant 0 : i32
    %11 = vector.broadcast %c0_i32 : i32 to vector<8x128xi32>
    %12 = arith.cmpi eq, %10, %11 : vector<8x128xi32>
    %c1_i32 = arith.constant 1 : i32
    %13 = vector.broadcast %c1_i32 : i32 to vector<8x128xi32>
    %14 = arith.cmpi eq, %10, %13 : vector<8x128xi32>
    %cst_7 = arith.constant 0.000000e+00 : f32
    %15 = vector.shape_cast %9 : vector<1x128xf32> to vector<1x128xf32>
    %16 = vector.broadcast %15 : vector<1x128xf32> to vector<8x128xf32>
    %17 = vector.broadcast %cst_7 : f32 to vector<8x128xf32>
    %18 = arith.select %14, %16, %17 : vector<8x128xi1>, vector<8x128xf32>
    %19 = vector.shape_cast %6 : vector<1x128xf32> to vector<1x128xf32>
    %20 = vector.broadcast %19 : vector<1x128xf32> to vector<8x128xf32>
    %21 = arith.select %12, %20, %18 : vector<8x128xi1>, vector<8x128xf32>
    %c0_8 = arith.constant 0 : index
    %c0_9 = arith.constant 0 : index
    %22 = vector.load %arg4[%c0_8, %c0_9] : memref<8x128xf32, #tpu.memory_space<vmem>>, vector<8x128xf32>
    tpu.vector_store %arg4[%c0_8, %c0_9], %21 {strides = array<i32>} : memref<8x128xf32, #tpu.memory_space<vmem>>, vector<8x128xf32>,
    return
  }
  func.func @transform_0(%arg0: i32) -> (i32, i32) {
    %c0_i32 = arith.constant 0 : i32
    %c0_i32_0 = arith.constant 0 : i32
    return %arg0, %c0_i32 : i32, i32
  }
  func.func @transform_1(%arg0: i32) -> (i32, i32) {
    %c0_i32 = arith.constant 0 : i32
    %c0_i32_0 = arith.constant 0 : i32
    %c0_i32_1 = arith.constant 0 : i32
    return %c0_i32, %c0_i32_0 : i32, i32
  }
  func.func @transform_2(%arg0: i32) -> (i32, i32) {
    %c0_i32 = arith.constant 0 : i32
    %c0_i32_0 = arith.constant 0 : i32
    return %arg0, %c0_i32 : i32, i32
  }
  func.func @transform_3(%arg0: i32) -> (i32, i32) {
    %c0_i32 = arith.constant 0 : i32
    %c0_i32_0 = arith.constant 0 : i32
    return %arg0, %c0_i32 : i32, i32
  }
}

module attributes {stable_mosaic.version = 11 : i64} {
  func.func @_bn_act_kernel(%arg0: i32, %arg1: memref<128x128xbf16, #tpu.memory_space<vmem>>, %arg2: memref<1x128xf32, #tpu.memory_space<vmem>>, %arg3: memref<1x128xf32, #tpu.memory_space<vmem>>, %arg4: memref<128x128xbf16, #tpu.memory_space<vmem>>) attributes {dimension_semantics = [#tpu.dimension_semantics<parallel>], iteration_bounds = array<i64: 1>, scalar_prefetch = 0 : i64, scratch_operands = 0 : i64, tpu.core_type = #tpu.core_type<tc>, window_params = [{transform_indices = @transform_0, window_bounds = array<i64: 128, 128>}, {pipeline_mode = #tpu.pipeline_mode<synchronous>, transform_indices = @transform_1, window_bounds = array<i64: 1, 128>}, {pipeline_mode = #tpu.pipeline_mode<synchronous>, transform_indices = @transform_2, window_bounds = array<i64: 1, 128>}, {transform_indices = @transform_3, window_bounds = array<i64: 128, 128>}]} {
    %c0 = arith.constant 0 : index
    %c0_0 = arith.constant 0 : index
    %0 = vector.load %arg1[%c0, %c0_0] : memref<128x128xbf16, #tpu.memory_space<vmem>>, vector<128x128xbf16>
    %1 = arith.extf %0 : vector<128x128xbf16> to vector<128x128xf32>
    %c0_1 = arith.constant 0 : index
    %c0_2 = arith.constant 0 : index
    %2 = vector.load %arg2[%c0_1, %c0_2] : memref<1x128xf32, #tpu.memory_space<vmem>>, vector<1x128xf32>
    %3 = vector.broadcast %2 : vector<1x128xf32> to vector<128x128xf32>
    %4 = arith.mulf %1, %3 : vector<128x128xf32>
    %c0_3 = arith.constant 0 : index
    %c0_4 = arith.constant 0 : index
    %5 = vector.load %arg3[%c0_3, %c0_4] : memref<1x128xf32, #tpu.memory_space<vmem>>, vector<1x128xf32>
    %6 = vector.broadcast %5 : vector<1x128xf32> to vector<128x128xf32>
    %7 = arith.addf %4, %6 : vector<128x128xf32>
    %cst = arith.constant 0.000000e+00 : f32
    %8 = vector.broadcast %cst : f32 to vector<128x128xf32>
    %9 = arith.cmpf ogt, %7, %8 : vector<128x128xf32>
    %cst_5 = arith.constant 2.000000e-01 : f32
    %10 = vector.broadcast %cst_5 : f32 to vector<128x128xf32>
    %11 = arith.mulf %10, %7 : vector<128x128xf32>
    %12 = arith.select %9, %7, %11 : vector<128x128xi1>, vector<128x128xf32>
    %13 = arith.truncf %12 : vector<128x128xf32> to vector<128x128xbf16>
    %c0_6 = arith.constant 0 : index
    %c0_7 = arith.constant 0 : index
    %14 = vector.load %arg4[%c0_6, %c0_7] : memref<128x128xbf16, #tpu.memory_space<vmem>>, vector<128x128xbf16>
    tpu.vector_store %arg4[%c0_6, %c0_7], %13 {strides = array<i32>} : memref<128x128xbf16, #tpu.memory_space<vmem>>, vector<128x128xbf16>,
    return
  }
  func.func @transform_0(%arg0: i32) -> (i32, i32) {
    %c0_i32 = arith.constant 0 : i32
    %c0_i32_0 = arith.constant 0 : i32
    return %arg0, %c0_i32 : i32, i32
  }
  func.func @transform_1(%arg0: i32) -> (i32, i32) {
    %c0_i32 = arith.constant 0 : i32
    %c0_i32_0 = arith.constant 0 : i32
    %c0_i32_1 = arith.constant 0 : i32
    return %c0_i32, %c0_i32_0 : i32, i32
  }
  func.func @transform_2(%arg0: i32) -> (i32, i32) {
    %c0_i32 = arith.constant 0 : i32
    %c0_i32_0 = arith.constant 0 : i32
    %c0_i32_1 = arith.constant 0 : i32
    return %c0_i32, %c0_i32_0 : i32, i32
  }
  func.func @transform_3(%arg0: i32) -> (i32, i32) {
    %c0_i32 = arith.constant 0 : i32
    %c0_i32_0 = arith.constant 0 : i32
    return %arg0, %c0_i32 : i32, i32
  }
}

module attributes {stable_mosaic.version = 11 : i64} {
  func.func @_bn_act_kernel(%arg0: i32, %arg1: memref<32x128xbf16, #tpu.memory_space<vmem>>, %arg2: memref<1x128xf32, #tpu.memory_space<vmem>>, %arg3: memref<1x128xf32, #tpu.memory_space<vmem>>, %arg4: memref<32x128xbf16, #tpu.memory_space<vmem>>) attributes {dimension_semantics = [#tpu.dimension_semantics<parallel>], iteration_bounds = array<i64: 1>, scalar_prefetch = 0 : i64, scratch_operands = 0 : i64, tpu.core_type = #tpu.core_type<tc>, window_params = [{transform_indices = @transform_0, window_bounds = array<i64: 32, 128>}, {pipeline_mode = #tpu.pipeline_mode<synchronous>, transform_indices = @transform_1, window_bounds = array<i64: 1, 128>}, {pipeline_mode = #tpu.pipeline_mode<synchronous>, transform_indices = @transform_2, window_bounds = array<i64: 1, 128>}, {transform_indices = @transform_3, window_bounds = array<i64: 32, 128>}]} {
    %c0 = arith.constant 0 : index
    %c0_0 = arith.constant 0 : index
    %0 = vector.load %arg1[%c0, %c0_0] : memref<32x128xbf16, #tpu.memory_space<vmem>>, vector<32x128xbf16>
    %1 = arith.extf %0 : vector<32x128xbf16> to vector<32x128xf32>
    %c0_1 = arith.constant 0 : index
    %c0_2 = arith.constant 0 : index
    %2 = vector.load %arg2[%c0_1, %c0_2] : memref<1x128xf32, #tpu.memory_space<vmem>>, vector<1x128xf32>
    %3 = vector.broadcast %2 : vector<1x128xf32> to vector<32x128xf32>
    %4 = arith.mulf %1, %3 : vector<32x128xf32>
    %c0_3 = arith.constant 0 : index
    %c0_4 = arith.constant 0 : index
    %5 = vector.load %arg3[%c0_3, %c0_4] : memref<1x128xf32, #tpu.memory_space<vmem>>, vector<1x128xf32>
    %6 = vector.broadcast %5 : vector<1x128xf32> to vector<32x128xf32>
    %7 = arith.addf %4, %6 : vector<32x128xf32>
    %cst = arith.constant 0.000000e+00 : f32
    %8 = vector.broadcast %cst : f32 to vector<32x128xf32>
    %9 = arith.cmpf ogt, %7, %8 : vector<32x128xf32>
    %cst_5 = arith.constant 2.000000e-01 : f32
    %10 = vector.broadcast %cst_5 : f32 to vector<32x128xf32>
    %11 = arith.mulf %10, %7 : vector<32x128xf32>
    %12 = arith.select %9, %7, %11 : vector<32x128xi1>, vector<32x128xf32>
    %13 = arith.truncf %12 : vector<32x128xf32> to vector<32x128xbf16>
    %c0_6 = arith.constant 0 : index
    %c0_7 = arith.constant 0 : index
    %14 = vector.load %arg4[%c0_6, %c0_7] : memref<32x128xbf16, #tpu.memory_space<vmem>>, vector<32x128xbf16>
    tpu.vector_store %arg4[%c0_6, %c0_7], %13 {strides = array<i32>} : memref<32x128xbf16, #tpu.memory_space<vmem>>, vector<32x128xbf16>,
    return
  }
  func.func @transform_0(%arg0: i32) -> (i32, i32) {
    %c0_i32 = arith.constant 0 : i32
    %c0_i32_0 = arith.constant 0 : i32
    return %arg0, %c0_i32 : i32, i32
  }
  func.func @transform_1(%arg0: i32) -> (i32, i32) {
    %c0_i32 = arith.constant 0 : i32
    %c0_i32_0 = arith.constant 0 : i32
    %c0_i32_1 = arith.constant 0 : i32
    return %c0_i32, %c0_i32_0 : i32, i32
  }
  func.func @transform_2(%arg0: i32) -> (i32, i32) {
    %c0_i32 = arith.constant 0 : i32
    %c0_i32_0 = arith.constant 0 : i32
    %c0_i32_1 = arith.constant 0 : i32
    return %c0_i32, %c0_i32_0 : i32, i32
  }
  func.func @transform_3(%arg0: i32) -> (i32, i32) {
    %c0_i32 = arith.constant 0 : i32
    %c0_i32_0 = arith.constant 0 : i32
    return %arg0, %c0_i32 : i32, i32
  }
}

module attributes {stable_mosaic.version = 11 : i64} {
  func.func @_matmul_stats_kernel(%arg0: i32, %arg1: memref<32x512xbf16, #tpu.memory_space<vmem>>, %arg2: memref<512x128xbf16, #tpu.memory_space<vmem>>, %arg3: memref<32x128xbf16, #tpu.memory_space<vmem>>, %arg4: memref<8x128xf32, #tpu.memory_space<vmem>>) attributes {dimension_semantics = [#tpu.dimension_semantics<parallel>], iteration_bounds = array<i64: 1>, scalar_prefetch = 0 : i64, scratch_operands = 0 : i64, tpu.core_type = #tpu.core_type<tc>, window_params = [{transform_indices = @transform_0, window_bounds = array<i64: 32, 512>}, {pipeline_mode = #tpu.pipeline_mode<synchronous>, transform_indices = @transform_1, window_bounds = array<i64: 512, 128>}, {transform_indices = @transform_2, window_bounds = array<i64: 32, 128>}, {transform_indices = @transform_3, window_bounds = array<i64: 8, 128>}]} {
    %c0 = arith.constant 0 : index
    %c0_0 = arith.constant 0 : index
    %0 = vector.load %arg1[%c0, %c0_0] : memref<32x512xbf16, #tpu.memory_space<vmem>>, vector<32x512xbf16>
    %c0_1 = arith.constant 0 : index
    %c0_2 = arith.constant 0 : index
    %1 = vector.load %arg2[%c0_1, %c0_2] : memref<512x128xbf16, #tpu.memory_space<vmem>>, vector<512x128xbf16>
    %cst = arith.constant dense<0.000000e+00> : vector<32x128xf32>
    %2 = tpu.matmul %0, %1, %cst {dimension_numbers = #tpu.dot_dimension_numbers<[1], [0], [0], [1], [0, 0, 1, 1], [], []>} : vector<32x512xbf16>, vector<512x128xbf16>, vector<32x128xf32> -> vector<32x128xf32>
    %3 = arith.truncf %2 : vector<32x128xf32> to vector<32x128xbf16>
    %c0_3 = arith.constant 0 : index
    %c0_4 = arith.constant 0 : index
    %4 = vector.load %arg3[%c0_3, %c0_4] : memref<32x128xbf16, #tpu.memory_space<vmem>>, vector<32x128xbf16>
    tpu.vector_store %arg3[%c0_3, %c0_4], %3 {strides = array<i32>} : memref<32x128xbf16, #tpu.memory_space<vmem>>, vector<32x128xbf16>,
    %cst_5 = arith.constant dense<0.000000e+00> : vector<128xf32>
    %5 = vector.multi_reduction <add>, %2, %cst_5 [0] : vector<32x128xf32> to vector<128xf32>
    %6 = vector.shape_cast %5 : vector<128xf32> to vector<1x128xf32>
    %7 = arith.mulf %2, %2 : vector<32x128xf32>
    %cst_6 = arith.constant dense<0.000000e+00> : vector<128xf32>
    %8 = vector.multi_reduction <add>, %7, %cst_6 [0] : vector<32x128xf32> to vector<128xf32>
    %9 = vector.shape_cast %8 : vector<128xf32> to vector<1x128xf32>
    %10 = tpu.iota {dimensions = array<i32: 0>} : vector<8x128xi32>
    %c0_i32 = arith.constant 0 : i32
    %11 = vector.broadcast %c0_i32 : i32 to vector<8x128xi32>
    %12 = arith.cmpi eq, %10, %11 : vector<8x128xi32>
    %c1_i32 = arith.constant 1 : i32
    %13 = vector.broadcast %c1_i32 : i32 to vector<8x128xi32>
    %14 = arith.cmpi eq, %10, %13 : vector<8x128xi32>
    %cst_7 = arith.constant 0.000000e+00 : f32
    %15 = vector.shape_cast %9 : vector<1x128xf32> to vector<1x128xf32>
    %16 = vector.broadcast %15 : vector<1x128xf32> to vector<8x128xf32>
    %17 = vector.broadcast %cst_7 : f32 to vector<8x128xf32>
    %18 = arith.select %14, %16, %17 : vector<8x128xi1>, vector<8x128xf32>
    %19 = vector.shape_cast %6 : vector<1x128xf32> to vector<1x128xf32>
    %20 = vector.broadcast %19 : vector<1x128xf32> to vector<8x128xf32>
    %21 = arith.select %12, %20, %18 : vector<8x128xi1>, vector<8x128xf32>
    %c0_8 = arith.constant 0 : index
    %c0_9 = arith.constant 0 : index
    %22 = vector.load %arg4[%c0_8, %c0_9] : memref<8x128xf32, #tpu.memory_space<vmem>>, vector<8x128xf32>
    tpu.vector_store %arg4[%c0_8, %c0_9], %21 {strides = array<i32>} : memref<8x128xf32, #tpu.memory_space<vmem>>, vector<8x128xf32>,
    return
  }
  func.func @transform_0(%arg0: i32) -> (i32, i32) {
    %c0_i32 = arith.constant 0 : i32
    %c0_i32_0 = arith.constant 0 : i32
    return %arg0, %c0_i32 : i32, i32
  }
  func.func @transform_1(%arg0: i32) -> (i32, i32) {
    %c0_i32 = arith.constant 0 : i32
    %c0_i32_0 = arith.constant 0 : i32
    %c0_i32_1 = arith.constant 0 : i32
    return %c0_i32, %c0_i32_0 : i32, i32
  }
  func.func @transform_2(%arg0: i32) -> (i32, i32) {
    %c0_i32 = arith.constant 0 : i32
    %c0_i32_0 = arith.constant 0 : i32
    return %arg0, %c0_i32 : i32, i32
  }
  func.func @transform_3(%arg0: i32) -> (i32, i32) {
    %c0_i32 = arith.constant 0 : i32
    %c0_i32_0 = arith.constant 0 : i32
    return %arg0, %c0_i32 : i32, i32
  }
}

module attributes {stable_mosaic.version = 11 : i64} {
  func.func @_proj_sigmoid_kernel(%arg0: i32, %arg1: memref<16x1024xbf16, #tpu.memory_space<vmem>>, %arg2: memref<1x1024xbf16, #tpu.memory_space<vmem>>, %arg3: memref<16x1xf32, #tpu.memory_space<vmem>>) attributes {dimension_semantics = [#tpu.dimension_semantics<arbitrary>], iteration_bounds = array<i64: 1>, scalar_prefetch = 0 : i64, scratch_operands = 0 : i64, tpu.core_type = #tpu.core_type<tc>, window_params = [{pipeline_mode = #tpu.pipeline_mode<synchronous>, transform_indices = @transform_0, window_bounds = array<i64: 16, 1024>}, {pipeline_mode = #tpu.pipeline_mode<synchronous>, transform_indices = @transform_1, window_bounds = array<i64: 1, 1024>}, {pipeline_mode = #tpu.pipeline_mode<synchronous>, transform_indices = @transform_2, window_bounds = array<i64: 16, 1>}]} {
    %c0 = arith.constant 0 : index
    %c0_0 = arith.constant 0 : index
    %0 = vector.load %arg1[%c0, %c0_0] : memref<16x1024xbf16, #tpu.memory_space<vmem>>, vector<16x1024xbf16>
    %1 = arith.extf %0 : vector<16x1024xbf16> to vector<16x1024xf32>
    %c0_1 = arith.constant 0 : index
    %c0_2 = arith.constant 0 : index
    %2 = vector.load %arg2[%c0_1, %c0_2] : memref<1x1024xbf16, #tpu.memory_space<vmem>>, vector<1x1024xbf16>
    %3 = arith.extf %2 : vector<1x1024xbf16> to vector<1x1024xf32>
    %4 = vector.broadcast %3 : vector<1x1024xf32> to vector<16x1024xf32>
    %5 = arith.mulf %1, %4 : vector<16x1024xf32>
    %cst = arith.constant dense<0.000000e+00> : vector<16xf32>
    %6 = vector.multi_reduction <add>, %5, %cst [1] : vector<16x1024xf32> to vector<16xf32>
    %7 = vector.shape_cast %6 : vector<16xf32> to vector<16x1xf32>
    %8 = arith.negf %7 : vector<16x1xf32>
    %9 = math.exp %8 : vector<16x1xf32>
    %cst_3 = arith.constant 1.000000e+00 : f32
    %10 = vector.broadcast %cst_3 : f32 to vector<16x1xf32>
    %11 = arith.addf %10, %9 : vector<16x1xf32>
    %12 = arith.divf %10, %11 : vector<16x1xf32>
    %c0_4 = arith.constant 0 : index
    %c0_5 = arith.constant 0 : index
    %13 = vector.load %arg3[%c0_4, %c0_5] : memref<16x1xf32, #tpu.memory_space<vmem>>, vector<16x1xf32>
    tpu.vector_store %arg3[%c0_4, %c0_5], %12 {strides = array<i32>} : memref<16x1xf32, #tpu.memory_space<vmem>>, vector<16x1xf32>,
    return
  }
  func.func @transform_0(%arg0: i32) -> (i32, i32) {
    %c0_i32 = arith.constant 0 : i32
    %c0_i32_0 = arith.constant 0 : i32
    %c0_i32_1 = arith.constant 0 : i32
    return %c0_i32, %c0_i32_0 : i32, i32
  }
  func.func @transform_1(%arg0: i32) -> (i32, i32) {
    %c0_i32 = arith.constant 0 : i32
    %c0_i32_0 = arith.constant 0 : i32
    %c0_i32_1 = arith.constant 0 : i32
    return %c0_i32, %c0_i32_0 : i32, i32
  }
  func.func @transform_2(%arg0: i32) -> (i32, i32) {
    %c0_i32 = arith.constant 0 : i32
    %c0_i32_0 = arith.constant 0 : i32
    %c0_i32_1 = arith.constant 0 : i32
    return %c0_i32, %c0_i32_0 : i32, i32
  }
}

</mosaic_0001>

<bundles_post_ra>
// kernel: discriminator_forward.8
= control target key start
LH: loop header
LB: loop body
LE: loop exit
PB: predicated region body
PF: predicated region fallthrough
CT: control target
= control target key end

     0   :  { %s7032_s1 = inlined_call_operand.vmem [shape: bf16[128,128], index: 1, kind: input, shape index: {}]   ;;  %s7033_s0 = inlined_call_operand.vmem [shape: bf16[2048,128], index: 0, kind: input, shape index: {}]   ;;  %s7034_s2 = inlined_call_operand.vmem [shape: bf16[2048,128], index: 2, kind: output, shape index: {}]  }
   0x1   :  { %v6048_v0 = vld [vmem:[%s7032_s1 + $0x38] sm:$0xff]   ;;  %v6049_v1 = vld [vmem:[%s7032_s1 + $0x30] sm:$0xff]   ;;  %v6050_v2 = vld [vmem:[%s7032_s1 + $0x28] sm:$0xff]  }
   0x2   :  { %5760 = vmatprep.subr.bf16.mxu0 %v6048_v0  ;;  %6032 = vmatprep.subr.bf16.mxu1 %v6048_v0  ;;  %v6051_v3 = vld [vmem:[%s7032_s1 + $0x20] sm:$0xff]   ;;  %v6052_v6 = vld [vmem:[%s7032_s1 + $0x18] sm:$0xff]   ;;  %v6053_v7 = vld [vmem:[%s7032_s1 + $0x10] sm:$0xff]  }
   0x3   :  { %5761 = vmatpush3.bf16.msra.mxu0 %v6048_v0  ;;  %6040 = vmatpush3.bf16.msra.mxu1 %v6048_v0  ;;  %v6056_v4 = vld [vmem:[%s7033_s0] sm:$0xff]   ;;  %v6054_v8 = vld [vmem:[%s7032_s1 + $0x8] sm:$0xff]   ;;  %v6060_v12 = vld [vmem:[%s7033_s0 + $0x10] sm:$0xff]  }
   0x4   :  { %5762 = vmatprep.subr.bf16.mxu0 %v6049_v1  ;;  %6033 = vmatprep.subr.bf16.mxu1 %v6049_v1  ;;  %v6057_v5 = vld [vmem:[%s7033_s0 + $0x200] sm:$0xff]   ;;  %v6058_v10 = vld [vmem:[%s7033_s0 + $0x8] sm:$0xff]   ;;  %v6061_v13 = vld [vmem:[%s7033_s0 + $0x210] sm:$0xff]  }
   0x5   :  { %5776 = vmatprep.mubr.bf16.mxu0 %v6056_v4  ;;  %5904 = vmatprep.mubr.bf16.mxu1 %v6057_v5  ;;  %v6055_v9 = vld [vmem:[%s7032_s1] sm:$0xff]   ;;  %v6059_v11 = vld [vmem:[%s7033_s0 + $0x208] sm:$0xff]   ;;  %v6062_v14 = vld [vmem:[%s7033_s0 + $0x18] sm:$0xff]  }
   0x6   :  { %v6063_v15 = vld [vmem:[%s7033_s0 + $0x218] sm:$0xff]   ;;  %v6064_v16 = vld [vmem:[%s7033_s0 + $0x20] sm:$0xff]   ;;  %v6066_v18 = vld [vmem:[%s7033_s0 + $0x28] sm:$0xff]  }
   0x7   :  { %5763 = vmatpush3.bf16.msra.mxu0 %v6049_v1  ;;  %6041 = vmatpush3.bf16.msra.mxu1 %v6049_v1  ;;  %v6065_v17 = vld [vmem:[%s7033_s0 + $0x220] sm:$0xff]   ;;  %v6067_v19 = vld [vmem:[%s7033_s0 + $0x228] sm:$0xff]   ;;  %v6068_v20 = vld [vmem:[%s7033_s0 + $0x30] sm:$0xff]  }
   0x8   :  { %5764 = vmatprep.subr.bf16.mxu0 %v6050_v2  ;;  %6034 = vmatprep.subr.bf16.mxu1 %v6050_v2  ;;  %v6069_v21 = vld [vmem:[%s7033_s0 + $0x230] sm:$0xff]   ;;  %v6070_v22 = vld [vmem:[%s7033_s0 + $0x38] sm:$0xff]   ;;  %v6072_v24 = vld [vmem:[%s7033_s0 + $0x40] sm:$0xff]  }
   0x9   :  { %v6071_v23 = vld [vmem:[%s7033_s0 + $0x238] sm:$0xff]   ;;  %v6073_v25 = vld [vmem:[%s7033_s0 + $0x240] sm:$0xff]   ;;  %v6074_v26 = vld [vmem:[%s7033_s0 + $0x48] sm:$0xff]  }
   0xa   :  { %v6075_v27 = vld [vmem:[%s7033_s0 + $0x248] sm:$0xff]   ;;  %v6076_v28 = vld [vmem:[%s7033_s0 + $0x50] sm:$0xff]   ;;  %v6078_v30 = vld [vmem:[%s7033_s0 + $0x58] sm:$0xff]  }
   0xb   :  { %5765 = vmatpush3.bf16.msra.mxu0 %v6050_v2  ;;  %6042 = vmatpush3.bf16.msra.mxu1 %v6050_v2  ;;  %v6077_v29 = vld [vmem:[%s7033_s0 + $0x250] sm:$0xff]   ;;  %v6079_v31 = vld [vmem:[%s7033_s0 + $0x258] sm:$0xff]   ;;  %v6080_v32 = vld [vmem:[%s7033_s0 + $0x60] sm:$0xff]  }
   0xc   :  { %5766 = vmatprep.subr.bf16.mxu0 %v6051_v3  ;;  %6035 = vmatprep.subr.bf16.mxu1 %v6051_v3  ;;  %v6081_v33 = vld [vmem:[%s7033_s0 + $0x260] sm:$0xff]   ;;  %v6082_v34 = vld [vmem:[%s7033_s0 + $0x68] sm:$0xff]   ;;  %v6084_v36 = vld [vmem:[%s7033_s0 + $0x70] sm:$0xff]  }
   0xd   :  { %v6083_v35 = vld [vmem:[%s7033_s0 + $0x268] sm:$0xff]   ;;  %v6085_v37 = vld [vmem:[%s7033_s0 + $0x270] sm:$0xff]   ;;  %v6086_v38 = vld [vmem:[%s7033_s0 + $0x78] sm:$0xff]  }
   0xe   :  { %v6087_v39 = vld [vmem:[%s7033_s0 + $0x278] sm:$0xff]   ;;  %v6088_v40 = vld [vmem:[%s7033_s0 + $0x80] sm:$0xff]   ;;  %v6090_v42 = vld [vmem:[%s7033_s0 + $0x88] sm:$0xff]  }
   0xf   :  { %5767 = vmatpush3.bf16.msra.mxu0 %v6051_v3  ;;  %6043 = vmatpush3.bf16.msra.mxu1 %v6051_v3  ;;  %v6089_v41 = vld [vmem:[%s7033_s0 + $0x280] sm:$0xff]   ;;  %v6091_v43 = vld [vmem:[%s7033_s0 + $0x288] sm:$0xff]   ;;  %v6092_v44 = vld [vmem:[%s7033_s0 + $0x90] sm:$0xff]  }
  0x10   :  { %5768 = vmatprep.subr.bf16.mxu0 %v6052_v6  ;;  %6036 = vmatprep.subr.bf16.mxu1 %v6052_v6  ;;  %v6093_v45 = vld [vmem:[%s7033_s0 + $0x290] sm:$0xff]   ;;  %v6094_v46 = vld [vmem:[%s7033_s0 + $0x98] sm:$0xff]   ;;  %v6096_v48 = vld [vmem:[%s7033_s0 + $0xa0] sm:$0xff]  }
  0x11   :  { %v6095_v47 = vld [vmem:[%s7033_s0 + $0x298] sm:$0xff]   ;;  %v6097_v49 = vld [vmem:[%s7033_s0 + $0x2a0] sm:$0xff]   ;;  %v6098_v50 = vld [vmem:[%s7033_s0 + $0xa8] sm:$0xff]  }
  0x12   :  { %v6099_v51 = vld [vmem:[%s7033_s0 + $0x2a8] sm:$0xff]   ;;  %v6100_v52 = vld [vmem:[%s7033_s0 + $0xb0] sm:$0xff]   ;;  %v6102_v54 = vld [vmem:[%s7033_s0 + $0xb8] sm:$0xff]  }
  0x13   :  { %5769 = vmatpush3.bf16.msra.mxu0 %v6052_v6  ;;  %6044 = vmatpush3.bf16.msra.mxu1 %v6052_v6  ;;  %v6101_v53 = vld [vmem:[%s7033_s0 + $0x2b0] sm:$0xff]   ;;  %v6103_v55 = vld [vmem:[%s7033_s0 + $0x2b8] sm:$0xff]   ;;  %v6104_v56 = vld [vmem:[%s7033_s0 + $0xc0] sm:$0xff]  }
  0x14   :  { %5770 = vmatprep.subr.bf16.mxu0 %v6053_v7  ;;  %6037 = vmatprep.subr.bf16.mxu1 %v6053_v7  ;;  %v6105_v57 = vld [vmem:[%s7033_s0 + $0x2c0] sm:$0xff]   ;;  %v6106_v58 = vld [vmem:[%s7033_s0 + $0xc8] sm:$0xff]   ;;  %v6108_v60 = vld [vmem:[%s7033_s0 + $0xd0] sm:$0xff]  }
  0x15   :  { %v6107_v59 = vld [vmem:[%s7033_s0 + $0x2c8] sm:$0xff]   ;;  %v6109_v61 = vld [vmem:[%s7033_s0 + $0x2d0] sm:$0xff]   ;;  %v6110_v62 = vld [vmem:[%s7033_s0 + $0xd8] sm:$0xff]  }
  0x16   :  { %v6111_v63 = vld [vmem:[%s7033_s0 + $0x2d8] sm:$0xff]   ;;  %v6112_v0 = vld [vmem:[%s7033_s0 + $0xe0] sm:$0xff]   ;;  %v6114_v2 = vld [vmem:[%s7033_s0 + $0xe8] sm:$0xff]  }
  0x17   :  { %5771 = vmatpush3.bf16.msra.mxu0 %v6053_v7  ;;  %6045 = vmatpush3.bf16.msra.mxu1 %v6053_v7  ;;  %v6113_v1 = vld [vmem:[%s7033_s0 + $0x2e0] sm:$0xff]   ;;  %v6115_v3 = vld [vmem:[%s7033_s0 + $0x2e8] sm:$0xff]   ;;  %v6116_v4 = vld [vmem:[%s7033_s0 + $0xf0] sm:$0xff]  }
  0x18   :  { %5772 = vmatprep.subr.bf16.mxu0 %v6054_v8  ;;  %6038 = vmatprep.subr.bf16.mxu1 %v6054_v8  ;;  %v6117_v5 = vld [vmem:[%s7033_s0 + $0x2f0] sm:$0xff]   ;;  %v6118_v6 = vld [vmem:[%s7033_s0 + $0xf8] sm:$0xff]  }
  0x19   :  { %v6119_v7 = vld [vmem:[%s7033_s0 + $0x2f8] sm:$0xff]  }
  0x1b   :  { %5773 = vmatpush3.bf16.msra.mxu0 %v6054_v8  ;;  %6046 = vmatpush3.bf16.msra.mxu1 %v6054_v8  ;;  %v6120_v8 = vld [vmem:[%s7033_s0 + $0x100] sm:$0xff]  }
  0x1c   :  { %5774 = vmatprep.subr.bf16.mxu0 %v6055_v9  ;;  %6039 = vmatprep.subr.bf16.mxu1 %v6055_v9 }
  0x1f   :  { %5775 = vmatpush3.bf16.msra.mxu0 %v6055_v9  ;;  %6047 = vmatpush3.bf16.msra.mxu1 %v6055_v9  ;;  %v6121_v9 = vld [vmem:[%s7033_s0 + $0x300] sm:$0xff]  }
  0x22   :  { %5777 = vmatmul.mubr.bf16.vlgmr.msra.gmra.mxu0 %v6058_v10  ;;  %5905 = vmatmul.mubr.bf16.vlgmr.msra.gmra.mxu1 %v6059_v11  ;;  %v6122_v10 = vld [vmem:[%s7033_s0 + $0x108] sm:$0xff]  }
  0x23   :  { %5780 = vmatprep.mubr.bf16.mxu0 %v6060_v12  ;;  %5908 = vmatprep.mubr.bf16.mxu1 %v6061_v13  ;;  %v6123_v11 = vld [vmem:[%s7033_s0 + $0x308] sm:$0xff]   ;;  %v6124_v12 = vld [vmem:[%s7033_s0 + $0x110] sm:$0xff]  }
  0x24   :  { %v6125_v13 = vld [vmem:[%s7033_s0 + $0x310] sm:$0xff]  }
  0x2a   :  { %5781 = vmatmul.mubr.bf16.gmra.mxu0 %v6062_v14  ;;  %5909 = vmatmul.mubr.bf16.gmra.mxu1 %v6063_v15  ;;  %v6126_v14 = vld [vmem:[%s7033_s0 + $0x118] sm:$0xff]  }
  0x2b   :  { %5784 = vmatprep.mubr.bf16.mxu0 %v6064_v16  ;;  %5912 = vmatprep.mubr.bf16.mxu1 %v6065_v17  ;;  %v6127_v15 = vld [vmem:[%s7033_s0 + $0x318] sm:$0xff]   ;;  %v6128_v16 = vld [vmem:[%s7033_s0 + $0x120] sm:$0xff]  }
  0x2c   :  { %v6129_v17 = vld [vmem:[%s7033_s0 + $0x320] sm:$0xff]  }
  0x32   :  { %5785 = vmatmul.mubr.bf16.gmra.mxu0 %v6066_v18  ;;  %5913 = vmatmul.mubr.bf16.gmra.mxu1 %v6067_v19  ;;  %v6130_v18 = vld [vmem:[%s7033_s0 + $0x128] sm:$0xff]  }
  0x33   :  { %5788 = vmatprep.mubr.bf16.mxu0 %v6068_v20  ;;  %5916 = vmatprep.mubr.bf16.mxu1 %v6069_v21  ;;  %v6131_v19 = vld [vmem:[%s7033_s0 + $0x328] sm:$0xff]   ;;  %v6132_v20 = vld [vmem:[%s7033_s0 + $0x130] sm:$0xff]  }
  0x34   :  { %v6133_v21 = vld [vmem:[%s7033_s0 + $0x330] sm:$0xff]  }
  0x3a   :  { %5789 = vmatmul.mubr.bf16.gmra.mxu0 %v6070_v22  ;;  %5917 = vmatmul.mubr.bf16.gmra.mxu1 %v6071_v23  ;;  %v6134_v22 = vld [vmem:[%s7033_s0 + $0x138] sm:$0xff]  }
  0x3b   :  { %5792 = vmatprep.mubr.bf16.mxu0 %v6072_v24  ;;  %5920 = vmatprep.mubr.bf16.mxu1 %v6073_v25  ;;  %v6135_v23 = vld [vmem:[%s7033_s0 + $0x338] sm:$0xff]   ;;  %v6136_v24 = vld [vmem:[%s7033_s0 + $0x140] sm:$0xff]  }
  0x3c   :  { %v6137_v25 = vld [vmem:[%s7033_s0 + $0x340] sm:$0xff]  }
  0x42   :  { %5793 = vmatmul.mubr.bf16.gmra.mxu0 %v6074_v26  ;;  %5921 = vmatmul.mubr.bf16.gmra.mxu1 %v6075_v27  ;;  %v6138_v26 = vld [vmem:[%s7033_s0 + $0x148] sm:$0xff]  }
  0x43   :  { %5796 = vmatprep.mubr.bf16.mxu0 %v6076_v28  ;;  %5924 = vmatprep.mubr.bf16.mxu1 %v6077_v29  ;;  %v6139_v27 = vld [vmem:[%s7033_s0 + $0x348] sm:$0xff]   ;;  %v6140_v28 = vld [vmem:[%s7033_s0 + $0x150] sm:$0xff]  }
  0x44   :  { %v6141_v29 = vld [vmem:[%s7033_s0 + $0x350] sm:$0xff]  }
  0x4a   :  { %5797 = vmatmul.mubr.bf16.gmra.mxu0 %v6078_v30  ;;  %5925 = vmatmul.mubr.bf16.gmra.mxu1 %v6079_v31  ;;  %v6142_v30 = vld [vmem:[%s7033_s0 + $0x158] sm:$0xff]  }
  0x4b   :  { %5800 = vmatprep.mubr.bf16.mxu0 %v6080_v32  ;;  %5928 = vmatprep.mubr.bf16.mxu1 %v6081_v33  ;;  %v6143_v31 = vld [vmem:[%s7033_s0 + $0x358] sm:$0xff]   ;;  %v6144_v32 = vld [vmem:[%s7033_s0 + $0x160] sm:$0xff]  }
  0x4c   :  { %v6145_v33 = vld [vmem:[%s7033_s0 + $0x360] sm:$0xff]  }
  0x52   :  { %5801 = vmatmul.mubr.bf16.gmra.mxu0 %v6082_v34  ;;  %5929 = vmatmul.mubr.bf16.gmra.mxu1 %v6083_v35  ;;  %v6146_v34 = vld [vmem:[%s7033_s0 + $0x168] sm:$0xff]  }
  0x53   :  { %5804 = vmatprep.mubr.bf16.mxu0 %v6084_v36  ;;  %5932 = vmatprep.mubr.bf16.mxu1 %v6085_v37  ;;  %v6147_v35 = vld [vmem:[%s7033_s0 + $0x368] sm:$0xff]   ;;  %v6148_v36 = vld [vmem:[%s7033_s0 + $0x170] sm:$0xff]  }
  0x54   :  { %v6149_v37 = vld [vmem:[%s7033_s0 + $0x370] sm:$0xff]  }
  0x5a   :  { %5805 = vmatmul.mubr.bf16.gmra.mxu0 %v6086_v38  ;;  %5933 = vmatmul.mubr.bf16.gmra.mxu1 %v6087_v39  ;;  %v6150_v38 = vld [vmem:[%s7033_s0 + $0x178] sm:$0xff]  }
  0x5b   :  { %5808 = vmatprep.mubr.bf16.mxu0 %v6088_v40  ;;  %5936 = vmatprep.mubr.bf16.mxu1 %v6089_v41  ;;  %v6151_v39 = vld [vmem:[%s7033_s0 + $0x378] sm:$0xff]   ;;  %v6152_v40 = vld [vmem:[%s7033_s0 + $0x180] sm:$0xff]  }
  0x5c   :  { %v6153_v41 = vld [vmem:[%s7033_s0 + $0x380] sm:$0xff]  }
  0x62   :  { %5809 = vmatmul.mubr.bf16.gmra.mxu0 %v6090_v42  ;;  %5937 = vmatmul.mubr.bf16.gmra.mxu1 %v6091_v43  ;;  %v6154_v42 = vld [vmem:[%s7033_s0 + $0x188] sm:$0xff]  }
  0x63   :  { %5812 = vmatprep.mubr.bf16.mxu0 %v6092_v44  ;;  %5940 = vmatprep.mubr.bf16.mxu1 %v6093_v45  ;;  %v6155_v43 = vld [vmem:[%s7033_s0 + $0x388] sm:$0xff]   ;;  %v6156_v44 = vld [vmem:[%s7033_s0 + $0x190] sm:$0xff]  }
  0x64   :  { %v6157_v45 = vld [vmem:[%s7033_s0 + $0x390] sm:$0xff]  }
  0x6a   :  { %5813 = vmatmul.mubr.bf16.gmra.mxu0 %v6094_v46  ;;  %5941 = vmatmul.mubr.bf16.gmra.mxu1 %v6095_v47 }
  0x6b   :  { %5816 = vmatprep.mubr.bf16.mxu0 %v6096_v48  ;;  %5944 = vmatprep.mubr.bf16.mxu1 %v6097_v49 }
  0x72   :  { %5817 = vmatmul.mubr.bf16.gmra.mxu0 %v6098_v50  ;;  %5945 = vmatmul.mubr.bf16.gmra.mxu1 %v6099_v51 }
  0x73   :  { %5820 = vmatprep.mubr.bf16.mxu0 %v6100_v52  ;;  %5948 = vmatprep.mubr.bf16.mxu1 %v6101_v53 }
  0x7a   :  { %5821 = vmatmul.mubr.bf16.gmra.mxu0 %v6102_v54  ;;  %5949 = vmatmul.mubr.bf16.gmra.mxu1 %v6103_v55 }
  0x7b   :  { %5824 = vmatprep.mubr.bf16.mxu0 %v6104_v56  ;;  %5952 = vmatprep.mubr.bf16.mxu1 %v6105_v57  ;;  %v6158_v56 = vld [vmem:[%s7033_s0 + $0x198] sm:$0xff]  }
  0x7c   :  { %v6159_v57 = vld [vmem:[%s7033_s0 + $0x398] sm:$0xff]  }
  0x82   :  { %5825 = vmatmul.mubr.bf16.gmra.mxu0 %v6106_v58  ;;  %5953 = vmatmul.mubr.bf16.gmra.mxu1 %v6107_v59  ;;  %v6160_v58 = vld [vmem:[%s7033_s0 + $0x1a0] sm:$0xff]  }
  0x83   :  { %5828 = vmatprep.mubr.bf16.mxu0 %v6108_v60  ;;  %5956 = vmatprep.mubr.bf16.mxu1 %v6109_v61  ;;  %v6161_v60 = vld [vmem:[%s7033_s0 + $0x3a0] sm:$0xff]  }
  0x8a   :  { %5829 = vmatmul.mubr.bf16.gmra.mxu0 %v6110_v62  ;;  %5957 = vmatmul.mubr.bf16.gmra.mxu1 %v6111_v63 }
  0x8b   :  { %5832 = vmatprep.mubr.bf16.mxu0 %v6112_v0  ;;  %5960 = vmatprep.mubr.bf16.mxu1 %v6113_v1 }
  0x92   :  { %5833 = vmatmul.mubr.bf16.gmra.mxu0 %v6114_v2  ;;  %5961 = vmatmul.mubr.bf16.gmra.mxu1 %v6115_v3 }
  0x93   :  { %5836 = vmatprep.mubr.bf16.mxu0 %v6116_v4  ;;  %5964 = vmatprep.mubr.bf16.mxu1 %v6117_v5 }
  0x9a   :  { %5837 = vmatmul.mubr.bf16.gmra.mxu0 %v6118_v6  ;;  %5965 = vmatmul.mubr.bf16.gmra.mxu1 %v6119_v7 }
  0x9b   :  { %5840 = vmatprep.mubr.bf16.mxu0 %v6120_v8  ;;  %5968 = vmatprep.mubr.bf16.mxu1 %v6121_v9 }
  0xa2   :  { %5841 = vmatmul.mubr.bf16.gmra.mxu0 %v6122_v10  ;;  %5969 = vmatmul.mubr.bf16.gmra.mxu1 %v6123_v11 }
  0xa3   :  { %5844 = vmatprep.mubr.bf16.mxu0 %v6124_v12  ;;  %5972 = vmatprep.mubr.bf16.mxu1 %v6125_v13 }
  0xaa   :  { %5845 = vmatmul.mubr.bf16.gmra.mxu0 %v6126_v14  ;;  %5973 = vmatmul.mubr.bf16.gmra.mxu1 %v6127_v15 }
  0xab   :  { %5848 = vmatprep.mubr.bf16.mxu0 %v6128_v16  ;;  %5976 = vmatprep.mubr.bf16.mxu1 %v6129_v17 }
  0xb2   :  { %5849 = vmatmul.mubr.bf16.gmra.mxu0 %v6130_v18  ;;  %5977 = vmatmul.mubr.bf16.gmra.mxu1 %v6131_v19 }
  0xb3   :  { %5852 = vmatprep.mubr.bf16.mxu0 %v6132_v20  ;;  %5980 = vmatprep.mubr.bf16.mxu1 %v6133_v21 }
  0xba   :  { %5853 = vmatmul.mubr.bf16.gmra.mxu0 %v6134_v22  ;;  %5981 = vmatmul.mubr.bf16.gmra.mxu1 %v6135_v23 }
  0xbb   :  { %5856 = vmatprep.mubr.bf16.mxu0 %v6136_v24  ;;  %5984 = vmatprep.mubr.bf16.mxu1 %v6137_v25  ;;  %v6162_v24 = vld [vmem:[%s7033_s0 + $0x1a8] sm:$0xff]  }
  0xbc   :  { %v6163_v25 = vld [vmem:[%s7033_s0 + $0x3a8] sm:$0xff]  }
  0xc2   :  { %5857 = vmatmul.mubr.bf16.gmra.mxu0 %v6138_v26  ;;  %5985 = vmatmul.mubr.bf16.gmra.mxu1 %v6139_v27  ;;  %v6164_v26 = vld [vmem:[%s7033_s0 + $0x1b0] sm:$0xff]  }
  0xc3   :  { %5860 = vmatprep.mubr.bf16.mxu0 %v6140_v28  ;;  %5988 = vmatprep.mubr.bf16.mxu1 %v6141_v29  ;;  %v6165_v28 = vld [vmem:[%s7033_s0 + $0x3b0] sm:$0xff]  }
  0xca   :  { %5861 = vmatmul.mubr.bf16.gmra.mxu0 %v6142_v30  ;;  %5989 = vmatmul.mubr.bf16.gmra.mxu1 %v6143_v31 }
  0xcb   :  { %5864 = vmatprep.mubr.bf16.mxu0 %v6144_v32  ;;  %5992 = vmatprep.mubr.bf16.mxu1 %v6145_v33 }
  0xd2   :  { %5865 = vmatmul.mubr.bf16.gmra.mxu0 %v6146_v34  ;;  %5993 = vmatmul.mubr.bf16.gmra.mxu1 %v6147_v35 }
  0xd3   :  { %5868 = vmatprep.mubr.bf16.mxu0 %v6148_v36  ;;  %5996 = vmatprep.mubr.bf16.mxu1 %v6149_v37 }
  0xda   :  { %5869 = vmatmul.mubr.bf16.gmra.mxu0 %v6150_v38  ;;  %5997 = vmatmul.mubr.bf16.gmra.mxu1 %v6151_v39 }
  0xdb   :  { %5872 = vmatprep.mubr.bf16.mxu0 %v6152_v40  ;;  %6000 = vmatprep.mubr.bf16.mxu1 %v6153_v41 }
  0xe2   :  { %v5778_v46 = vpop.f32.mrf.mxu0  ;;  %5873 = vmatmul.mubr.bf16.gmra.mxu0 %v6154_v42  ;;  %v5906_v47 = vpop.f32.mrf.mxu1  ;;  %6001 = vmatmul.mubr.bf16.gmra.mxu1 %v6155_v43 }
  0xe3   :  { %vm2159_vm0 = vcmp.gt.f32.partialorder %v5778_v46, 0.0  ;;  %v2415_v48 = vmul.f32 0.2, %v5778_v46  ;;  %5876 = vmatprep.mubr.bf16.mxu0 %v6156_v44  ;;  %6004 = vmatprep.mubr.bf16.mxu1 %v6157_v45  ;;  %v2543_v49 = vmul.f32 0.2, %v5906_v47  ;;  %vm2287_vm1 = vcmp.gt.f32.partialorder %v5906_v47, 0.0 }
  0xe4   :  { %v1134_v50 = vpop.f32.mrf.mxu0  ;;  %v1646_v51 = vpop.f32.mrf.mxu1 }
  0xe5   :  { %v2671_v52 = vsel %vm2159_vm0, %v5778_v46, %v2415_v48  ;;  %v2413_v53 = vmul.f32 0.2, %v1134_v50  ;;  %vm2157_vm2 = vcmp.gt.f32.partialorder %v1134_v50, 0.0  ;;  %v2799_v61 = vsel %vm2287_vm1, %v5906_v47, %v2543_v49 }
  0xe6   :  { %v5779_v54 = vpop.f32.mrf.mxu0  ;;  %v5907_v55 = vpop.f32.mrf.mxu1  ;;  %vm2285_vm5 = vcmp.gt.f32.partialorder %v1646_v51, 0.0  ;;  %v2541_v62 = vmul.f32 0.2, %v1646_v51 }
  0xe7   :  { %vm2160_vm3 = vcmp.gt.f32.partialorder %v5779_v54, 0.0  ;;  %v2416_v59 = vmul.f32 0.2, %v5779_v54  ;;  %vm2288_vm4 = vcmp.gt.f32.partialorder %v5907_v55, 0.0  ;;  %v2544_v63 = vmul.f32 0.2, %v5907_v55 }
  0xe8   :  { %v1137_v0 = vpop.f32.mrf.mxu0  ;;  %v1649_v1 = vpop.f32.mrf.mxu1  ;;  %v2669_v4 = vsel %vm2157_vm2, %v1134_v50, %v2413_v53  ;;  %v2797_v13 = vsel %vm2285_vm5, %v1646_v51, %v2541_v62 }
  0xe9   :  { %v2672_v2 = vsel %vm2160_vm3, %v5779_v54, %v2416_v59  ;;  %vm2158_vm6 = vcmp.gt.f32.partialorder %v1137_v0, 0.0  ;;  %v2414_v3 = vmul.f32 0.2, %v1137_v0  ;;  %vm2286_vm7 = vcmp.gt.f32.partialorder %v1649_v1, 0.0 }
  0xea   :  { %v4865_v5 = vpack.c.bf16 %v2672_v2, %v2671_v52  ;;  %v2800_v6 = vsel %vm2288_vm4, %v5907_v55, %v2544_v63  ;;  %v2542_v7 = vmul.f32 0.2, %v1649_v1  ;;  %v5782_v8 = vpop.f32.mrf.mxu0  ;;  %5877 = vmatmul.mubr.bf16.gmra.mxu0 %v6158_v56  ;;  %v5910_v9 = vpop.f32.mrf.mxu1  ;;  %6005 = vmatmul.mubr.bf16.gmra.mxu1 %v6159_v57  ;;  %v6166_v56 = vld [vmem:[%s7033_s0 + $0x1b8] sm:$0xff]  }
  0xeb   :  { %v5185_v10 = vpack.c.bf16 %v2800_v6, %v2799_v61  ;;  %v2670_v11 = vsel %vm2158_vm6, %v1137_v0, %v2414_v3  ;;  %vm2163_vm8 = vcmp.gt.f32.partialorder %v5782_v8, 0.0  ;;  %v2419_v12 = vmul.f32 0.2, %v5782_v8  ;;  %5880 = vmatprep.mubr.bf16.mxu0 %v6160_v58  ;;  %6008 = vmatprep.mubr.bf16.mxu1 %v6161_v60  ;;  %v6167_v57 = vld [vmem:[%s7033_s0 + $0x3b8] sm:$0xff]   ;;  %v6168_v58 = vld [vmem:[%s7033_s0 + $0x1c0] sm:$0xff]  }
  0xec   :  { %5497 = vst [vmem:[%s7034_s2 + $0x8] sm:$0xff] %v4865_v5   ;;  %v4860_v14 = vpack.c.bf16 %v2670_v11, %v2669_v4  ;;  %v2798_v15 = vsel %vm2286_vm7, %v1649_v1, %v2542_v7  ;;  %v2547_v16 = vmul.f32 0.2, %v5910_v9  ;;  %v1150_v17 = vpop.f32.mrf.mxu0  ;;  %v1662_v18 = vpop.f32.mrf.mxu1  ;;  %vm2291_vm9 = vcmp.gt.f32.partialorder %v5910_v9, 0.0  ;;  %v6169_v60 = vld [vmem:[%s7033_s0 + $0x3c0] sm:$0xff]  }
  0xed   :  { %5561 = vst [vmem:[%s7034_s2 + $0x208] sm:$0xff] %v5185_v10   ;;  %v5180_v19 = vpack.c.bf16 %v2798_v15, %v2797_v13  ;;  %v2675_v20 = vsel %vm2163_vm8, %v5782_v8, %v2419_v12  ;;  %v2417_v21 = vmul.f32 0.2, %v1150_v17  ;;  %vm2161_vm10 = vcmp.gt.f32.partialorder %v1150_v17, 0.0 }
  0xee   :  { %4861 = vst [vmem:[%s7034_s2] sm:$0xff] %v4860_v14   ;;  %v5783_v22 = vpop.f32.mrf.mxu0  ;;  %v5911_v23 = vpop.f32.mrf.mxu1  ;;  %v2803_v29 = vsel %vm2291_vm9, %v5910_v9, %v2547_v16  ;;  %vm2289_vm13 = vcmp.gt.f32.partialorder %v1662_v18, 0.0  ;;  %v2545_v30 = vmul.f32 0.2, %v1662_v18 }
  0xef   :  { %5560 = vst [vmem:[%s7034_s2 + $0x200] sm:$0xff] %v5180_v19   ;;  %vm2164_vm11 = vcmp.gt.f32.partialorder %v5783_v22, 0.0  ;;  %v2420_v27 = vmul.f32 0.2, %v5783_v22  ;;  %vm2292_vm12 = vcmp.gt.f32.partialorder %v5911_v23, 0.0  ;;  %v2673_v36 = vsel %vm2161_vm10, %v1150_v17, %v2417_v21 }
  0xf0   :  { %v2548_v31 = vmul.f32 0.2, %v5911_v23  ;;  %v1153_v32 = vpop.f32.mrf.mxu0  ;;  %v1665_v33 = vpop.f32.mrf.mxu1  ;;  %v2801_v45 = vsel %vm2289_vm13, %v1662_v18, %v2545_v30 }
  0xf1   :  { %v2676_v34 = vsel %vm2164_vm11, %v5783_v22, %v2420_v27  ;;  %vm2162_vm14 = vcmp.gt.f32.partialorder %v1153_v32, 0.0  ;;  %v2418_v35 = vmul.f32 0.2, %v1153_v32  ;;  %vm2290_vm15 = vcmp.gt.f32.partialorder %v1665_v33, 0.0 }
  0xf2   :  { %v4875_v37 = vpack.c.bf16 %v2676_v34, %v2675_v20  ;;  %v2804_v38 = vsel %vm2292_vm12, %v5911_v23, %v2548_v31  ;;  %v2546_v39 = vmul.f32 0.2, %v1665_v33  ;;  %v5786_v40 = vpop.f32.mrf.mxu0  ;;  %5881 = vmatmul.mubr.bf16.gmra.mxu0 %v6162_v24  ;;  %v5914_v41 = vpop.f32.mrf.mxu1  ;;  %6009 = vmatmul.mubr.bf16.gmra.mxu1 %v6163_v25  ;;  %v6170_v24 = vld [vmem:[%s7033_s0 + $0x1c8] sm:$0xff]  }
  0xf3   :  { %v5195_v42 = vpack.c.bf16 %v2804_v38, %v2803_v29  ;;  %v2674_v43 = vsel %vm2162_vm14, %v1153_v32, %v2418_v35  ;;  %vm2167_vm0 = vcmp.gt.f32.partialorder %v5786_v40, 0.0  ;;  %v2423_v44 = vmul.f32 0.2, %v5786_v40  ;;  %5884 = vmatprep.mubr.bf16.mxu0 %v6164_v26  ;;  %6012 = vmatprep.mubr.bf16.mxu1 %v6165_v28  ;;  %v6171_v25 = vld [vmem:[%s7033_s0 + $0x3c8] sm:$0xff]   ;;  %v6172_v26 = vld [vmem:[%s7033_s0 + $0x1d0] sm:$0xff]  }
  0xf4   :  { %5499 = vst [vmem:[%s7034_s2 + $0x18] sm:$0xff] %v4875_v37   ;;  %v4870_v46 = vpack.c.bf16 %v2674_v43, %v2673_v36  ;;  %v2802_v47 = vsel %vm2290_vm15, %v1665_v33, %v2546_v39  ;;  %v2551_v48 = vmul.f32 0.2, %v5914_v41  ;;  %v1166_v49 = vpop.f32.mrf.mxu0  ;;  %v1678_v50 = vpop.f32.mrf.mxu1  ;;  %vm2295_vm1 = vcmp.gt.f32.partialorder %v5914_v41, 0.0  ;;  %v6173_v28 = vld [vmem:[%s7033_s0 + $0x3d0] sm:$0xff]  }
  0xf5   :  { %5563 = vst [vmem:[%s7034_s2 + $0x218] sm:$0xff] %v5195_v42   ;;  %v5190_v51 = vpack.c.bf16 %v2802_v47, %v2801_v45  ;;  %v2679_v52 = vsel %vm2167_vm0, %v5786_v40, %v2423_v44  ;;  %v2421_v53 = vmul.f32 0.2, %v1166_v49  ;;  %vm2165_vm2 = vcmp.gt.f32.partialorder %v1166_v49, 0.0 }
  0xf6   :  { %5498 = vst [vmem:[%s7034_s2 + $0x10] sm:$0xff] %v4870_v46   ;;  %v5787_v54 = vpop.f32.mrf.mxu0  ;;  %v5915_v55 = vpop.f32.mrf.mxu1  ;;  %v2807_v61 = vsel %vm2295_vm1, %v5914_v41, %v2551_v48  ;;  %vm2293_vm5 = vcmp.gt.f32.partialorder %v1678_v50, 0.0  ;;  %v2549_v62 = vmul.f32 0.2, %v1678_v50 }
  0xf7   :  { %5562 = vst [vmem:[%s7034_s2 + $0x210] sm:$0xff] %v5190_v51   ;;  %vm2168_vm3 = vcmp.gt.f32.partialorder %v5787_v54, 0.0  ;;  %v2424_v59 = vmul.f32 0.2, %v5787_v54  ;;  %vm2296_vm4 = vcmp.gt.f32.partialorder %v5915_v55, 0.0  ;;  %v2677_v4 = vsel %vm2165_vm2, %v1166_v49, %v2421_v53 }
  0xf8   :  { %v2552_v63 = vmul.f32 0.2, %v5915_v55  ;;  %v1169_v0 = vpop.f32.mrf.mxu0  ;;  %v1681_v1 = vpop.f32.mrf.mxu1  ;;  %v2805_v13 = vsel %vm2293_vm5, %v1678_v50, %v2549_v62 }
  0xf9   :  { %v2680_v2 = vsel %vm2168_vm3, %v5787_v54, %v2424_v59  ;;  %vm2166_vm6 = vcmp.gt.f32.partialorder %v1169_v0, 0.0  ;;  %v2422_v3 = vmul.f32 0.2, %v1169_v0  ;;  %vm2294_vm7 = vcmp.gt.f32.partialorder %v1681_v1, 0.0 }
  0xfa   :  { %v4885_v5 = vpack.c.bf16 %v2680_v2, %v2679_v52  ;;  %v2808_v6 = vsel %vm2296_vm4, %v5915_v55, %v2552_v63  ;;  %v2550_v7 = vmul.f32 0.2, %v1681_v1  ;;  %v5790_v8 = vpop.f32.mrf.mxu0  ;;  %5885 = vmatmul.mubr.bf16.gmra.mxu0 %v6166_v56  ;;  %v5918_v9 = vpop.f32.mrf.mxu1  ;;  %6013 = vmatmul.mubr.bf16.gmra.mxu1 %v6167_v57  ;;  %v6174_v56 = vld [vmem:[%s7033_s0 + $0x1d8] sm:$0xff]  }
  0xfb   :  { %v5205_v10 = vpack.c.bf16 %v2808_v6, %v2807_v61  ;;  %v2678_v11 = vsel %vm2166_vm6, %v1169_v0, %v2422_v3  ;;  %vm2171_vm8 = vcmp.gt.f32.partialorder %v5790_v8, 0.0  ;;  %v2427_v12 = vmul.f32 0.2, %v5790_v8  ;;  %5888 = vmatprep.mubr.bf16.mxu0 %v6168_v58  ;;  %6016 = vmatprep.mubr.bf16.mxu1 %v6169_v60  ;;  %v6175_v57 = vld [vmem:[%s7033_s0 + $0x3d8] sm:$0xff]   ;;  %v6176_v58 = vld [vmem:[%s7033_s0 + $0x1e0] sm:$0xff]  }
  0xfc   :  { %5501 = vst [vmem:[%s7034_s2 + $0x28] sm:$0xff] %v4885_v5   ;;  %v4880_v14 = vpack.c.bf16 %v2678_v11, %v2677_v4  ;;  %v2806_v15 = vsel %vm2294_vm7, %v1681_v1, %v2550_v7  ;;  %v2555_v16 = vmul.f32 0.2, %v5918_v9  ;;  %v1182_v17 = vpop.f32.mrf.mxu0  ;;  %v1694_v18 = vpop.f32.mrf.mxu1  ;;  %vm2299_vm9 = vcmp.gt.f32.partialorder %v5918_v9, 0.0  ;;  %v6177_v60 = vld [vmem:[%s7033_s0 + $0x3e0] sm:$0xff]  }
  0xfd   :  { %5565 = vst [vmem:[%s7034_s2 + $0x228] sm:$0xff] %v5205_v10   ;;  %v5200_v19 = vpack.c.bf16 %v2806_v15, %v2805_v13  ;;  %v2683_v20 = vsel %vm2171_vm8, %v5790_v8, %v2427_v12  ;;  %v2425_v21 = vmul.f32 0.2, %v1182_v17  ;;  %vm2169_vm10 = vcmp.gt.f32.partialorder %v1182_v17, 0.0 }
  0xfe   :  { %5500 = vst [vmem:[%s7034_s2 + $0x20] sm:$0xff] %v4880_v14   ;;  %v5791_v22 = vpop.f32.mrf.mxu0  ;;  %v5919_v23 = vpop.f32.mrf.mxu1  ;;  %v2811_v29 = vsel %vm2299_vm9, %v5918_v9, %v2555_v16  ;;  %vm2297_vm13 = vcmp.gt.f32.partialorder %v1694_v18, 0.0  ;;  %v2553_v30 = vmul.f32 0.2, %v1694_v18 }
  0xff   :  { %5564 = vst [vmem:[%s7034_s2 + $0x220] sm:$0xff] %v5200_v19   ;;  %vm2172_vm11 = vcmp.gt.f32.partialorder %v5791_v22, 0.0  ;;  %v2428_v27 = vmul.f32 0.2, %v5791_v22  ;;  %vm2300_vm12 = vcmp.gt.f32.partialorder %v5919_v23, 0.0  ;;  %v2681_v36 = vsel %vm2169_vm10, %v1182_v17, %v2425_v21 }
 0x100   :  { %v2556_v31 = vmul.f32 0.2, %v5919_v23  ;;  %v1185_v32 = vpop.f32.mrf.mxu0  ;;  %v1697_v33 = vpop.f32.mrf.mxu1  ;;  %v2809_v45 = vsel %vm2297_vm13, %v1694_v18, %v2553_v30 }
 0x101   :  { %v2684_v34 = vsel %vm2172_vm11, %v5791_v22, %v2428_v27  ;;  %vm2170_vm14 = vcmp.gt.f32.partialorder %v1185_v32, 0.0  ;;  %v2426_v35 = vmul.f32 0.2, %v1185_v32  ;;  %vm2298_vm15 = vcmp.gt.f32.partialorder %v1697_v33, 0.0 }
 0x102   :  { %v4895_v37 = vpack.c.bf16 %v2684_v34, %v2683_v20  ;;  %v2812_v38 = vsel %vm2300_vm12, %v5919_v23, %v2556_v31  ;;  %v2554_v39 = vmul.f32 0.2, %v1697_v33  ;;  %v5794_v40 = vpop.f32.mrf.mxu0  ;;  %5889 = vmatmul.mubr.bf16.gmra.mxu0 %v6170_v24  ;;  %v5922_v41 = vpop.f32.mrf.mxu1  ;;  %6017 = vmatmul.mubr.bf16.gmra.mxu1 %v6171_v25  ;;  %v6178_v24 = vld [vmem:[%s7033_s0 + $0x1e8] sm:$0xff]  }
 0x103   :  { %v5215_v42 = vpack.c.bf16 %v2812_v38, %v2811_v29  ;;  %v2682_v43 = vsel %vm2170_vm14, %v1185_v32, %v2426_v35  ;;  %vm2175_vm0 = vcmp.gt.f32.partialorder %v5794_v40, 0.0  ;;  %v2431_v44 = vmul.f32 0.2, %v5794_v40  ;;  %5892 = vmatprep.mubr.bf16.mxu0 %v6172_v26  ;;  %6020 = vmatprep.mubr.bf16.mxu1 %v6173_v28  ;;  %v6179_v25 = vld [vmem:[%s7033_s0 + $0x3e8] sm:$0xff]   ;;  %v6180_v26 = vld [vmem:[%s7033_s0 + $0x1f0] sm:$0xff]  }
 0x104   :  { %5503 = vst [vmem:[%s7034_s2 + $0x38] sm:$0xff] %v4895_v37   ;;  %v4890_v46 = vpack.c.bf16 %v2682_v43, %v2681_v36  ;;  %v2810_v47 = vsel %vm2298_vm15, %v1697_v33, %v2554_v39  ;;  %v2559_v48 = vmul.f32 0.2, %v5922_v41  ;;  %v1198_v49 = vpop.f32.mrf.mxu0  ;;  %v1710_v50 = vpop.f32.mrf.mxu1  ;;  %vm2303_vm1 = vcmp.gt.f32.partialorder %v5922_v41, 0.0  ;;  %v6181_v28 = vld [vmem:[%s7033_s0 + $0x3f0] sm:$0xff]  }
 0x105   :  { %5567 = vst [vmem:[%s7034_s2 + $0x238] sm:$0xff] %v5215_v42   ;;  %v5210_v51 = vpack.c.bf16 %v2810_v47, %v2809_v45  ;;  %v2687_v52 = vsel %vm2175_vm0, %v5794_v40, %v2431_v44  ;;  %v2429_v53 = vmul.f32 0.2, %v1198_v49  ;;  %vm2173_vm2 = vcmp.gt.f32.partialorder %v1198_v49, 0.0 }
 0x106   :  { %5502 = vst [vmem:[%s7034_s2 + $0x30] sm:$0xff] %v4890_v46   ;;  %v5795_v54 = vpop.f32.mrf.mxu0  ;;  %v5923_v55 = vpop.f32.mrf.mxu1  ;;  %v2815_v61 = vsel %vm2303_vm1, %v5922_v41, %v2559_v48  ;;  %vm2301_vm5 = vcmp.gt.f32.partialorder %v1710_v50, 0.0  ;;  %v2557_v62 = vmul.f32 0.2, %v1710_v50 }
 0x107   :  { %5566 = vst [vmem:[%s7034_s2 + $0x230] sm:$0xff] %v5210_v51   ;;  %vm2176_vm3 = vcmp.gt.f32.partialorder %v5795_v54, 0.0  ;;  %v2432_v59 = vmul.f32 0.2, %v5795_v54  ;;  %vm2304_vm4 = vcmp.gt.f32.partialorder %v5923_v55, 0.0  ;;  %v2685_v4 = vsel %vm2173_vm2, %v1198_v49, %v2429_v53 }
 0x108   :  { %v2560_v63 = vmul.f32 0.2, %v5923_v55  ;;  %v1201_v0 = vpop.f32.mrf.mxu0  ;;  %v1713_v1 = vpop.f32.mrf.mxu1  ;;  %v2813_v13 = vsel %vm2301_vm5, %v1710_v50, %v2557_v62 }
 0x109   :  { %v2688_v2 = vsel %vm2176_vm3, %v5795_v54, %v2432_v59  ;;  %vm2174_vm6 = vcmp.gt.f32.partialorder %v1201_v0, 0.0  ;;  %v2430_v3 = vmul.f32 0.2, %v1201_v0  ;;  %vm2302_vm7 = vcmp.gt.f32.partialorder %v1713_v1, 0.0 }
 0x10a   :  { %v4905_v5 = vpack.c.bf16 %v2688_v2, %v2687_v52  ;;  %v2816_v6 = vsel %vm2304_vm4, %v5923_v55, %v2560_v63  ;;  %v2558_v7 = vmul.f32 0.2, %v1713_v1  ;;  %v5798_v8 = vpop.f32.mrf.mxu0  ;;  %5893 = vmatmul.mubr.bf16.gmra.mxu0 %v6174_v56  ;;  %v5926_v9 = vpop.f32.mrf.mxu1  ;;  %6021 = vmatmul.mubr.bf16.gmra.mxu1 %v6175_v57  ;;  %v6182_v56 = vld [vmem:[%s7033_s0 + $0x1f8] sm:$0xff]  }
 0x10b   :  { %v5225_v10 = vpack.c.bf16 %v2816_v6, %v2815_v61  ;;  %v2686_v11 = vsel %vm2174_vm6, %v1201_v0, %v2430_v3  ;;  %vm2179_vm8 = vcmp.gt.f32.partialorder %v5798_v8, 0.0  ;;  %v2435_v12 = vmul.f32 0.2, %v5798_v8  ;;  %5896 = vmatprep.mubr.bf16.mxu0 %v6176_v58  ;;  %6024 = vmatprep.mubr.bf16.mxu1 %v6177_v60  ;;  %v6183_v57 = vld [vmem:[%s7033_s0 + $0x3f8] sm:$0xff]  }
 0x10c   :  { %5505 = vst [vmem:[%s7034_s2 + $0x48] sm:$0xff] %v4905_v5   ;;  %v4900_v14 = vpack.c.bf16 %v2686_v11, %v2685_v4  ;;  %v2814_v15 = vsel %vm2302_vm7, %v1713_v1, %v2558_v7  ;;  %v2563_v16 = vmul.f32 0.2, %v5926_v9  ;;  %v1214_v17 = vpop.f32.mrf.mxu0  ;;  %v1726_v18 = vpop.f32.mrf.mxu1  ;;  %vm2307_vm9 = vcmp.gt.f32.partialorder %v5926_v9, 0.0 }
 0x10d   :  { %5569 = vst [vmem:[%s7034_s2 + $0x248] sm:$0xff] %v5225_v10   ;;  %v5220_v19 = vpack.c.bf16 %v2814_v15, %v2813_v13  ;;  %v2691_v20 = vsel %vm2179_vm8, %v5798_v8, %v2435_v12  ;;  %v2433_v21 = vmul.f32 0.2, %v1214_v17  ;;  %vm2177_vm10 = vcmp.gt.f32.partialorder %v1214_v17, 0.0 }
 0x10e   :  { %5504 = vst [vmem:[%s7034_s2 + $0x40] sm:$0xff] %v4900_v14   ;;  %v5799_v22 = vpop.f32.mrf.mxu0  ;;  %v5927_v23 = vpop.f32.mrf.mxu1  ;;  %v2819_v29 = vsel %vm2307_vm9, %v5926_v9, %v2563_v16  ;;  %vm2305_vm13 = vcmp.gt.f32.partialorder %v1726_v18, 0.0  ;;  %v2561_v30 = vmul.f32 0.2, %v1726_v18 }
 0x10f   :  { %5568 = vst [vmem:[%s7034_s2 + $0x240] sm:$0xff] %v5220_v19   ;;  %vm2180_vm11 = vcmp.gt.f32.partialorder %v5799_v22, 0.0  ;;  %v2436_v27 = vmul.f32 0.2, %v5799_v22  ;;  %vm2308_vm12 = vcmp.gt.f32.partialorder %v5927_v23, 0.0  ;;  %v2689_v36 = vsel %vm2177_vm10, %v1214_v17, %v2433_v21 }
 0x110   :  { %v2564_v31 = vmul.f32 0.2, %v5927_v23  ;;  %v1217_v32 = vpop.f32.mrf.mxu0  ;;  %v1729_v33 = vpop.f32.mrf.mxu1  ;;  %v2817_v45 = vsel %vm2305_vm13, %v1726_v18, %v2561_v30 }
 0x111   :  { %v2692_v34 = vsel %vm2180_vm11, %v5799_v22, %v2436_v27  ;;  %vm2178_vm14 = vcmp.gt.f32.partialorder %v1217_v32, 0.0  ;;  %v2434_v35 = vmul.f32 0.2, %v1217_v32  ;;  %vm2306_vm15 = vcmp.gt.f32.partialorder %v1729_v33, 0.0 }
 0x112   :  { %v4915_v37 = vpack.c.bf16 %v2692_v34, %v2691_v20  ;;  %v2820_v38 = vsel %vm2308_vm12, %v5927_v23, %v2564_v31  ;;  %v2562_v39 = vmul.f32 0.2, %v1729_v33  ;;  %v5802_v40 = vpop.f32.mrf.mxu0  ;;  %5897 = vmatmul.mubr.bf16.gmra.mxu0 %v6178_v24  ;;  %v5930_v41 = vpop.f32.mrf.mxu1  ;;  %6025 = vmatmul.mubr.bf16.gmra.mxu1 %v6179_v25 }
 0x113   :  { %v5235_v42 = vpack.c.bf16 %v2820_v38, %v2819_v29  ;;  %v2690_v43 = vsel %vm2178_vm14, %v1217_v32, %v2434_v35  ;;  %vm2183_vm0 = vcmp.gt.f32.partialorder %v5802_v40, 0.0  ;;  %v2439_v44 = vmul.f32 0.2, %v5802_v40  ;;  %5900 = vmatprep.mubr.bf16.mxu0 %v6180_v26  ;;  %6028 = vmatprep.mubr.bf16.mxu1 %v6181_v28 }
 0x114   :  { %5507 = vst [vmem:[%s7034_s2 + $0x58] sm:$0xff] %v4915_v37   ;;  %v4910_v46 = vpack.c.bf16 %v2690_v43, %v2689_v36  ;;  %v2818_v47 = vsel %vm2306_vm15, %v1729_v33, %v2562_v39  ;;  %v2567_v48 = vmul.f32 0.2, %v5930_v41  ;;  %v1230_v49 = vpop.f32.mrf.mxu0  ;;  %v1742_v50 = vpop.f32.mrf.mxu1  ;;  %vm2311_vm1 = vcmp.gt.f32.partialorder %v5930_v41, 0.0 }
 0x115   :  { %5571 = vst [vmem:[%s7034_s2 + $0x258] sm:$0xff] %v5235_v42   ;;  %v5230_v51 = vpack.c.bf16 %v2818_v47, %v2817_v45  ;;  %v2695_v52 = vsel %vm2183_vm0, %v5802_v40, %v2439_v44  ;;  %v2437_v53 = vmul.f32 0.2, %v1230_v49  ;;  %vm2181_vm2 = vcmp.gt.f32.partialorder %v1230_v49, 0.0 }
 0x116   :  { %5506 = vst [vmem:[%s7034_s2 + $0x50] sm:$0xff] %v4910_v46   ;;  %v5803_v54 = vpop.f32.mrf.mxu0  ;;  %v5931_v55 = vpop.f32.mrf.mxu1  ;;  %v2823_v59 = vsel %vm2311_vm1, %v5930_v41, %v2567_v48  ;;  %vm2309_vm5 = vcmp.gt.f32.partialorder %v1742_v50, 0.0  ;;  %v2565_v60 = vmul.f32 0.2, %v1742_v50 }
 0x117   :  { %5570 = vst [vmem:[%s7034_s2 + $0x250] sm:$0xff] %v5230_v51   ;;  %vm2184_vm3 = vcmp.gt.f32.partialorder %v5803_v54, 0.0  ;;  %v2440_v58 = vmul.f32 0.2, %v5803_v54  ;;  %vm2312_vm4 = vcmp.gt.f32.partialorder %v5931_v55, 0.0  ;;  %v2693_v2 = vsel %vm2181_vm2, %v1230_v49, %v2437_v53 }
 0x118   :  { %v2568_v61 = vmul.f32 0.2, %v5931_v55  ;;  %v1233_v62 = vpop.f32.mrf.mxu0  ;;  %v1745_v63 = vpop.f32.mrf.mxu1  ;;  %v2821_v11 = vsel %vm2309_vm5, %v1742_v50, %v2565_v60 }
 0x119   :  { %v2696_v0 = vsel %vm2184_vm3, %v5803_v54, %v2440_v58  ;;  %vm2182_vm6 = vcmp.gt.f32.partialorder %v1233_v62, 0.0  ;;  %v2438_v1 = vmul.f32 0.2, %v1233_v62  ;;  %vm2310_vm7 = vcmp.gt.f32.partialorder %v1745_v63, 0.0 }
 0x11a   :  { %v4925_v3 = vpack.c.bf16 %v2696_v0, %v2695_v52  ;;  %v2824_v4 = vsel %vm2312_vm4, %v5931_v55, %v2568_v61  ;;  %v2566_v5 = vmul.f32 0.2, %v1745_v63  ;;  %v5806_v6 = vpop.f32.mrf.mxu0  ;;  %5901 = vmatmul.mubr.bf16.gmra.mxu0 %v6182_v56  ;;  %v5934_v7 = vpop.f32.mrf.mxu1  ;;  %6029 = vmatmul.mubr.bf16.gmra.mxu1 %v6183_v57 }
 0x11b   :  { %v5245_v8 = vpack.c.bf16 %v2824_v4, %v2823_v59  ;;  %v2694_v9 = vsel %vm2182_vm6, %v1233_v62, %v2438_v1  ;;  %vm2187_vm8 = vcmp.gt.f32.partialorder %v5806_v6, 0.0  ;;  %v2443_v10 = vmul.f32 0.2, %v5806_v6 }
 0x11c   :  { %5509 = vst [vmem:[%s7034_s2 + $0x68] sm:$0xff] %v4925_v3   ;;  %v4920_v12 = vpack.c.bf16 %v2694_v9, %v2693_v2  ;;  %v2822_v13 = vsel %vm2310_vm7, %v1745_v63, %v2566_v5  ;;  %v2571_v14 = vmul.f32 0.2, %v5934_v7  ;;  %v1246_v15 = vpop.f32.mrf.mxu0  ;;  %v1758_v16 = vpop.f32.mrf.mxu1  ;;  %vm2315_vm9 = vcmp.gt.f32.partialorder %v5934_v7, 0.0 }
 0x11d   :  { %5573 = vst [vmem:[%s7034_s2 + $0x268] sm:$0xff] %v5245_v8   ;;  %v5240_v17 = vpack.c.bf16 %v2822_v13, %v2821_v11  ;;  %v2699_v18 = vsel %vm2187_vm8, %v5806_v6, %v2443_v10  ;;  %v2441_v19 = vmul.f32 0.2, %v1246_v15  ;;  %vm2185_vm10 = vcmp.gt.f32.partialorder %v1246_v15, 0.0 }
 0x11e   :  { %5508 = vst [vmem:[%s7034_s2 + $0x60] sm:$0xff] %v4920_v12   ;;  %v5807_v20 = vpop.f32.mrf.mxu0  ;;  %v5935_v21 = vpop.f32.mrf.mxu1  ;;  %v2827_v23 = vsel %vm2315_vm9, %v5934_v7, %v2571_v14  ;;  %vm2313_vm13 = vcmp.gt.f32.partialorder %v1758_v16, 0.0  ;;  %v2569_v24 = vmul.f32 0.2, %v1758_v16 }
 0x11f   :  { %5572 = vst [vmem:[%s7034_s2 + $0x260] sm:$0xff] %v5240_v17   ;;  %vm2188_vm11 = vcmp.gt.f32.partialorder %v5807_v20, 0.0  ;;  %v2444_v22 = vmul.f32 0.2, %v5807_v20  ;;  %vm2316_vm12 = vcmp.gt.f32.partialorder %v5935_v21, 0.0  ;;  %v2697_v30 = vsel %vm2185_vm10, %v1246_v15, %v2441_v19 }
 0x120   :  { %v2572_v25 = vmul.f32 0.2, %v5935_v21  ;;  %v1249_v26 = vpop.f32.mrf.mxu0  ;;  %v1761_v27 = vpop.f32.mrf.mxu1  ;;  %v2825_v39 = vsel %vm2313_vm13, %v1758_v16, %v2569_v24 }
 0x121   :  { %v2700_v28 = vsel %vm2188_vm11, %v5807_v20, %v2444_v22  ;;  %vm2186_vm14 = vcmp.gt.f32.partialorder %v1249_v26, 0.0  ;;  %v2442_v29 = vmul.f32 0.2, %v1249_v26  ;;  %vm2314_vm15 = vcmp.gt.f32.partialorder %v1761_v27, 0.0 }
 0x122   :  { %v4935_v31 = vpack.c.bf16 %v2700_v28, %v2699_v18  ;;  %v2828_v32 = vsel %vm2316_vm12, %v5935_v21, %v2572_v25  ;;  %v2570_v33 = vmul.f32 0.2, %v1761_v27  ;;  %v5810_v34 = vpop.f32.mrf.mxu0  ;;  %v5938_v35 = vpop.f32.mrf.mxu1 }
 0x123   :  { %v5255_v36 = vpack.c.bf16 %v2828_v32, %v2827_v23  ;;  %v2698_v37 = vsel %vm2186_vm14, %v1249_v26, %v2442_v29  ;;  %vm2191_vm0 = vcmp.gt.f32.partialorder %v5810_v34, 0.0  ;;  %v2447_v38 = vmul.f32 0.2, %v5810_v34 }
 0x124   :  { %5511 = vst [vmem:[%s7034_s2 + $0x78] sm:$0xff] %v4935_v31   ;;  %v4930_v40 = vpack.c.bf16 %v2698_v37, %v2697_v30  ;;  %v2826_v41 = vsel %vm2314_vm15, %v1761_v27, %v2570_v33  ;;  %v2575_v42 = vmul.f32 0.2, %v5938_v35  ;;  %v1262_v43 = vpop.f32.mrf.mxu0  ;;  %v1774_v44 = vpop.f32.mrf.mxu1  ;;  %vm2319_vm1 = vcmp.gt.f32.partialorder %v5938_v35, 0.0 }
 0x125   :  { %5575 = vst [vmem:[%s7034_s2 + $0x278] sm:$0xff] %v5255_v36   ;;  %v5250_v45 = vpack.c.bf16 %v2826_v41, %v2825_v39  ;;  %v2703_v46 = vsel %vm2191_vm0, %v5810_v34, %v2447_v38  ;;  %v2445_v47 = vmul.f32 0.2, %v1262_v43  ;;  %vm2189_vm2 = vcmp.gt.f32.partialorder %v1262_v43, 0.0 }
 0x126   :  { %5510 = vst [vmem:[%s7034_s2 + $0x70] sm:$0xff] %v4930_v40   ;;  %v5811_v48 = vpop.f32.mrf.mxu0  ;;  %v5939_v49 = vpop.f32.mrf.mxu1  ;;  %v2831_v51 = vsel %vm2319_vm1, %v5938_v35, %v2575_v42  ;;  %vm2317_vm5 = vcmp.gt.f32.partialorder %v1774_v44, 0.0  ;;  %v2573_v52 = vmul.f32 0.2, %v1774_v44 }
 0x127   :  { %5574 = vst [vmem:[%s7034_s2 + $0x270] sm:$0xff] %v5250_v45   ;;  %vm2192_vm3 = vcmp.gt.f32.partialorder %v5811_v48, 0.0  ;;  %v2448_v50 = vmul.f32 0.2, %v5811_v48  ;;  %vm2320_vm4 = vcmp.gt.f32.partialorder %v5939_v49, 0.0  ;;  %v2701_v58 = vsel %vm2189_vm2, %v1262_v43, %v2445_v47 }
 0x128   :  { %v2576_v53 = vmul.f32 0.2, %v5939_v49  ;;  %v1265_v54 = vpop.f32.mrf.mxu0  ;;  %v1777_v55 = vpop.f32.mrf.mxu1  ;;  %v2829_v3 = vsel %vm2317_vm5, %v1774_v44, %v2573_v52 }
 0x129   :  { %v2704_v56 = vsel %vm2192_vm3, %v5811_v48, %v2448_v50  ;;  %vm2190_vm6 = vcmp.gt.f32.partialorder %v1265_v54, 0.0  ;;  %v2446_v57 = vmul.f32 0.2, %v1265_v54  ;;  %vm2318_vm7 = vcmp.gt.f32.partialorder %v1777_v55, 0.0 }
 0x12a   :  { %v4945_v59 = vpack.c.bf16 %v2704_v56, %v2703_v46  ;;  %v2832_v60 = vsel %vm2320_vm4, %v5939_v49, %v2576_v53  ;;  %v2574_v61 = vmul.f32 0.2, %v1777_v55  ;;  %v5814_v62 = vpop.f32.mrf.mxu0  ;;  %v5942_v63 = vpop.f32.mrf.mxu1 }
 0x12b   :  { %v5265_v0 = vpack.c.bf16 %v2832_v60, %v2831_v51  ;;  %v2702_v1 = vsel %vm2190_vm6, %v1265_v54, %v2446_v57  ;;  %vm2195_vm8 = vcmp.gt.f32.partialorder %v5814_v62, 0.0  ;;  %v2451_v2 = vmul.f32 0.2, %v5814_v62 }
 0x12c   :  { %5513 = vst [vmem:[%s7034_s2 + $0x88] sm:$0xff] %v4945_v59   ;;  %v4940_v4 = vpack.c.bf16 %v2702_v1, %v2701_v58  ;;  %v2830_v5 = vsel %vm2318_vm7, %v1777_v55, %v2574_v61  ;;  %v2579_v6 = vmul.f32 0.2, %v5942_v63  ;;  %v1278_v7 = vpop.f32.mrf.mxu0  ;;  %v1790_v8 = vpop.f32.mrf.mxu1  ;;  %vm2323_vm9 = vcmp.gt.f32.partialorder %v5942_v63, 0.0 }
 0x12d   :  { %5577 = vst [vmem:[%s7034_s2 + $0x288] sm:$0xff] %v5265_v0   ;;  %v5260_v9 = vpack.c.bf16 %v2830_v5, %v2829_v3  ;;  %v2707_v10 = vsel %vm2195_vm8, %v5814_v62, %v2451_v2  ;;  %v2449_v11 = vmul.f32 0.2, %v1278_v7  ;;  %vm2193_vm10 = vcmp.gt.f32.partialorder %v1278_v7, 0.0 }
 0x12e   :  { %5512 = vst [vmem:[%s7034_s2 + $0x80] sm:$0xff] %v4940_v4   ;;  %v5815_v12 = vpop.f32.mrf.mxu0  ;;  %v5943_v13 = vpop.f32.mrf.mxu1  ;;  %v2835_v15 = vsel %vm2323_vm9, %v5942_v63, %v2579_v6  ;;  %vm2321_vm13 = vcmp.gt.f32.partialorder %v1790_v8, 0.0  ;;  %v2577_v16 = vmul.f32 0.2, %v1790_v8 }
 0x12f   :  { %5576 = vst [vmem:[%s7034_s2 + $0x280] sm:$0xff] %v5260_v9   ;;  %vm2196_vm11 = vcmp.gt.f32.partialorder %v5815_v12, 0.0  ;;  %v2452_v14 = vmul.f32 0.2, %v5815_v12  ;;  %vm2324_vm12 = vcmp.gt.f32.partialorder %v5943_v13, 0.0  ;;  %v2705_v22 = vsel %vm2193_vm10, %v1278_v7, %v2449_v11 }
 0x130   :  { %v2580_v17 = vmul.f32 0.2, %v5943_v13  ;;  %v1281_v18 = vpop.f32.mrf.mxu0  ;;  %v1793_v19 = vpop.f32.mrf.mxu1  ;;  %v2833_v31 = vsel %vm2321_vm13, %v1790_v8, %v2577_v16 }
 0x131   :  { %v2708_v20 = vsel %vm2196_vm11, %v5815_v12, %v2452_v14  ;;  %vm2194_vm14 = vcmp.gt.f32.partialorder %v1281_v18, 0.0  ;;  %v2450_v21 = vmul.f32 0.2, %v1281_v18  ;;  %vm2322_vm15 = vcmp.gt.f32.partialorder %v1793_v19, 0.0 }
 0x132   :  { %v4955_v23 = vpack.c.bf16 %v2708_v20, %v2707_v10  ;;  %v2836_v24 = vsel %vm2324_vm12, %v5943_v13, %v2580_v17  ;;  %v2578_v25 = vmul.f32 0.2, %v1793_v19  ;;  %v5818_v26 = vpop.f32.mrf.mxu0  ;;  %v5946_v27 = vpop.f32.mrf.mxu1 }
 0x133   :  { %v5275_v28 = vpack.c.bf16 %v2836_v24, %v2835_v15  ;;  %v2706_v29 = vsel %vm2194_vm14, %v1281_v18, %v2450_v21  ;;  %vm2199_vm0 = vcmp.gt.f32.partialorder %v5818_v26, 0.0  ;;  %v2455_v30 = vmul.f32 0.2, %v5818_v26 }
 0x134   :  { %5515 = vst [vmem:[%s7034_s2 + $0x98] sm:$0xff] %v4955_v23   ;;  %v4950_v32 = vpack.c.bf16 %v2706_v29, %v2705_v22  ;;  %v2834_v33 = vsel %vm2322_vm15, %v1793_v19, %v2578_v25  ;;  %v2583_v34 = vmul.f32 0.2, %v5946_v27  ;;  %v1294_v35 = vpop.f32.mrf.mxu0  ;;  %v1806_v36 = vpop.f32.mrf.mxu1  ;;  %vm2327_vm1 = vcmp.gt.f32.partialorder %v5946_v27, 0.0 }
 0x135   :  { %5579 = vst [vmem:[%s7034_s2 + $0x298] sm:$0xff] %v5275_v28   ;;  %v5270_v37 = vpack.c.bf16 %v2834_v33, %v2833_v31  ;;  %v2711_v38 = vsel %vm2199_vm0, %v5818_v26, %v2455_v30  ;;  %v2453_v39 = vmul.f32 0.2, %v1294_v35  ;;  %vm2197_vm2 = vcmp.gt.f32.partialorder %v1294_v35, 0.0 }
 0x136   :  { %5514 = vst [vmem:[%s7034_s2 + $0x90] sm:$0xff] %v4950_v32   ;;  %v5819_v40 = vpop.f32.mrf.mxu0  ;;  %v5947_v41 = vpop.f32.mrf.mxu1  ;;  %v2839_v43 = vsel %vm2327_vm1, %v5946_v27, %v2583_v34  ;;  %vm2325_vm5 = vcmp.gt.f32.partialorder %v1806_v36, 0.0  ;;  %v2581_v44 = vmul.f32 0.2, %v1806_v36 }
 0x137   :  { %5578 = vst [vmem:[%s7034_s2 + $0x290] sm:$0xff] %v5270_v37   ;;  %vm2200_vm3 = vcmp.gt.f32.partialorder %v5819_v40, 0.0  ;;  %v2456_v42 = vmul.f32 0.2, %v5819_v40  ;;  %vm2328_vm4 = vcmp.gt.f32.partialorder %v5947_v41, 0.0  ;;  %v2709_v50 = vsel %vm2197_vm2, %v1294_v35, %v2453_v39 }
 0x138   :  { %v2584_v45 = vmul.f32 0.2, %v5947_v41  ;;  %v1297_v46 = vpop.f32.mrf.mxu0  ;;  %v1809_v47 = vpop.f32.mrf.mxu1  ;;  %v2837_v59 = vsel %vm2325_vm5, %v1806_v36, %v2581_v44 }
 0x139   :  { %v2712_v48 = vsel %vm2200_vm3, %v5819_v40, %v2456_v42  ;;  %vm2198_vm6 = vcmp.gt.f32.partialorder %v1297_v46, 0.0  ;;  %v2454_v49 = vmul.f32 0.2, %v1297_v46  ;;  %vm2326_vm7 = vcmp.gt.f32.partialorder %v1809_v47, 0.0 }
 0x13a   :  { %v4965_v51 = vpack.c.bf16 %v2712_v48, %v2711_v38  ;;  %v2840_v52 = vsel %vm2328_vm4, %v5947_v41, %v2584_v45  ;;  %v2582_v53 = vmul.f32 0.2, %v1809_v47  ;;  %v5822_v54 = vpop.f32.mrf.mxu0  ;;  %v5950_v55 = vpop.f32.mrf.mxu1 }
 0x13b   :  { %v5285_v56 = vpack.c.bf16 %v2840_v52, %v2839_v43  ;;  %v2710_v57 = vsel %vm2198_vm6, %v1297_v46, %v2454_v49  ;;  %vm2203_vm8 = vcmp.gt.f32.partialorder %v5822_v54, 0.0  ;;  %v2459_v58 = vmul.f32 0.2, %v5822_v54 }
 0x13c   :  { %5517 = vst [vmem:[%s7034_s2 + $0xa8] sm:$0xff] %v4965_v51   ;;  %v4960_v60 = vpack.c.bf16 %v2710_v57, %v2709_v50  ;;  %v2838_v61 = vsel %vm2326_vm7, %v1809_v47, %v2582_v53  ;;  %v2587_v62 = vmul.f32 0.2, %v5950_v55  ;;  %v1310_v63 = vpop.f32.mrf.mxu0  ;;  %v1822_v0 = vpop.f32.mrf.mxu1  ;;  %vm2331_vm9 = vcmp.gt.f32.partialorder %v5950_v55, 0.0 }
 0x13d   :  { %5581 = vst [vmem:[%s7034_s2 + $0x2a8] sm:$0xff] %v5285_v56   ;;  %v5280_v1 = vpack.c.bf16 %v2838_v61, %v2837_v59  ;;  %v2715_v2 = vsel %vm2203_vm8, %v5822_v54, %v2459_v58  ;;  %v2457_v3 = vmul.f32 0.2, %v1310_v63  ;;  %vm2201_vm10 = vcmp.gt.f32.partialorder %v1310_v63, 0.0 }
 0x13e   :  { %5516 = vst [vmem:[%s7034_s2 + $0xa0] sm:$0xff] %v4960_v60   ;;  %v5823_v4 = vpop.f32.mrf.mxu0  ;;  %v5951_v5 = vpop.f32.mrf.mxu1  ;;  %v2843_v7 = vsel %vm2331_vm9, %v5950_v55, %v2587_v62  ;;  %vm2329_vm13 = vcmp.gt.f32.partialorder %v1822_v0, 0.0  ;;  %v2585_v8 = vmul.f32 0.2, %v1822_v0 }
 0x13f   :  { %5580 = vst [vmem:[%s7034_s2 + $0x2a0] sm:$0xff] %v5280_v1   ;;  %vm2204_vm11 = vcmp.gt.f32.partialorder %v5823_v4, 0.0  ;;  %v2460_v6 = vmul.f32 0.2, %v5823_v4  ;;  %vm2332_vm12 = vcmp.gt.f32.partialorder %v5951_v5, 0.0  ;;  %v2713_v14 = vsel %vm2201_vm10, %v1310_v63, %v2457_v3 }
 0x140   :  { %v2588_v9 = vmul.f32 0.2, %v5951_v5  ;;  %v1313_v10 = vpop.f32.mrf.mxu0  ;;  %v1825_v11 = vpop.f32.mrf.mxu1  ;;  %v2841_v23 = vsel %vm2329_vm13, %v1822_v0, %v2585_v8 }
 0x141   :  { %v2716_v12 = vsel %vm2204_vm11, %v5823_v4, %v2460_v6  ;;  %vm2202_vm14 = vcmp.gt.f32.partialorder %v1313_v10, 0.0  ;;  %v2458_v13 = vmul.f32 0.2, %v1313_v10  ;;  %vm2330_vm15 = vcmp.gt.f32.partialorder %v1825_v11, 0.0 }
 0x142   :  { %v4975_v15 = vpack.c.bf16 %v2716_v12, %v2715_v2  ;;  %v2844_v16 = vsel %vm2332_vm12, %v5951_v5, %v2588_v9  ;;  %v2586_v17 = vmul.f32 0.2, %v1825_v11  ;;  %v5826_v18 = vpop.f32.mrf.mxu0  ;;  %v5954_v19 = vpop.f32.mrf.mxu1 }
 0x143   :  { %v5295_v20 = vpack.c.bf16 %v2844_v16, %v2843_v7  ;;  %v2714_v21 = vsel %vm2202_vm14, %v1313_v10, %v2458_v13  ;;  %vm2207_vm0 = vcmp.gt.f32.partialorder %v5826_v18, 0.0  ;;  %v2463_v22 = vmul.f32 0.2, %v5826_v18 }
 0x144   :  { %5519 = vst [vmem:[%s7034_s2 + $0xb8] sm:$0xff] %v4975_v15   ;;  %v4970_v24 = vpack.c.bf16 %v2714_v21, %v2713_v14  ;;  %v2842_v25 = vsel %vm2330_vm15, %v1825_v11, %v2586_v17  ;;  %v2591_v26 = vmul.f32 0.2, %v5954_v19  ;;  %v1326_v27 = vpop.f32.mrf.mxu0  ;;  %v1838_v28 = vpop.f32.mrf.mxu1  ;;  %vm2335_vm1 = vcmp.gt.f32.partialorder %v5954_v19, 0.0 }
 0x145   :  { %5583 = vst [vmem:[%s7034_s2 + $0x2b8] sm:$0xff] %v5295_v20   ;;  %v5290_v29 = vpack.c.bf16 %v2842_v25, %v2841_v23  ;;  %v2719_v30 = vsel %vm2207_vm0, %v5826_v18, %v2463_v22  ;;  %v2461_v31 = vmul.f32 0.2, %v1326_v27  ;;  %vm2205_vm2 = vcmp.gt.f32.partialorder %v1326_v27, 0.0 }
 0x146   :  { %5518 = vst [vmem:[%s7034_s2 + $0xb0] sm:$0xff] %v4970_v24   ;;  %v5827_v32 = vpop.f32.mrf.mxu0  ;;  %v5955_v33 = vpop.f32.mrf.mxu1  ;;  %v2847_v35 = vsel %vm2335_vm1, %v5954_v19, %v2591_v26  ;;  %vm2333_vm5 = vcmp.gt.f32.partialorder %v1838_v28, 0.0  ;;  %v2589_v36 = vmul.f32 0.2, %v1838_v28 }
 0x147   :  { %5582 = vst [vmem:[%s7034_s2 + $0x2b0] sm:$0xff] %v5290_v29   ;;  %vm2208_vm3 = vcmp.gt.f32.partialorder %v5827_v32, 0.0  ;;  %v2464_v34 = vmul.f32 0.2, %v5827_v32  ;;  %vm2336_vm4 = vcmp.gt.f32.partialorder %v5955_v33, 0.0  ;;  %v2717_v42 = vsel %vm2205_vm2, %v1326_v27, %v2461_v31 }
 0x148   :  { %v2592_v37 = vmul.f32 0.2, %v5955_v33  ;;  %v1329_v38 = vpop.f32.mrf.mxu0  ;;  %v1841_v39 = vpop.f32.mrf.mxu1  ;;  %v2845_v51 = vsel %vm2333_vm5, %v1838_v28, %v2589_v36 }
 0x149   :  { %v2720_v40 = vsel %vm2208_vm3, %v5827_v32, %v2464_v34  ;;  %vm2206_vm6 = vcmp.gt.f32.partialorder %v1329_v38, 0.0  ;;  %v2462_v41 = vmul.f32 0.2, %v1329_v38  ;;  %vm2334_vm7 = vcmp.gt.f32.partialorder %v1841_v39, 0.0 }
 0x14a   :  { %v4985_v43 = vpack.c.bf16 %v2720_v40, %v2719_v30  ;;  %v2848_v44 = vsel %vm2336_vm4, %v5955_v33, %v2592_v37  ;;  %v2590_v45 = vmul.f32 0.2, %v1841_v39  ;;  %v5830_v46 = vpop.f32.mrf.mxu0  ;;  %v5958_v47 = vpop.f32.mrf.mxu1 }
 0x14b   :  { %v5305_v48 = vpack.c.bf16 %v2848_v44, %v2847_v35  ;;  %v2718_v49 = vsel %vm2206_vm6, %v1329_v38, %v2462_v41  ;;  %vm2211_vm8 = vcmp.gt.f32.partialorder %v5830_v46, 0.0  ;;  %v2467_v50 = vmul.f32 0.2, %v5830_v46 }
 0x14c   :  { %5521 = vst [vmem:[%s7034_s2 + $0xc8] sm:$0xff] %v4985_v43   ;;  %v4980_v52 = vpack.c.bf16 %v2718_v49, %v2717_v42  ;;  %v2846_v53 = vsel %vm2334_vm7, %v1841_v39, %v2590_v45  ;;  %v2595_v54 = vmul.f32 0.2, %v5958_v47  ;;  %v1342_v55 = vpop.f32.mrf.mxu0  ;;  %v1854_v56 = vpop.f32.mrf.mxu1  ;;  %vm2339_vm9 = vcmp.gt.f32.partialorder %v5958_v47, 0.0 }
 0x14d   :  { %5585 = vst [vmem:[%s7034_s2 + $0x2c8] sm:$0xff] %v5305_v48   ;;  %v5300_v57 = vpack.c.bf16 %v2846_v53, %v2845_v51  ;;  %v2723_v58 = vsel %vm2211_vm8, %v5830_v46, %v2467_v50  ;;  %v2465_v59 = vmul.f32 0.2, %v1342_v55  ;;  %vm2209_vm10 = vcmp.gt.f32.partialorder %v1342_v55, 0.0 }
 0x14e   :  { %5520 = vst [vmem:[%s7034_s2 + $0xc0] sm:$0xff] %v4980_v52   ;;  %v5831_v60 = vpop.f32.mrf.mxu0  ;;  %v5959_v61 = vpop.f32.mrf.mxu1  ;;  %v2851_v63 = vsel %vm2339_vm9, %v5958_v47, %v2595_v54  ;;  %vm2337_vm13 = vcmp.gt.f32.partialorder %v1854_v56, 0.0  ;;  %v2593_v0 = vmul.f32 0.2, %v1854_v56 }
 0x14f   :  { %5584 = vst [vmem:[%s7034_s2 + $0x2c0] sm:$0xff] %v5300_v57   ;;  %vm2212_vm11 = vcmp.gt.f32.partialorder %v5831_v60, 0.0  ;;  %v2468_v62 = vmul.f32 0.2, %v5831_v60  ;;  %vm2340_vm12 = vcmp.gt.f32.partialorder %v5959_v61, 0.0  ;;  %v2721_v6 = vsel %vm2209_vm10, %v1342_v55, %v2465_v59 }
 0x150   :  { %v2596_v1 = vmul.f32 0.2, %v5959_v61  ;;  %v1345_v2 = vpop.f32.mrf.mxu0  ;;  %v1857_v3 = vpop.f32.mrf.mxu1  ;;  %v2849_v15 = vsel %vm2337_vm13, %v1854_v56, %v2593_v0 }
 0x151   :  { %v2724_v4 = vsel %vm2212_vm11, %v5831_v60, %v2468_v62  ;;  %vm2210_vm14 = vcmp.gt.f32.partialorder %v1345_v2, 0.0  ;;  %v2466_v5 = vmul.f32 0.2, %v1345_v2  ;;  %vm2338_vm15 = vcmp.gt.f32.partialorder %v1857_v3, 0.0 }
 0x152   :  { %v4995_v7 = vpack.c.bf16 %v2724_v4, %v2723_v58  ;;  %v2852_v8 = vsel %vm2340_vm12, %v5959_v61, %v2596_v1  ;;  %v2594_v9 = vmul.f32 0.2, %v1857_v3  ;;  %v5834_v10 = vpop.f32.mrf.mxu0  ;;  %v5962_v11 = vpop.f32.mrf.mxu1 }
 0x153   :  { %v5315_v12 = vpack.c.bf16 %v2852_v8, %v2851_v63  ;;  %v2722_v13 = vsel %vm2210_vm14, %v1345_v2, %v2466_v5  ;;  %vm2215_vm0 = vcmp.gt.f32.partialorder %v5834_v10, 0.0  ;;  %v2471_v14 = vmul.f32 0.2, %v5834_v10 }
 0x154   :  { %5523 = vst [vmem:[%s7034_s2 + $0xd8] sm:$0xff] %v4995_v7   ;;  %v4990_v16 = vpack.c.bf16 %v2722_v13, %v2721_v6  ;;  %v2850_v17 = vsel %vm2338_vm15, %v1857_v3, %v2594_v9  ;;  %v2599_v18 = vmul.f32 0.2, %v5962_v11  ;;  %v1358_v19 = vpop.f32.mrf.mxu0  ;;  %v1870_v20 = vpop.f32.mrf.mxu1  ;;  %vm2343_vm1 = vcmp.gt.f32.partialorder %v5962_v11, 0.0 }
 0x155   :  { %5587 = vst [vmem:[%s7034_s2 + $0x2d8] sm:$0xff] %v5315_v12   ;;  %v5310_v21 = vpack.c.bf16 %v2850_v17, %v2849_v15  ;;  %v2727_v22 = vsel %vm2215_vm0, %v5834_v10, %v2471_v14  ;;  %v2469_v23 = vmul.f32 0.2, %v1358_v19  ;;  %vm2213_vm2 = vcmp.gt.f32.partialorder %v1358_v19, 0.0 }
 0x156   :  { %5522 = vst [vmem:[%s7034_s2 + $0xd0] sm:$0xff] %v4990_v16   ;;  %v5835_v24 = vpop.f32.mrf.mxu0  ;;  %v5963_v25 = vpop.f32.mrf.mxu1  ;;  %v2855_v27 = vsel %vm2343_vm1, %v5962_v11, %v2599_v18  ;;  %vm2341_vm5 = vcmp.gt.f32.partialorder %v1870_v20, 0.0  ;;  %v2597_v28 = vmul.f32 0.2, %v1870_v20 }
 0x157   :  { %5586 = vst [vmem:[%s7034_s2 + $0x2d0] sm:$0xff] %v5310_v21   ;;  %vm2216_vm3 = vcmp.gt.f32.partialorder %v5835_v24, 0.0  ;;  %v2472_v26 = vmul.f32 0.2, %v5835_v24  ;;  %vm2344_vm4 = vcmp.gt.f32.partialorder %v5963_v25, 0.0  ;;  %v2725_v34 = vsel %vm2213_vm2, %v1358_v19, %v2469_v23 }
 0x158   :  { %v2600_v29 = vmul.f32 0.2, %v5963_v25  ;;  %v1361_v30 = vpop.f32.mrf.mxu0  ;;  %v1873_v31 = vpop.f32.mrf.mxu1  ;;  %v2853_v43 = vsel %vm2341_vm5, %v1870_v20, %v2597_v28 }
 0x159   :  { %v2728_v32 = vsel %vm2216_vm3, %v5835_v24, %v2472_v26  ;;  %vm2214_vm6 = vcmp.gt.f32.partialorder %v1361_v30, 0.0  ;;  %v2470_v33 = vmul.f32 0.2, %v1361_v30  ;;  %vm2342_vm7 = vcmp.gt.f32.partialorder %v1873_v31, 0.0 }
 0x15a   :  { %v5005_v35 = vpack.c.bf16 %v2728_v32, %v2727_v22  ;;  %v2856_v36 = vsel %vm2344_vm4, %v5963_v25, %v2600_v29  ;;  %v2598_v37 = vmul.f32 0.2, %v1873_v31  ;;  %v5838_v38 = vpop.f32.mrf.mxu0  ;;  %v5966_v39 = vpop.f32.mrf.mxu1 }
 0x15b   :  { %v5325_v40 = vpack.c.bf16 %v2856_v36, %v2855_v27  ;;  %v2726_v41 = vsel %vm2214_vm6, %v1361_v30, %v2470_v33  ;;  %vm2219_vm8 = vcmp.gt.f32.partialorder %v5838_v38, 0.0  ;;  %v2475_v42 = vmul.f32 0.2, %v5838_v38 }
 0x15c   :  { %5525 = vst [vmem:[%s7034_s2 + $0xe8] sm:$0xff] %v5005_v35   ;;  %v5000_v44 = vpack.c.bf16 %v2726_v41, %v2725_v34  ;;  %v2854_v45 = vsel %vm2342_vm7, %v1873_v31, %v2598_v37  ;;  %v2603_v46 = vmul.f32 0.2, %v5966_v39  ;;  %v1374_v47 = vpop.f32.mrf.mxu0  ;;  %v1886_v48 = vpop.f32.mrf.mxu1  ;;  %vm2347_vm9 = vcmp.gt.f32.partialorder %v5966_v39, 0.0 }
 0x15d   :  { %5589 = vst [vmem:[%s7034_s2 + $0x2e8] sm:$0xff] %v5325_v40   ;;  %v5320_v49 = vpack.c.bf16 %v2854_v45, %v2853_v43  ;;  %v2731_v50 = vsel %vm2219_vm8, %v5838_v38, %v2475_v42  ;;  %v2473_v51 = vmul.f32 0.2, %v1374_v47  ;;  %vm2217_vm10 = vcmp.gt.f32.partialorder %v1374_v47, 0.0 }
 0x15e   :  { %5524 = vst [vmem:[%s7034_s2 + $0xe0] sm:$0xff] %v5000_v44   ;;  %v5839_v52 = vpop.f32.mrf.mxu0  ;;  %v5967_v53 = vpop.f32.mrf.mxu1  ;;  %v2859_v55 = vsel %vm2347_vm9, %v5966_v39, %v2603_v46  ;;  %vm2345_vm13 = vcmp.gt.f32.partialorder %v1886_v48, 0.0  ;;  %v2601_v56 = vmul.f32 0.2, %v1886_v48 }
 0x15f   :  { %5588 = vst [vmem:[%s7034_s2 + $0x2e0] sm:$0xff] %v5320_v49   ;;  %vm2220_vm11 = vcmp.gt.f32.partialorder %v5839_v52, 0.0  ;;  %v2476_v54 = vmul.f32 0.2, %v5839_v52  ;;  %vm2348_vm12 = vcmp.gt.f32.partialorder %v5967_v53, 0.0  ;;  %v2729_v62 = vsel %vm2217_vm10, %v1374_v47, %v2473_v51 }
 0x160   :  { %v2604_v57 = vmul.f32 0.2, %v5967_v53  ;;  %v1377_v58 = vpop.f32.mrf.mxu0  ;;  %v1889_v59 = vpop.f32.mrf.mxu1  ;;  %v2857_v7 = vsel %vm2345_vm13, %v1886_v48, %v2601_v56 }
 0x161   :  { %v2732_v60 = vsel %vm2220_vm11, %v5839_v52, %v2476_v54  ;;  %vm2218_vm14 = vcmp.gt.f32.partialorder %v1377_v58, 0.0  ;;  %v2474_v61 = vmul.f32 0.2, %v1377_v58  ;;  %vm2346_vm15 = vcmp.gt.f32.partialorder %v1889_v59, 0.0 }
 0x162   :  { %v5015_v63 = vpack.c.bf16 %v2732_v60, %v2731_v50  ;;  %v2860_v0 = vsel %vm2348_vm12, %v5967_v53, %v2604_v57  ;;  %v2602_v1 = vmul.f32 0.2, %v1889_v59  ;;  %v5842_v2 = vpop.f32.mrf.mxu0  ;;  %v5970_v3 = vpop.f32.mrf.mxu1 }
 0x163   :  { %v5335_v4 = vpack.c.bf16 %v2860_v0, %v2859_v55  ;;  %v2730_v5 = vsel %vm2218_vm14, %v1377_v58, %v2474_v61  ;;  %vm2223_vm0 = vcmp.gt.f32.partialorder %v5842_v2, 0.0  ;;  %v2479_v6 = vmul.f32 0.2, %v5842_v2 }
 0x164   :  { %5527 = vst [vmem:[%s7034_s2 + $0xf8] sm:$0xff] %v5015_v63   ;;  %v5010_v8 = vpack.c.bf16 %v2730_v5, %v2729_v62  ;;  %v2858_v9 = vsel %vm2346_vm15, %v1889_v59, %v2602_v1  ;;  %v2607_v10 = vmul.f32 0.2, %v5970_v3  ;;  %v1390_v11 = vpop.f32.mrf.mxu0  ;;  %v1902_v12 = vpop.f32.mrf.mxu1  ;;  %vm2351_vm1 = vcmp.gt.f32.partialorder %v5970_v3, 0.0 }
 0x165   :  { %5591 = vst [vmem:[%s7034_s2 + $0x2f8] sm:$0xff] %v5335_v4   ;;  %v5330_v13 = vpack.c.bf16 %v2858_v9, %v2857_v7  ;;  %v2735_v14 = vsel %vm2223_vm0, %v5842_v2, %v2479_v6  ;;  %v2477_v15 = vmul.f32 0.2, %v1390_v11  ;;  %vm2221_vm2 = vcmp.gt.f32.partialorder %v1390_v11, 0.0 }
 0x166   :  { %5526 = vst [vmem:[%s7034_s2 + $0xf0] sm:$0xff] %v5010_v8   ;;  %v5843_v16 = vpop.f32.mrf.mxu0  ;;  %v5971_v17 = vpop.f32.mrf.mxu1  ;;  %v2863_v19 = vsel %vm2351_vm1, %v5970_v3, %v2607_v10  ;;  %vm2349_vm5 = vcmp.gt.f32.partialorder %v1902_v12, 0.0  ;;  %v2605_v20 = vmul.f32 0.2, %v1902_v12 }
 0x167   :  { %5590 = vst [vmem:[%s7034_s2 + $0x2f0] sm:$0xff] %v5330_v13   ;;  %vm2224_vm3 = vcmp.gt.f32.partialorder %v5843_v16, 0.0  ;;  %v2480_v18 = vmul.f32 0.2, %v5843_v16  ;;  %vm2352_vm4 = vcmp.gt.f32.partialorder %v5971_v17, 0.0  ;;  %v2733_v26 = vsel %vm2221_vm2, %v1390_v11, %v2477_v15 }
 0x168   :  { %v2608_v21 = vmul.f32 0.2, %v5971_v17  ;;  %v1393_v22 = vpop.f32.mrf.mxu0  ;;  %v1905_v23 = vpop.f32.mrf.mxu1  ;;  %v2861_v35 = vsel %vm2349_vm5, %v1902_v12, %v2605_v20 }
 0x169   :  { %v2736_v24 = vsel %vm2224_vm3, %v5843_v16, %v2480_v18  ;;  %vm2222_vm6 = vcmp.gt.f32.partialorder %v1393_v22, 0.0  ;;  %v2478_v25 = vmul.f32 0.2, %v1393_v22  ;;  %vm2350_vm7 = vcmp.gt.f32.partialorder %v1905_v23, 0.0 }
 0x16a   :  { %v5025_v27 = vpack.c.bf16 %v2736_v24, %v2735_v14  ;;  %v2864_v28 = vsel %vm2352_vm4, %v5971_v17, %v2608_v21  ;;  %v2606_v29 = vmul.f32 0.2, %v1905_v23  ;;  %v5846_v30 = vpop.f32.mrf.mxu0  ;;  %v5974_v31 = vpop.f32.mrf.mxu1 }
 0x16b   :  { %v5345_v32 = vpack.c.bf16 %v2864_v28, %v2863_v19  ;;  %v2734_v33 = vsel %vm2222_vm6, %v1393_v22, %v2478_v25  ;;  %vm2227_vm8 = vcmp.gt.f32.partialorder %v5846_v30, 0.0  ;;  %v2483_v34 = vmul.f32 0.2, %v5846_v30 }
 0x16c   :  { %5529 = vst [vmem:[%s7034_s2 + $0x108] sm:$0xff] %v5025_v27   ;;  %v5020_v36 = vpack.c.bf16 %v2734_v33, %v2733_v26  ;;  %v2862_v37 = vsel %vm2350_vm7, %v1905_v23, %v2606_v29  ;;  %v2611_v38 = vmul.f32 0.2, %v5974_v31  ;;  %v1406_v39 = vpop.f32.mrf.mxu0  ;;  %v1918_v40 = vpop.f32.mrf.mxu1  ;;  %vm2355_vm9 = vcmp.gt.f32.partialorder %v5974_v31, 0.0 }
 0x16d   :  { %5593 = vst [vmem:[%s7034_s2 + $0x308] sm:$0xff] %v5345_v32   ;;  %v5340_v41 = vpack.c.bf16 %v2862_v37, %v2861_v35  ;;  %v2739_v42 = vsel %vm2227_vm8, %v5846_v30, %v2483_v34  ;;  %v2481_v43 = vmul.f32 0.2, %v1406_v39  ;;  %vm2225_vm10 = vcmp.gt.f32.partialorder %v1406_v39, 0.0 }
 0x16e   :  { %5528 = vst [vmem:[%s7034_s2 + $0x100] sm:$0xff] %v5020_v36   ;;  %v5847_v44 = vpop.f32.mrf.mxu0  ;;  %v5975_v45 = vpop.f32.mrf.mxu1  ;;  %v2867_v47 = vsel %vm2355_vm9, %v5974_v31, %v2611_v38  ;;  %vm2353_vm13 = vcmp.gt.f32.partialorder %v1918_v40, 0.0  ;;  %v2609_v48 = vmul.f32 0.2, %v1918_v40 }
 0x16f   :  { %5592 = vst [vmem:[%s7034_s2 + $0x300] sm:$0xff] %v5340_v41   ;;  %vm2228_vm11 = vcmp.gt.f32.partialorder %v5847_v44, 0.0  ;;  %v2484_v46 = vmul.f32 0.2, %v5847_v44  ;;  %vm2356_vm12 = vcmp.gt.f32.partialorder %v5975_v45, 0.0  ;;  %v2737_v54 = vsel %vm2225_vm10, %v1406_v39, %v2481_v43 }
 0x170   :  { %v2612_v49 = vmul.f32 0.2, %v5975_v45  ;;  %v1409_v50 = vpop.f32.mrf.mxu0  ;;  %v1921_v51 = vpop.f32.mrf.mxu1  ;;  %v2865_v63 = vsel %vm2353_vm13, %v1918_v40, %v2609_v48 }
 0x171   :  { %v2740_v52 = vsel %vm2228_vm11, %v5847_v44, %v2484_v46  ;;  %vm2226_vm14 = vcmp.gt.f32.partialorder %v1409_v50, 0.0  ;;  %v2482_v53 = vmul.f32 0.2, %v1409_v50  ;;  %vm2354_vm15 = vcmp.gt.f32.partialorder %v1921_v51, 0.0 }
 0x172   :  { %v5035_v55 = vpack.c.bf16 %v2740_v52, %v2739_v42  ;;  %v2868_v56 = vsel %vm2356_vm12, %v5975_v45, %v2612_v49  ;;  %v2610_v57 = vmul.f32 0.2, %v1921_v51  ;;  %v5850_v58 = vpop.f32.mrf.mxu0  ;;  %v5978_v59 = vpop.f32.mrf.mxu1 }
 0x173   :  { %v5355_v60 = vpack.c.bf16 %v2868_v56, %v2867_v47  ;;  %v2738_v61 = vsel %vm2226_vm14, %v1409_v50, %v2482_v53  ;;  %vm2231_vm0 = vcmp.gt.f32.partialorder %v5850_v58, 0.0  ;;  %v2487_v62 = vmul.f32 0.2, %v5850_v58 }
 0x174   :  { %5531 = vst [vmem:[%s7034_s2 + $0x118] sm:$0xff] %v5035_v55   ;;  %v5030_v0 = vpack.c.bf16 %v2738_v61, %v2737_v54  ;;  %v2866_v1 = vsel %vm2354_vm15, %v1921_v51, %v2610_v57  ;;  %v2615_v2 = vmul.f32 0.2, %v5978_v59  ;;  %v1422_v3 = vpop.f32.mrf.mxu0  ;;  %v1934_v4 = vpop.f32.mrf.mxu1  ;;  %vm2359_vm1 = vcmp.gt.f32.partialorder %v5978_v59, 0.0 }
 0x175   :  { %5595 = vst [vmem:[%s7034_s2 + $0x318] sm:$0xff] %v5355_v60   ;;  %v5350_v5 = vpack.c.bf16 %v2866_v1, %v2865_v63  ;;  %v2743_v6 = vsel %vm2231_vm0, %v5850_v58, %v2487_v62  ;;  %v2485_v7 = vmul.f32 0.2, %v1422_v3  ;;  %vm2229_vm2 = vcmp.gt.f32.partialorder %v1422_v3, 0.0 }
 0x176   :  { %5530 = vst [vmem:[%s7034_s2 + $0x110] sm:$0xff] %v5030_v0   ;;  %v5851_v8 = vpop.f32.mrf.mxu0  ;;  %v5979_v9 = vpop.f32.mrf.mxu1  ;;  %v2871_v11 = vsel %vm2359_vm1, %v5978_v59, %v2615_v2  ;;  %vm2357_vm5 = vcmp.gt.f32.partialorder %v1934_v4, 0.0  ;;  %v2613_v12 = vmul.f32 0.2, %v1934_v4 }
 0x177   :  { %5594 = vst [vmem:[%s7034_s2 + $0x310] sm:$0xff] %v5350_v5   ;;  %vm2232_vm3 = vcmp.gt.f32.partialorder %v5851_v8, 0.0  ;;  %v2488_v10 = vmul.f32 0.2, %v5851_v8  ;;  %vm2360_vm4 = vcmp.gt.f32.partialorder %v5979_v9, 0.0  ;;  %v2741_v18 = vsel %vm2229_vm2, %v1422_v3, %v2485_v7 }
 0x178   :  { %v2616_v13 = vmul.f32 0.2, %v5979_v9  ;;  %v1425_v14 = vpop.f32.mrf.mxu0  ;;  %v1937_v15 = vpop.f32.mrf.mxu1  ;;  %v2869_v27 = vsel %vm2357_vm5, %v1934_v4, %v2613_v12 }
 0x179   :  { %v2744_v16 = vsel %vm2232_vm3, %v5851_v8, %v2488_v10  ;;  %vm2230_vm6 = vcmp.gt.f32.partialorder %v1425_v14, 0.0  ;;  %v2486_v17 = vmul.f32 0.2, %v1425_v14  ;;  %vm2358_vm7 = vcmp.gt.f32.partialorder %v1937_v15, 0.0 }
 0x17a   :  { %v5045_v19 = vpack.c.bf16 %v2744_v16, %v2743_v6  ;;  %v2872_v20 = vsel %vm2360_vm4, %v5979_v9, %v2616_v13  ;;  %v2614_v21 = vmul.f32 0.2, %v1937_v15  ;;  %v5854_v22 = vpop.f32.mrf.mxu0  ;;  %v5982_v23 = vpop.f32.mrf.mxu1 }
 0x17b   :  { %v5365_v24 = vpack.c.bf16 %v2872_v20, %v2871_v11  ;;  %v2742_v25 = vsel %vm2230_vm6, %v1425_v14, %v2486_v17  ;;  %vm2235_vm8 = vcmp.gt.f32.partialorder %v5854_v22, 0.0  ;;  %v2491_v26 = vmul.f32 0.2, %v5854_v22 }
 0x17c   :  { %5533 = vst [vmem:[%s7034_s2 + $0x128] sm:$0xff] %v5045_v19   ;;  %v5040_v28 = vpack.c.bf16 %v2742_v25, %v2741_v18  ;;  %v2870_v29 = vsel %vm2358_vm7, %v1937_v15, %v2614_v21  ;;  %v2619_v30 = vmul.f32 0.2, %v5982_v23  ;;  %v1438_v31 = vpop.f32.mrf.mxu0  ;;  %v1950_v32 = vpop.f32.mrf.mxu1  ;;  %vm2363_vm9 = vcmp.gt.f32.partialorder %v5982_v23, 0.0 }
 0x17d   :  { %5597 = vst [vmem:[%s7034_s2 + $0x328] sm:$0xff] %v5365_v24   ;;  %v5360_v33 = vpack.c.bf16 %v2870_v29, %v2869_v27  ;;  %v2747_v34 = vsel %vm2235_vm8, %v5854_v22, %v2491_v26  ;;  %v2489_v35 = vmul.f32 0.2, %v1438_v31  ;;  %vm2233_vm10 = vcmp.gt.f32.partialorder %v1438_v31, 0.0 }
 0x17e   :  { %5532 = vst [vmem:[%s7034_s2 + $0x120] sm:$0xff] %v5040_v28   ;;  %v5855_v36 = vpop.f32.mrf.mxu0  ;;  %v5983_v37 = vpop.f32.mrf.mxu1  ;;  %v2875_v39 = vsel %vm2363_vm9, %v5982_v23, %v2619_v30  ;;  %vm2361_vm13 = vcmp.gt.f32.partialorder %v1950_v32, 0.0  ;;  %v2617_v40 = vmul.f32 0.2, %v1950_v32 }
 0x17f   :  { %5596 = vst [vmem:[%s7034_s2 + $0x320] sm:$0xff] %v5360_v33   ;;  %vm2236_vm11 = vcmp.gt.f32.partialorder %v5855_v36, 0.0  ;;  %v2492_v38 = vmul.f32 0.2, %v5855_v36  ;;  %vm2364_vm12 = vcmp.gt.f32.partialorder %v5983_v37, 0.0  ;;  %v2745_v46 = vsel %vm2233_vm10, %v1438_v31, %v2489_v35 }
 0x180   :  { %v2620_v41 = vmul.f32 0.2, %v5983_v37  ;;  %v1441_v42 = vpop.f32.mrf.mxu0  ;;  %v1953_v43 = vpop.f32.mrf.mxu1  ;;  %v2873_v55 = vsel %vm2361_vm13, %v1950_v32, %v2617_v40 }
 0x181   :  { %v2748_v44 = vsel %vm2236_vm11, %v5855_v36, %v2492_v38  ;;  %vm2234_vm14 = vcmp.gt.f32.partialorder %v1441_v42, 0.0  ;;  %v2490_v45 = vmul.f32 0.2, %v1441_v42  ;;  %vm2362_vm15 = vcmp.gt.f32.partialorder %v1953_v43, 0.0 }
 0x182   :  { %v5055_v47 = vpack.c.bf16 %v2748_v44, %v2747_v34  ;;  %v2876_v48 = vsel %vm2364_vm12, %v5983_v37, %v2620_v41  ;;  %v2618_v49 = vmul.f32 0.2, %v1953_v43  ;;  %v5858_v50 = vpop.f32.mrf.mxu0  ;;  %v5986_v51 = vpop.f32.mrf.mxu1 }
 0x183   :  { %v5375_v52 = vpack.c.bf16 %v2876_v48, %v2875_v39  ;;  %v2746_v53 = vsel %vm2234_vm14, %v1441_v42, %v2490_v45  ;;  %vm2239_vm0 = vcmp.gt.f32.partialorder %v5858_v50, 0.0  ;;  %v2495_v54 = vmul.f32 0.2, %v5858_v50 }
 0x184   :  { %5535 = vst [vmem:[%s7034_s2 + $0x138] sm:$0xff] %v5055_v47   ;;  %v5050_v56 = vpack.c.bf16 %v2746_v53, %v2745_v46  ;;  %v2874_v57 = vsel %vm2362_vm15, %v1953_v43, %v2618_v49  ;;  %v2623_v58 = vmul.f32 0.2, %v5986_v51  ;;  %v1454_v59 = vpop.f32.mrf.mxu0  ;;  %v1966_v60 = vpop.f32.mrf.mxu1  ;;  %vm2367_vm1 = vcmp.gt.f32.partialorder %v5986_v51, 0.0 }
 0x185   :  { %5599 = vst [vmem:[%s7034_s2 + $0x338] sm:$0xff] %v5375_v52   ;;  %v5370_v61 = vpack.c.bf16 %v2874_v57, %v2873_v55  ;;  %v2751_v62 = vsel %vm2239_vm0, %v5858_v50, %v2495_v54  ;;  %v2493_v63 = vmul.f32 0.2, %v1454_v59  ;;  %vm2237_vm2 = vcmp.gt.f32.partialorder %v1454_v59, 0.0 }
 0x186   :  { %5534 = vst [vmem:[%s7034_s2 + $0x130] sm:$0xff] %v5050_v56   ;;  %v5859_v0 = vpop.f32.mrf.mxu0  ;;  %v5987_v1 = vpop.f32.mrf.mxu1  ;;  %v2879_v3 = vsel %vm2367_vm1, %v5986_v51, %v2623_v58  ;;  %vm2365_vm5 = vcmp.gt.f32.partialorder %v1966_v60, 0.0  ;;  %v2621_v4 = vmul.f32 0.2, %v1966_v60 }
 0x187   :  { %5598 = vst [vmem:[%s7034_s2 + $0x330] sm:$0xff] %v5370_v61   ;;  %vm2240_vm3 = vcmp.gt.f32.partialorder %v5859_v0, 0.0  ;;  %v2496_v2 = vmul.f32 0.2, %v5859_v0  ;;  %vm2368_vm4 = vcmp.gt.f32.partialorder %v5987_v1, 0.0  ;;  %v2749_v10 = vsel %vm2237_vm2, %v1454_v59, %v2493_v63 }
 0x188   :  { %v2624_v5 = vmul.f32 0.2, %v5987_v1  ;;  %v1457_v6 = vpop.f32.mrf.mxu0  ;;  %v1969_v7 = vpop.f32.mrf.mxu1  ;;  %v2877_v19 = vsel %vm2365_vm5, %v1966_v60, %v2621_v4 }
 0x189   :  { %v2752_v8 = vsel %vm2240_vm3, %v5859_v0, %v2496_v2  ;;  %vm2238_vm6 = vcmp.gt.f32.partialorder %v1457_v6, 0.0  ;;  %v2494_v9 = vmul.f32 0.2, %v1457_v6  ;;  %vm2366_vm7 = vcmp.gt.f32.partialorder %v1969_v7, 0.0 }
 0x18a   :  { %v5065_v11 = vpack.c.bf16 %v2752_v8, %v2751_v62  ;;  %v2880_v12 = vsel %vm2368_vm4, %v5987_v1, %v2624_v5  ;;  %v2622_v13 = vmul.f32 0.2, %v1969_v7  ;;  %v5862_v14 = vpop.f32.mrf.mxu0  ;;  %v5990_v15 = vpop.f32.mrf.mxu1 }
 0x18b   :  { %v5385_v16 = vpack.c.bf16 %v2880_v12, %v2879_v3  ;;  %v2750_v17 = vsel %vm2238_vm6, %v1457_v6, %v2494_v9  ;;  %vm2243_vm8 = vcmp.gt.f32.partialorder %v5862_v14, 0.0  ;;  %v2499_v18 = vmul.f32 0.2, %v5862_v14 }
 0x18c   :  { %5537 = vst [vmem:[%s7034_s2 + $0x148] sm:$0xff] %v5065_v11   ;;  %v5060_v20 = vpack.c.bf16 %v2750_v17, %v2749_v10  ;;  %v2878_v21 = vsel %vm2366_vm7, %v1969_v7, %v2622_v13  ;;  %v2627_v22 = vmul.f32 0.2, %v5990_v15  ;;  %v1470_v23 = vpop.f32.mrf.mxu0  ;;  %v1982_v24 = vpop.f32.mrf.mxu1  ;;  %vm2371_vm9 = vcmp.gt.f32.partialorder %v5990_v15, 0.0 }
 0x18d   :  { %5601 = vst [vmem:[%s7034_s2 + $0x348] sm:$0xff] %v5385_v16   ;;  %v5380_v25 = vpack.c.bf16 %v2878_v21, %v2877_v19  ;;  %v2755_v26 = vsel %vm2243_vm8, %v5862_v14, %v2499_v18  ;;  %v2497_v27 = vmul.f32 0.2, %v1470_v23  ;;  %vm2241_vm10 = vcmp.gt.f32.partialorder %v1470_v23, 0.0 }
 0x18e   :  { %5536 = vst [vmem:[%s7034_s2 + $0x140] sm:$0xff] %v5060_v20   ;;  %v5863_v28 = vpop.f32.mrf.mxu0  ;;  %v5991_v29 = vpop.f32.mrf.mxu1  ;;  %v2883_v31 = vsel %vm2371_vm9, %v5990_v15, %v2627_v22  ;;  %vm2369_vm13 = vcmp.gt.f32.partialorder %v1982_v24, 0.0  ;;  %v2625_v32 = vmul.f32 0.2, %v1982_v24 }
 0x18f   :  { %5600 = vst [vmem:[%s7034_s2 + $0x340] sm:$0xff] %v5380_v25   ;;  %vm2244_vm11 = vcmp.gt.f32.partialorder %v5863_v28, 0.0  ;;  %v2500_v30 = vmul.f32 0.2, %v5863_v28  ;;  %vm2372_vm12 = vcmp.gt.f32.partialorder %v5991_v29, 0.0  ;;  %v2753_v38 = vsel %vm2241_vm10, %v1470_v23, %v2497_v27 }
 0x190   :  { %v2628_v33 = vmul.f32 0.2, %v5991_v29  ;;  %v1473_v34 = vpop.f32.mrf.mxu0  ;;  %v1985_v35 = vpop.f32.mrf.mxu1  ;;  %v2881_v47 = vsel %vm2369_vm13, %v1982_v24, %v2625_v32 }
 0x191   :  { %v2756_v36 = vsel %vm2244_vm11, %v5863_v28, %v2500_v30  ;;  %vm2242_vm14 = vcmp.gt.f32.partialorder %v1473_v34, 0.0  ;;  %v2498_v37 = vmul.f32 0.2, %v1473_v34  ;;  %vm2370_vm15 = vcmp.gt.f32.partialorder %v1985_v35, 0.0 }
 0x192   :  { %v5075_v39 = vpack.c.bf16 %v2756_v36, %v2755_v26  ;;  %v2884_v40 = vsel %vm2372_vm12, %v5991_v29, %v2628_v33  ;;  %v2626_v41 = vmul.f32 0.2, %v1985_v35  ;;  %v5866_v42 = vpop.f32.mrf.mxu0  ;;  %v5994_v43 = vpop.f32.mrf.mxu1 }
 0x193   :  { %v5395_v44 = vpack.c.bf16 %v2884_v40, %v2883_v31  ;;  %v2754_v45 = vsel %vm2242_vm14, %v1473_v34, %v2498_v37  ;;  %vm2247_vm0 = vcmp.gt.f32.partialorder %v5866_v42, 0.0  ;;  %v2503_v46 = vmul.f32 0.2, %v5866_v42 }
 0x194   :  { %5539 = vst [vmem:[%s7034_s2 + $0x158] sm:$0xff] %v5075_v39   ;;  %v5070_v48 = vpack.c.bf16 %v2754_v45, %v2753_v38  ;;  %v2882_v49 = vsel %vm2370_vm15, %v1985_v35, %v2626_v41  ;;  %v2631_v50 = vmul.f32 0.2, %v5994_v43  ;;  %v1486_v51 = vpop.f32.mrf.mxu0  ;;  %v1998_v52 = vpop.f32.mrf.mxu1  ;;  %vm2375_vm1 = vcmp.gt.f32.partialorder %v5994_v43, 0.0 }
 0x195   :  { %5603 = vst [vmem:[%s7034_s2 + $0x358] sm:$0xff] %v5395_v44   ;;  %v5390_v53 = vpack.c.bf16 %v2882_v49, %v2881_v47  ;;  %v2759_v54 = vsel %vm2247_vm0, %v5866_v42, %v2503_v46  ;;  %v2501_v55 = vmul.f32 0.2, %v1486_v51  ;;  %vm2245_vm2 = vcmp.gt.f32.partialorder %v1486_v51, 0.0 }
 0x196   :  { %5538 = vst [vmem:[%s7034_s2 + $0x150] sm:$0xff] %v5070_v48   ;;  %v5867_v56 = vpop.f32.mrf.mxu0  ;;  %v5995_v57 = vpop.f32.mrf.mxu1  ;;  %v2887_v59 = vsel %vm2375_vm1, %v5994_v43, %v2631_v50  ;;  %vm2373_vm5 = vcmp.gt.f32.partialorder %v1998_v52, 0.0  ;;  %v2629_v60 = vmul.f32 0.2, %v1998_v52 }
 0x197   :  { %5602 = vst [vmem:[%s7034_s2 + $0x350] sm:$0xff] %v5390_v53   ;;  %vm2248_vm3 = vcmp.gt.f32.partialorder %v5867_v56, 0.0  ;;  %v2504_v58 = vmul.f32 0.2, %v5867_v56  ;;  %vm2376_vm4 = vcmp.gt.f32.partialorder %v5995_v57, 0.0  ;;  %v2757_v2 = vsel %vm2245_vm2, %v1486_v51, %v2501_v55 }
 0x198   :  { %v2632_v61 = vmul.f32 0.2, %v5995_v57  ;;  %v1489_v62 = vpop.f32.mrf.mxu0  ;;  %v2001_v63 = vpop.f32.mrf.mxu1  ;;  %v2885_v11 = vsel %vm2373_vm5, %v1998_v52, %v2629_v60 }
 0x199   :  { %v2760_v0 = vsel %vm2248_vm3, %v5867_v56, %v2504_v58  ;;  %vm2246_vm6 = vcmp.gt.f32.partialorder %v1489_v62, 0.0  ;;  %v2502_v1 = vmul.f32 0.2, %v1489_v62  ;;  %vm2374_vm7 = vcmp.gt.f32.partialorder %v2001_v63, 0.0 }
 0x19a   :  { %v5085_v3 = vpack.c.bf16 %v2760_v0, %v2759_v54  ;;  %v2888_v4 = vsel %vm2376_vm4, %v5995_v57, %v2632_v61  ;;  %v2630_v5 = vmul.f32 0.2, %v2001_v63  ;;  %v5870_v6 = vpop.f32.mrf.mxu0  ;;  %v5998_v7 = vpop.f32.mrf.mxu1 }
 0x19b   :  { %v5405_v8 = vpack.c.bf16 %v2888_v4, %v2887_v59  ;;  %v2758_v9 = vsel %vm2246_vm6, %v1489_v62, %v2502_v1  ;;  %vm2251_vm8 = vcmp.gt.f32.partialorder %v5870_v6, 0.0  ;;  %v2507_v10 = vmul.f32 0.2, %v5870_v6 }
 0x19c   :  { %5541 = vst [vmem:[%s7034_s2 + $0x168] sm:$0xff] %v5085_v3   ;;  %v5080_v12 = vpack.c.bf16 %v2758_v9, %v2757_v2  ;;  %v2886_v13 = vsel %vm2374_vm7, %v2001_v63, %v2630_v5  ;;  %v2635_v14 = vmul.f32 0.2, %v5998_v7  ;;  %v1502_v15 = vpop.f32.mrf.mxu0  ;;  %v2014_v16 = vpop.f32.mrf.mxu1  ;;  %vm2379_vm9 = vcmp.gt.f32.partialorder %v5998_v7, 0.0 }
 0x19d   :  { %5605 = vst [vmem:[%s7034_s2 + $0x368] sm:$0xff] %v5405_v8   ;;  %v5400_v17 = vpack.c.bf16 %v2886_v13, %v2885_v11  ;;  %v2763_v18 = vsel %vm2251_vm8, %v5870_v6, %v2507_v10  ;;  %v2505_v19 = vmul.f32 0.2, %v1502_v15  ;;  %vm2249_vm10 = vcmp.gt.f32.partialorder %v1502_v15, 0.0 }
 0x19e   :  { %5540 = vst [vmem:[%s7034_s2 + $0x160] sm:$0xff] %v5080_v12   ;;  %v5871_v20 = vpop.f32.mrf.mxu0  ;;  %v5999_v21 = vpop.f32.mrf.mxu1  ;;  %v2891_v23 = vsel %vm2379_vm9, %v5998_v7, %v2635_v14  ;;  %vm2377_vm13 = vcmp.gt.f32.partialorder %v2014_v16, 0.0  ;;  %v2633_v24 = vmul.f32 0.2, %v2014_v16 }
 0x19f   :  { %5604 = vst [vmem:[%s7034_s2 + $0x360] sm:$0xff] %v5400_v17   ;;  %vm2252_vm11 = vcmp.gt.f32.partialorder %v5871_v20, 0.0  ;;  %v2508_v22 = vmul.f32 0.2, %v5871_v20  ;;  %vm2380_vm12 = vcmp.gt.f32.partialorder %v5999_v21, 0.0  ;;  %v2761_v30 = vsel %vm2249_vm10, %v1502_v15, %v2505_v19 }
 0x1a0   :  { %v2636_v25 = vmul.f32 0.2, %v5999_v21  ;;  %v1505_v26 = vpop.f32.mrf.mxu0  ;;  %v2017_v27 = vpop.f32.mrf.mxu1  ;;  %v2889_v39 = vsel %vm2377_vm13, %v2014_v16, %v2633_v24 }
 0x1a1   :  { %v2764_v28 = vsel %vm2252_vm11, %v5871_v20, %v2508_v22  ;;  %vm2250_vm14 = vcmp.gt.f32.partialorder %v1505_v26, 0.0  ;;  %v2506_v29 = vmul.f32 0.2, %v1505_v26  ;;  %vm2378_vm15 = vcmp.gt.f32.partialorder %v2017_v27, 0.0 }
 0x1a2   :  { %v5095_v31 = vpack.c.bf16 %v2764_v28, %v2763_v18  ;;  %v2892_v32 = vsel %vm2380_vm12, %v5999_v21, %v2636_v25  ;;  %v2634_v33 = vmul.f32 0.2, %v2017_v27  ;;  %v5874_v34 = vpop.f32.mrf.mxu0  ;;  %v6002_v35 = vpop.f32.mrf.mxu1 }
 0x1a3   :  { %v5415_v36 = vpack.c.bf16 %v2892_v32, %v2891_v23  ;;  %v2762_v37 = vsel %vm2250_vm14, %v1505_v26, %v2506_v29  ;;  %vm2255_vm0 = vcmp.gt.f32.partialorder %v5874_v34, 0.0  ;;  %v2511_v38 = vmul.f32 0.2, %v5874_v34 }
 0x1a4   :  { %5543 = vst [vmem:[%s7034_s2 + $0x178] sm:$0xff] %v5095_v31   ;;  %v5090_v40 = vpack.c.bf16 %v2762_v37, %v2761_v30  ;;  %v2890_v41 = vsel %vm2378_vm15, %v2017_v27, %v2634_v33  ;;  %v2639_v42 = vmul.f32 0.2, %v6002_v35  ;;  %v1518_v43 = vpop.f32.mrf.mxu0  ;;  %v2030_v44 = vpop.f32.mrf.mxu1  ;;  %vm2383_vm1 = vcmp.gt.f32.partialorder %v6002_v35, 0.0 }
 0x1a5   :  { %5607 = vst [vmem:[%s7034_s2 + $0x378] sm:$0xff] %v5415_v36   ;;  %v5410_v45 = vpack.c.bf16 %v2890_v41, %v2889_v39  ;;  %v2767_v46 = vsel %vm2255_vm0, %v5874_v34, %v2511_v38  ;;  %v2509_v47 = vmul.f32 0.2, %v1518_v43  ;;  %vm2253_vm2 = vcmp.gt.f32.partialorder %v1518_v43, 0.0 }
 0x1a6   :  { %5542 = vst [vmem:[%s7034_s2 + $0x170] sm:$0xff] %v5090_v40   ;;  %v5875_v48 = vpop.f32.mrf.mxu0  ;;  %v6003_v49 = vpop.f32.mrf.mxu1  ;;  %v2895_v51 = vsel %vm2383_vm1, %v6002_v35, %v2639_v42  ;;  %vm2381_vm5 = vcmp.gt.f32.partialorder %v2030_v44, 0.0  ;;  %v2637_v52 = vmul.f32 0.2, %v2030_v44 }
 0x1a7   :  { %5606 = vst [vmem:[%s7034_s2 + $0x370] sm:$0xff] %v5410_v45   ;;  %vm2256_vm3 = vcmp.gt.f32.partialorder %v5875_v48, 0.0  ;;  %v2512_v50 = vmul.f32 0.2, %v5875_v48  ;;  %vm2384_vm4 = vcmp.gt.f32.partialorder %v6003_v49, 0.0  ;;  %v2765_v58 = vsel %vm2253_vm2, %v1518_v43, %v2509_v47 }
 0x1a8   :  { %v2640_v53 = vmul.f32 0.2, %v6003_v49  ;;  %v1521_v54 = vpop.f32.mrf.mxu0  ;;  %v2033_v55 = vpop.f32.mrf.mxu1  ;;  %v2893_v3 = vsel %vm2381_vm5, %v2030_v44, %v2637_v52 }
 0x1a9   :  { %v2768_v56 = vsel %vm2256_vm3, %v5875_v48, %v2512_v50  ;;  %vm2254_vm6 = vcmp.gt.f32.partialorder %v1521_v54, 0.0  ;;  %v2510_v57 = vmul.f32 0.2, %v1521_v54  ;;  %vm2382_vm7 = vcmp.gt.f32.partialorder %v2033_v55, 0.0 }
 0x1aa   :  { %v5105_v59 = vpack.c.bf16 %v2768_v56, %v2767_v46  ;;  %v2896_v60 = vsel %vm2384_vm4, %v6003_v49, %v2640_v53  ;;  %v2638_v61 = vmul.f32 0.2, %v2033_v55  ;;  %v5878_v62 = vpop.f32.mrf.mxu0  ;;  %v6006_v63 = vpop.f32.mrf.mxu1 }
 0x1ab   :  { %v5425_v0 = vpack.c.bf16 %v2896_v60, %v2895_v51  ;;  %v2766_v1 = vsel %vm2254_vm6, %v1521_v54, %v2510_v57  ;;  %vm2259_vm8 = vcmp.gt.f32.partialorder %v5878_v62, 0.0  ;;  %v2515_v2 = vmul.f32 0.2, %v5878_v62 }
 0x1ac   :  { %5545 = vst [vmem:[%s7034_s2 + $0x188] sm:$0xff] %v5105_v59   ;;  %v5100_v4 = vpack.c.bf16 %v2766_v1, %v2765_v58  ;;  %v2894_v5 = vsel %vm2382_vm7, %v2033_v55, %v2638_v61  ;;  %v2643_v6 = vmul.f32 0.2, %v6006_v63  ;;  %v1534_v7 = vpop.f32.mrf.mxu0  ;;  %v2046_v8 = vpop.f32.mrf.mxu1  ;;  %vm2387_vm9 = vcmp.gt.f32.partialorder %v6006_v63, 0.0 }
 0x1ad   :  { %5609 = vst [vmem:[%s7034_s2 + $0x388] sm:$0xff] %v5425_v0   ;;  %v5420_v9 = vpack.c.bf16 %v2894_v5, %v2893_v3  ;;  %v2771_v10 = vsel %vm2259_vm8, %v5878_v62, %v2515_v2  ;;  %v2513_v11 = vmul.f32 0.2, %v1534_v7  ;;  %vm2257_vm10 = vcmp.gt.f32.partialorder %v1534_v7, 0.0 }
 0x1ae   :  { %5544 = vst [vmem:[%s7034_s2 + $0x180] sm:$0xff] %v5100_v4   ;;  %v5879_v12 = vpop.f32.mrf.mxu0  ;;  %v6007_v13 = vpop.f32.mrf.mxu1  ;;  %v2899_v15 = vsel %vm2387_vm9, %v6006_v63, %v2643_v6  ;;  %vm2385_vm13 = vcmp.gt.f32.partialorder %v2046_v8, 0.0  ;;  %v2641_v16 = vmul.f32 0.2, %v2046_v8 }
 0x1af   :  { %5608 = vst [vmem:[%s7034_s2 + $0x380] sm:$0xff] %v5420_v9   ;;  %vm2260_vm11 = vcmp.gt.f32.partialorder %v5879_v12, 0.0  ;;  %v2516_v14 = vmul.f32 0.2, %v5879_v12  ;;  %vm2388_vm12 = vcmp.gt.f32.partialorder %v6007_v13, 0.0  ;;  %v2769_v22 = vsel %vm2257_vm10, %v1534_v7, %v2513_v11 }
 0x1b0   :  { %v2644_v17 = vmul.f32 0.2, %v6007_v13  ;;  %v1537_v18 = vpop.f32.mrf.mxu0  ;;  %v2049_v19 = vpop.f32.mrf.mxu1  ;;  %v2897_v31 = vsel %vm2385_vm13, %v2046_v8, %v2641_v16 }
 0x1b1   :  { %v2772_v20 = vsel %vm2260_vm11, %v5879_v12, %v2516_v14  ;;  %vm2258_vm14 = vcmp.gt.f32.partialorder %v1537_v18, 0.0  ;;  %v2514_v21 = vmul.f32 0.2, %v1537_v18  ;;  %vm2386_vm15 = vcmp.gt.f32.partialorder %v2049_v19, 0.0 }
 0x1b2   :  { %v5115_v23 = vpack.c.bf16 %v2772_v20, %v2771_v10  ;;  %v2900_v24 = vsel %vm2388_vm12, %v6007_v13, %v2644_v17  ;;  %v2642_v25 = vmul.f32 0.2, %v2049_v19  ;;  %v5882_v26 = vpop.f32.mrf.mxu0  ;;  %v6010_v27 = vpop.f32.mrf.mxu1 }
 0x1b3   :  { %v5435_v28 = vpack.c.bf16 %v2900_v24, %v2899_v15  ;;  %v2770_v29 = vsel %vm2258_vm14, %v1537_v18, %v2514_v21  ;;  %vm2263_vm0 = vcmp.gt.f32.partialorder %v5882_v26, 0.0  ;;  %v2519_v30 = vmul.f32 0.2, %v5882_v26 }
 0x1b4   :  { %5547 = vst [vmem:[%s7034_s2 + $0x198] sm:$0xff] %v5115_v23   ;;  %v5110_v32 = vpack.c.bf16 %v2770_v29, %v2769_v22  ;;  %v2898_v33 = vsel %vm2386_vm15, %v2049_v19, %v2642_v25  ;;  %v2647_v34 = vmul.f32 0.2, %v6010_v27  ;;  %v1550_v35 = vpop.f32.mrf.mxu0  ;;  %v2062_v36 = vpop.f32.mrf.mxu1  ;;  %vm2391_vm1 = vcmp.gt.f32.partialorder %v6010_v27, 0.0 }
 0x1b5   :  { %5611 = vst [vmem:[%s7034_s2 + $0x398] sm:$0xff] %v5435_v28   ;;  %v5430_v37 = vpack.c.bf16 %v2898_v33, %v2897_v31  ;;  %v2775_v38 = vsel %vm2263_vm0, %v5882_v26, %v2519_v30  ;;  %v2517_v39 = vmul.f32 0.2, %v1550_v35  ;;  %vm2261_vm2 = vcmp.gt.f32.partialorder %v1550_v35, 0.0 }
 0x1b6   :  { %5546 = vst [vmem:[%s7034_s2 + $0x190] sm:$0xff] %v5110_v32   ;;  %v5883_v40 = vpop.f32.mrf.mxu0  ;;  %v6011_v41 = vpop.f32.mrf.mxu1  ;;  %v2903_v43 = vsel %vm2391_vm1, %v6010_v27, %v2647_v34  ;;  %vm2389_vm5 = vcmp.gt.f32.partialorder %v2062_v36, 0.0  ;;  %v2645_v44 = vmul.f32 0.2, %v2062_v36 }
 0x1b7   :  { %5610 = vst [vmem:[%s7034_s2 + $0x390] sm:$0xff] %v5430_v37   ;;  %vm2264_vm3 = vcmp.gt.f32.partialorder %v5883_v40, 0.0  ;;  %v2520_v42 = vmul.f32 0.2, %v5883_v40  ;;  %vm2392_vm4 = vcmp.gt.f32.partialorder %v6011_v41, 0.0  ;;  %v2773_v50 = vsel %vm2261_vm2, %v1550_v35, %v2517_v39 }
 0x1b8   :  { %v2648_v45 = vmul.f32 0.2, %v6011_v41  ;;  %v1553_v46 = vpop.f32.mrf.mxu0  ;;  %v2065_v47 = vpop.f32.mrf.mxu1  ;;  %v2901_v59 = vsel %vm2389_vm5, %v2062_v36, %v2645_v44 }
 0x1b9   :  { %v2776_v48 = vsel %vm2264_vm3, %v5883_v40, %v2520_v42  ;;  %vm2262_vm6 = vcmp.gt.f32.partialorder %v1553_v46, 0.0  ;;  %v2518_v49 = vmul.f32 0.2, %v1553_v46  ;;  %vm2390_vm7 = vcmp.gt.f32.partialorder %v2065_v47, 0.0 }
 0x1ba   :  { %v5125_v51 = vpack.c.bf16 %v2776_v48, %v2775_v38  ;;  %v2904_v52 = vsel %vm2392_vm4, %v6011_v41, %v2648_v45  ;;  %v2646_v53 = vmul.f32 0.2, %v2065_v47  ;;  %v5886_v54 = vpop.f32.mrf.mxu0  ;;  %v6014_v55 = vpop.f32.mrf.mxu1 }
 0x1bb   :  { %v5445_v56 = vpack.c.bf16 %v2904_v52, %v2903_v43  ;;  %v2774_v57 = vsel %vm2262_vm6, %v1553_v46, %v2518_v49  ;;  %vm2267_vm8 = vcmp.gt.f32.partialorder %v5886_v54, 0.0  ;;  %v2523_v58 = vmul.f32 0.2, %v5886_v54 }
 0x1bc   :  { %5549 = vst [vmem:[%s7034_s2 + $0x1a8] sm:$0xff] %v5125_v51   ;;  %v5120_v60 = vpack.c.bf16 %v2774_v57, %v2773_v50  ;;  %v2902_v61 = vsel %vm2390_vm7, %v2065_v47, %v2646_v53  ;;  %v2651_v62 = vmul.f32 0.2, %v6014_v55  ;;  %v1566_v63 = vpop.f32.mrf.mxu0  ;;  %v2078_v0 = vpop.f32.mrf.mxu1  ;;  %vm2395_vm9 = vcmp.gt.f32.partialorder %v6014_v55, 0.0 }
 0x1bd   :  { %5613 = vst [vmem:[%s7034_s2 + $0x3a8] sm:$0xff] %v5445_v56   ;;  %v5440_v1 = vpack.c.bf16 %v2902_v61, %v2901_v59  ;;  %v2779_v2 = vsel %vm2267_vm8, %v5886_v54, %v2523_v58  ;;  %v2521_v3 = vmul.f32 0.2, %v1566_v63  ;;  %vm2265_vm10 = vcmp.gt.f32.partialorder %v1566_v63, 0.0 }
 0x1be   :  { %5548 = vst [vmem:[%s7034_s2 + $0x1a0] sm:$0xff] %v5120_v60   ;;  %v5887_v4 = vpop.f32.mrf.mxu0  ;;  %v6015_v5 = vpop.f32.mrf.mxu1  ;;  %v2907_v7 = vsel %vm2395_vm9, %v6014_v55, %v2651_v62  ;;  %vm2393_vm13 = vcmp.gt.f32.partialorder %v2078_v0, 0.0  ;;  %v2649_v8 = vmul.f32 0.2, %v2078_v0 }
 0x1bf   :  { %5612 = vst [vmem:[%s7034_s2 + $0x3a0] sm:$0xff] %v5440_v1   ;;  %vm2268_vm11 = vcmp.gt.f32.partialorder %v5887_v4, 0.0  ;;  %v2524_v6 = vmul.f32 0.2, %v5887_v4  ;;  %vm2396_vm12 = vcmp.gt.f32.partialorder %v6015_v5, 0.0  ;;  %v2777_v14 = vsel %vm2265_vm10, %v1566_v63, %v2521_v3 }
 0x1c0   :  { %v2652_v9 = vmul.f32 0.2, %v6015_v5  ;;  %v1569_v10 = vpop.f32.mrf.mxu0  ;;  %v2081_v11 = vpop.f32.mrf.mxu1  ;;  %v2905_v23 = vsel %vm2393_vm13, %v2078_v0, %v2649_v8 }
 0x1c1   :  { %v2780_v12 = vsel %vm2268_vm11, %v5887_v4, %v2524_v6  ;;  %vm2266_vm14 = vcmp.gt.f32.partialorder %v1569_v10, 0.0  ;;  %v2522_v13 = vmul.f32 0.2, %v1569_v10  ;;  %vm2394_vm15 = vcmp.gt.f32.partialorder %v2081_v11, 0.0 }
 0x1c2   :  { %v5135_v15 = vpack.c.bf16 %v2780_v12, %v2779_v2  ;;  %v2908_v16 = vsel %vm2396_vm12, %v6015_v5, %v2652_v9  ;;  %v2650_v17 = vmul.f32 0.2, %v2081_v11  ;;  %v5890_v18 = vpop.f32.mrf.mxu0  ;;  %v6018_v19 = vpop.f32.mrf.mxu1 }
 0x1c3   :  { %v5455_v20 = vpack.c.bf16 %v2908_v16, %v2907_v7  ;;  %v2778_v21 = vsel %vm2266_vm14, %v1569_v10, %v2522_v13  ;;  %vm2271_vm0 = vcmp.gt.f32.partialorder %v5890_v18, 0.0  ;;  %v2527_v22 = vmul.f32 0.2, %v5890_v18 }
 0x1c4   :  { %5551 = vst [vmem:[%s7034_s2 + $0x1b8] sm:$0xff] %v5135_v15   ;;  %v5130_v24 = vpack.c.bf16 %v2778_v21, %v2777_v14  ;;  %v2906_v25 = vsel %vm2394_vm15, %v2081_v11, %v2650_v17  ;;  %v2655_v26 = vmul.f32 0.2, %v6018_v19  ;;  %v1582_v27 = vpop.f32.mrf.mxu0  ;;  %v2094_v28 = vpop.f32.mrf.mxu1  ;;  %vm2399_vm1 = vcmp.gt.f32.partialorder %v6018_v19, 0.0 }
 0x1c5   :  { %5615 = vst [vmem:[%s7034_s2 + $0x3b8] sm:$0xff] %v5455_v20   ;;  %v5450_v29 = vpack.c.bf16 %v2906_v25, %v2905_v23  ;;  %v2783_v30 = vsel %vm2271_vm0, %v5890_v18, %v2527_v22  ;;  %v2525_v31 = vmul.f32 0.2, %v1582_v27  ;;  %vm2269_vm2 = vcmp.gt.f32.partialorder %v1582_v27, 0.0 }
 0x1c6   :  { %5550 = vst [vmem:[%s7034_s2 + $0x1b0] sm:$0xff] %v5130_v24   ;;  %v5891_v32 = vpop.f32.mrf.mxu0  ;;  %v6019_v33 = vpop.f32.mrf.mxu1  ;;  %v2911_v35 = vsel %vm2399_vm1, %v6018_v19, %v2655_v26  ;;  %vm2397_vm5 = vcmp.gt.f32.partialorder %v2094_v28, 0.0  ;;  %v2653_v36 = vmul.f32 0.2, %v2094_v28 }
 0x1c7   :  { %5614 = vst [vmem:[%s7034_s2 + $0x3b0] sm:$0xff] %v5450_v29   ;;  %vm2272_vm3 = vcmp.gt.f32.partialorder %v5891_v32, 0.0  ;;  %v2528_v34 = vmul.f32 0.2, %v5891_v32  ;;  %vm2400_vm4 = vcmp.gt.f32.partialorder %v6019_v33, 0.0  ;;  %v2781_v42 = vsel %vm2269_vm2, %v1582_v27, %v2525_v31 }
 0x1c8   :  { %v2656_v37 = vmul.f32 0.2, %v6019_v33  ;;  %v1585_v38 = vpop.f32.mrf.mxu0  ;;  %v2097_v39 = vpop.f32.mrf.mxu1  ;;  %v2909_v51 = vsel %vm2397_vm5, %v2094_v28, %v2653_v36 }
 0x1c9   :  { %v2784_v40 = vsel %vm2272_vm3, %v5891_v32, %v2528_v34  ;;  %vm2270_vm6 = vcmp.gt.f32.partialorder %v1585_v38, 0.0  ;;  %v2526_v41 = vmul.f32 0.2, %v1585_v38  ;;  %vm2398_vm7 = vcmp.gt.f32.partialorder %v2097_v39, 0.0 }
 0x1ca   :  { %v5145_v43 = vpack.c.bf16 %v2784_v40, %v2783_v30  ;;  %v2912_v44 = vsel %vm2400_vm4, %v6019_v33, %v2656_v37  ;;  %v2654_v45 = vmul.f32 0.2, %v2097_v39  ;;  %v5894_v46 = vpop.f32.mrf.mxu0  ;;  %v6022_v47 = vpop.f32.mrf.mxu1 }
 0x1cb   :  { %v5465_v48 = vpack.c.bf16 %v2912_v44, %v2911_v35  ;;  %v2782_v49 = vsel %vm2270_vm6, %v1585_v38, %v2526_v41  ;;  %vm2275_vm8 = vcmp.gt.f32.partialorder %v5894_v46, 0.0  ;;  %v2531_v50 = vmul.f32 0.2, %v5894_v46 }
 0x1cc   :  { %5553 = vst [vmem:[%s7034_s2 + $0x1c8] sm:$0xff] %v5145_v43   ;;  %v5140_v52 = vpack.c.bf16 %v2782_v49, %v2781_v42  ;;  %v2910_v53 = vsel %vm2398_vm7, %v2097_v39, %v2654_v45  ;;  %v2659_v54 = vmul.f32 0.2, %v6022_v47  ;;  %v1598_v55 = vpop.f32.mrf.mxu0  ;;  %v2110_v56 = vpop.f32.mrf.mxu1  ;;  %vm2403_vm9 = vcmp.gt.f32.partialorder %v6022_v47, 0.0 }
 0x1cd   :  { %5617 = vst [vmem:[%s7034_s2 + $0x3c8] sm:$0xff] %v5465_v48   ;;  %v5460_v57 = vpack.c.bf16 %v2910_v53, %v2909_v51  ;;  %v2787_v58 = vsel %vm2275_vm8, %v5894_v46, %v2531_v50  ;;  %v2529_v59 = vmul.f32 0.2, %v1598_v55  ;;  %vm2273_vm10 = vcmp.gt.f32.partialorder %v1598_v55, 0.0 }
 0x1ce   :  { %5552 = vst [vmem:[%s7034_s2 + $0x1c0] sm:$0xff] %v5140_v52   ;;  %v5895_v60 = vpop.f32.mrf.mxu0  ;;  %v6023_v61 = vpop.f32.mrf.mxu1  ;;  %v2915_v63 = vsel %vm2403_vm9, %v6022_v47, %v2659_v54  ;;  %vm2401_vm13 = vcmp.gt.f32.partialorder %v2110_v56, 0.0  ;;  %v2657_v0 = vmul.f32 0.2, %v2110_v56 }
 0x1cf   :  { %5616 = vst [vmem:[%s7034_s2 + $0x3c0] sm:$0xff] %v5460_v57   ;;  %vm2276_vm11 = vcmp.gt.f32.partialorder %v5895_v60, 0.0  ;;  %v2532_v62 = vmul.f32 0.2, %v5895_v60  ;;  %vm2404_vm12 = vcmp.gt.f32.partialorder %v6023_v61, 0.0  ;;  %v2785_v6 = vsel %vm2273_vm10, %v1598_v55, %v2529_v59 }
 0x1d0   :  { %v2660_v1 = vmul.f32 0.2, %v6023_v61  ;;  %v1601_v2 = vpop.f32.mrf.mxu0  ;;  %v2113_v3 = vpop.f32.mrf.mxu1  ;;  %v2913_v15 = vsel %vm2401_vm13, %v2110_v56, %v2657_v0 }
 0x1d1   :  { %v2788_v4 = vsel %vm2276_vm11, %v5895_v60, %v2532_v62  ;;  %vm2274_vm14 = vcmp.gt.f32.partialorder %v1601_v2, 0.0  ;;  %v2530_v5 = vmul.f32 0.2, %v1601_v2  ;;  %vm2402_vm15 = vcmp.gt.f32.partialorder %v2113_v3, 0.0 }
 0x1d2   :  { %v5155_v7 = vpack.c.bf16 %v2788_v4, %v2787_v58  ;;  %v2916_v8 = vsel %vm2404_vm12, %v6023_v61, %v2660_v1  ;;  %v2658_v9 = vmul.f32 0.2, %v2113_v3  ;;  %v5898_v10 = vpop.f32.mrf.mxu0  ;;  %v6026_v11 = vpop.f32.mrf.mxu1 }
 0x1d3   :  { %v5475_v12 = vpack.c.bf16 %v2916_v8, %v2915_v63  ;;  %v2786_v13 = vsel %vm2274_vm14, %v1601_v2, %v2530_v5  ;;  %vm2279_vm0 = vcmp.gt.f32.partialorder %v5898_v10, 0.0  ;;  %v2535_v14 = vmul.f32 0.2, %v5898_v10 }
 0x1d4   :  { %5555 = vst [vmem:[%s7034_s2 + $0x1d8] sm:$0xff] %v5155_v7   ;;  %v5150_v16 = vpack.c.bf16 %v2786_v13, %v2785_v6  ;;  %v2914_v17 = vsel %vm2402_vm15, %v2113_v3, %v2658_v9  ;;  %v2663_v18 = vmul.f32 0.2, %v6026_v11  ;;  %v1614_v19 = vpop.f32.mrf.mxu0  ;;  %v2126_v20 = vpop.f32.mrf.mxu1  ;;  %vm2407_vm1 = vcmp.gt.f32.partialorder %v6026_v11, 0.0 }
 0x1d5   :  { %5619 = vst [vmem:[%s7034_s2 + $0x3d8] sm:$0xff] %v5475_v12   ;;  %v5470_v21 = vpack.c.bf16 %v2914_v17, %v2913_v15  ;;  %v2791_v22 = vsel %vm2279_vm0, %v5898_v10, %v2535_v14  ;;  %v2533_v23 = vmul.f32 0.2, %v1614_v19  ;;  %vm2277_vm2 = vcmp.gt.f32.partialorder %v1614_v19, 0.0 }
 0x1d6   :  { %5554 = vst [vmem:[%s7034_s2 + $0x1d0] sm:$0xff] %v5150_v16   ;;  %v5899_v24 = vpop.f32.mrf.mxu0  ;;  %v6027_v25 = vpop.f32.mrf.mxu1  ;;  %v2919_v27 = vsel %vm2407_vm1, %v6026_v11, %v2663_v18  ;;  %vm2405_vm5 = vcmp.gt.f32.partialorder %v2126_v20, 0.0  ;;  %v2661_v28 = vmul.f32 0.2, %v2126_v20 }
 0x1d7   :  { %5618 = vst [vmem:[%s7034_s2 + $0x3d0] sm:$0xff] %v5470_v21   ;;  %vm2280_vm3 = vcmp.gt.f32.partialorder %v5899_v24, 0.0  ;;  %v2536_v26 = vmul.f32 0.2, %v5899_v24  ;;  %vm2408_vm4 = vcmp.gt.f32.partialorder %v6027_v25, 0.0  ;;  %v2789_v34 = vsel %vm2277_vm2, %v1614_v19, %v2533_v23 }
 0x1d8   :  { %v2664_v29 = vmul.f32 0.2, %v6027_v25  ;;  %v1617_v30 = vpop.f32.mrf.mxu0  ;;  %v2129_v31 = vpop.f32.mrf.mxu1  ;;  %v2917_v43 = vsel %vm2405_vm5, %v2126_v20, %v2661_v28 }
 0x1d9   :  { %v2792_v32 = vsel %vm2280_vm3, %v5899_v24, %v2536_v26  ;;  %vm2278_vm6 = vcmp.gt.f32.partialorder %v1617_v30, 0.0  ;;  %v2534_v33 = vmul.f32 0.2, %v1617_v30  ;;  %vm2406_vm7 = vcmp.gt.f32.partialorder %v2129_v31, 0.0 }
 0x1da   :  { %v5165_v35 = vpack.c.bf16 %v2792_v32, %v2791_v22  ;;  %v2920_v36 = vsel %vm2408_vm4, %v6027_v25, %v2664_v29  ;;  %v2662_v37 = vmul.f32 0.2, %v2129_v31  ;;  %v5902_v38 = vpop.f32.mrf.mxu0  ;;  %v6030_v39 = vpop.f32.mrf.mxu1 }
 0x1db   :  { %v5485_v40 = vpack.c.bf16 %v2920_v36, %v2919_v27  ;;  %v2790_v41 = vsel %vm2278_vm6, %v1617_v30, %v2534_v33  ;;  %vm2283_vm8 = vcmp.gt.f32.partialorder %v5902_v38, 0.0  ;;  %v2539_v42 = vmul.f32 0.2, %v5902_v38 }
 0x1dc   :  { %5557 = vst [vmem:[%s7034_s2 + $0x1e8] sm:$0xff] %v5165_v35   ;;  %v5160_v44 = vpack.c.bf16 %v2790_v41, %v2789_v34  ;;  %v2918_v45 = vsel %vm2406_vm7, %v2129_v31, %v2662_v37  ;;  %v1630_v46 = vpop.f32.mrf.mxu0  ;;  %v2142_v47 = vpop.f32.mrf.mxu1  ;;  %vm2411_vm9 = vcmp.gt.f32.partialorder %v6030_v39, 0.0  ;;  %v2667_v50 = vmul.f32 0.2, %v6030_v39 }
 0x1dd   :  { %5621 = vst [vmem:[%s7034_s2 + $0x3e8] sm:$0xff] %v5485_v40   ;;  %v5480_v48 = vpack.c.bf16 %v2918_v45, %v2917_v43  ;;  %v2795_v49 = vsel %vm2283_vm8, %v5902_v38, %v2539_v42  ;;  %v2537_v53 = vmul.f32 0.2, %v1630_v46  ;;  %vm2281_vm12 = vcmp.gt.f32.partialorder %v1630_v46, 0.0 }
 0x1de   :  { %5556 = vst [vmem:[%s7034_s2 + $0x1e0] sm:$0xff] %v5160_v44   ;;  %v5903_v51 = vpop.f32.mrf.mxu0  ;;  %v6031_v52 = vpop.f32.mrf.mxu1  ;;  %vm2409_vm13 = vcmp.gt.f32.partialorder %v2142_v47, 0.0  ;;  %v2665_v55 = vmul.f32 0.2, %v2142_v47  ;;  %v2923_v61 = vsel %vm2411_vm9, %v6030_v39, %v2667_v50 }
 0x1df   :  { %5620 = vst [vmem:[%s7034_s2 + $0x3e0] sm:$0xff] %v5480_v48   ;;  %vm2284_vm10 = vcmp.gt.f32.partialorder %v5903_v51, 0.0  ;;  %v2540_v54 = vmul.f32 0.2, %v5903_v51  ;;  %vm2412_vm11 = vcmp.gt.f32.partialorder %v6031_v52, 0.0  ;;  %v2793_v1 = vsel %vm2281_vm12, %v1630_v46, %v2537_v53 }
 0x1e0   :  { %v2668_v56 = vmul.f32 0.2, %v6031_v52  ;;  %v1633_v57 = vpop.f32.mrf.mxu0  ;;  %v2145_v58 = vpop.f32.mrf.mxu1  ;;  %v2921_v4 = vsel %vm2409_vm13, %v2142_v47, %v2665_v55 }
 0x1e1   :  { %v2796_v59 = vsel %vm2284_vm10, %v5903_v51, %v2540_v54  ;;  %vm2282_vm14 = vcmp.gt.f32.partialorder %v1633_v57, 0.0  ;;  %v2538_v60 = vmul.f32 0.2, %v1633_v57  ;;  %vm2410_vm15 = vcmp.gt.f32.partialorder %v2145_v58, 0.0 }
 0x1e2   :  { %v5175_v62 = vpack.c.bf16 %v2796_v59, %v2795_v49  ;;  %v2924_v63 = vsel %vm2412_vm11, %v6031_v52, %v2668_v56  ;;  %v2666_v0 = vmul.f32 0.2, %v2145_v58 }
 0x1e3   :  { %v5495_v2 = vpack.c.bf16 %v2924_v63, %v2923_v61  ;;  %v2794_v3 = vsel %vm2282_vm14, %v1633_v57, %v2538_v60 }
 0x1e4   :  { %5559 = vst [vmem:[%s7034_s2 + $0x1f8] sm:$0xff] %v5175_v62   ;;  %v5170_v5 = vpack.c.bf16 %v2794_v3, %v2793_v1  ;;  %v2922_v6 = vsel %vm2410_vm15, %v2145_v58, %v2666_v0 }
 0x1e5   :  { %5623 = vst [vmem:[%s7034_s2 + $0x3f8] sm:$0xff] %v5495_v2   ;;  %v5490_v7 = vpack.c.bf16 %v2922_v6, %v2921_v4 }
 0x1e6   :  { %5558 = vst [vmem:[%s7034_s2 + $0x1f0] sm:$0xff] %v5170_v5  }
 0x1e7   :  { %5622 = vst [vmem:[%s7034_s2 + $0x3f0] sm:$0xff] %v5490_v7  }

// kernel: discriminator_forward.9
= control target key start
LH: loop header
LB: loop body
LE: loop exit
PB: predicated region body
PF: predicated region fallthrough
CT: control target
= control target key end

     0   :  { %s2126_s1 = inlined_call_operand.vmem [shape: bf16[128,128], index: 1, kind: input, shape index: {}]   ;;  %s2127_s0 = inlined_call_operand.vmem [shape: bf16[512,128], index: 0, kind: input, shape index: {}]   ;;  %s2128_s2 = inlined_call_operand.vmem [shape: bf16[512,128], index: 2, kind: output, shape index: {0}]   ;;  %s2129_s3 = inlined_call_operand.vmem [shape: f32[8,128], index: 3, kind: output, shape index: {1}]  }
   0x1   :  { %v1655_v0 = vld [vmem:[%s2126_s1 + $0x38] sm:$0xff]   ;;  %v1656_v1 = vld [vmem:[%s2126_s1 + $0x30] sm:$0xff]   ;;  %v1657_v2 = vld [vmem:[%s2126_s1 + $0x28] sm:$0xff]  }
   0x2   :  { %1559 = vmatprep.subr.bf16.mxu0 %v1655_v0  ;;  %1639 = vmatprep.subr.bf16.mxu1 %v1655_v0  ;;  %v1658_v3 = vld [vmem:[%s2126_s1 + $0x20] sm:$0xff]   ;;  %v1659_v5 = vld [vmem:[%s2126_s1 + $0x18] sm:$0xff]   ;;  %v1660_v6 = vld [vmem:[%s2126_s1 + $0x10] sm:$0xff]  }
   0x3   :  { %1560 = vmatpush3.bf16.msra.mxu0 %v1655_v0  ;;  %1647 = vmatpush3.bf16.msra.mxu1 %v1655_v0  ;;  %v1663_v4 = vld [vmem:[%s2127_s0] sm:$0xff]   ;;  %v1661_v7 = vld [vmem:[%s2126_s1 + $0x8] sm:$0xff]   ;;  %v1665_v11 = vld [vmem:[%s2127_s0 + $0x10] sm:$0xff]  }
   0x4   :  { %1561 = vmatprep.subr.bf16.mxu0 %v1656_v1  ;;  %1640 = vmatprep.subr.bf16.mxu1 %v1656_v1  ;;  %v1662_v8 = vld [vmem:[%s2126_s1] sm:$0xff]   ;;  %v1664_v10 = vld [vmem:[%s2127_s0 + $0x8] sm:$0xff]   ;;  %v1681_v13 = vld [vmem:[%s2127_s0 + $0x90] sm:$0xff]  }
   0x5   :  { %1575 = vmatprep.mubr.bf16.mxu0 %v1663_v4  ;;  %v1679_v9 = vld [vmem:[%s2127_s0 + $0x80] sm:$0xff]   ;;  %v1680_v12 = vld [vmem:[%s2127_s0 + $0x88] sm:$0xff]   ;;  %v1666_v14 = vld [vmem:[%s2127_s0 + $0x18] sm:$0xff]  }
   0x6   :  { %1607 = vmatprep.mubr.bf16.mxu1 %v1679_v9  ;;  %v1667_v15 = vld [vmem:[%s2127_s0 + $0x20] sm:$0xff]   ;;  %v1682_v16 = vld [vmem:[%s2127_s0 + $0x98] sm:$0xff]   ;;  %v1668_v18 = vld [vmem:[%s2127_s0 + $0x28] sm:$0xff]  }
   0x7   :  { %1562 = vmatpush3.bf16.msra.mxu0 %v1656_v1  ;;  %1648 = vmatpush3.bf16.msra.mxu1 %v1656_v1  ;;  %v1683_v17 = vld [vmem:[%s2127_s0 + $0xa0] sm:$0xff]   ;;  %v1684_v19 = vld [vmem:[%s2127_s0 + $0xa8] sm:$0xff]   ;;  %v1669_v20 = vld [vmem:[%s2127_s0 + $0x30] sm:$0xff]  }
   0x8   :  { %1563 = vmatprep.subr.bf16.mxu0 %v1657_v2  ;;  %1641 = vmatprep.subr.bf16.mxu1 %v1657_v2  ;;  %v1685_v21 = vld [vmem:[%s2127_s0 + $0xb0] sm:$0xff]   ;;  %v1670_v22 = vld [vmem:[%s2127_s0 + $0x38] sm:$0xff]   ;;  %v1671_v24 = vld [vmem:[%s2127_s0 + $0x40] sm:$0xff]  }
   0x9   :  { %v1686_v23 = vld [vmem:[%s2127_s0 + $0xb8] sm:$0xff]   ;;  %v1687_v25 = vld [vmem:[%s2127_s0 + $0xc0] sm:$0xff]   ;;  %v1672_v26 = vld [vmem:[%s2127_s0 + $0x48] sm:$0xff]  }
   0xa   :  { %v1688_v27 = vld [vmem:[%s2127_s0 + $0xc8] sm:$0xff]   ;;  %v1673_v28 = vld [vmem:[%s2127_s0 + $0x50] sm:$0xff]   ;;  %v1674_v30 = vld [vmem:[%s2127_s0 + $0x58] sm:$0xff]  }
   0xb   :  { %1564 = vmatpush3.bf16.msra.mxu0 %v1657_v2  ;;  %1649 = vmatpush3.bf16.msra.mxu1 %v1657_v2  ;;  %v1689_v29 = vld [vmem:[%s2127_s0 + $0xd0] sm:$0xff]   ;;  %v1690_v31 = vld [vmem:[%s2127_s0 + $0xd8] sm:$0xff]   ;;  %v1675_v32 = vld [vmem:[%s2127_s0 + $0x60] sm:$0xff]  }
   0xc   :  { %1565 = vmatprep.subr.bf16.mxu0 %v1658_v3  ;;  %1642 = vmatprep.subr.bf16.mxu1 %v1658_v3  ;;  %v1691_v33 = vld [vmem:[%s2127_s0 + $0xe0] sm:$0xff]   ;;  %v1676_v34 = vld [vmem:[%s2127_s0 + $0x68] sm:$0xff]   ;;  %v1677_v36 = vld [vmem:[%s2127_s0 + $0x70] sm:$0xff]  }
   0xd   :  { %v1692_v35 = vld [vmem:[%s2127_s0 + $0xe8] sm:$0xff]   ;;  %v1693_v37 = vld [vmem:[%s2127_s0 + $0xf0] sm:$0xff]   ;;  %v1678_v38 = vld [vmem:[%s2127_s0 + $0x78] sm:$0xff]  }
   0xe   :  { %v1694_v39 = vld [vmem:[%s2127_s0 + $0xf8] sm:$0xff]  }
   0xf   :  { %1566 = vmatpush3.bf16.msra.mxu0 %v1658_v3  ;;  %1650 = vmatpush3.bf16.msra.mxu1 %v1658_v3 }
  0x10   :  { %1567 = vmatprep.subr.bf16.mxu0 %v1659_v5  ;;  %1643 = vmatprep.subr.bf16.mxu1 %v1659_v5 }
  0x13   :  { %1568 = vmatpush3.bf16.msra.mxu0 %v1659_v5  ;;  %1651 = vmatpush3.bf16.msra.mxu1 %v1659_v5 }
  0x14   :  { %1569 = vmatprep.subr.bf16.mxu0 %v1660_v6  ;;  %1644 = vmatprep.subr.bf16.mxu1 %v1660_v6 }
  0x17   :  { %1570 = vmatpush3.bf16.msra.mxu0 %v1660_v6  ;;  %1652 = vmatpush3.bf16.msra.mxu1 %v1660_v6 }
  0x18   :  { %1571 = vmatprep.subr.bf16.mxu0 %v1661_v7  ;;  %1645 = vmatprep.subr.bf16.mxu1 %v1661_v7 }
  0x1b   :  { %1572 = vmatpush3.bf16.msra.mxu0 %v1661_v7  ;;  %1653 = vmatpush3.bf16.msra.mxu1 %v1661_v7 }
  0x1c   :  { %1573 = vmatprep.subr.bf16.mxu0 %v1662_v8  ;;  %1646 = vmatprep.subr.bf16.mxu1 %v1662_v8 }
  0x1f   :  { %1574 = vmatpush3.bf16.msra.mxu0 %v1662_v8  ;;  %1654 = vmatpush3.bf16.msra.mxu1 %v1662_v8 }
  0x22   :  { %1576 = vmatmul.mubr.bf16.vlgmr.msra.gmra.mxu0 %v1664_v10  ;;  %1608 = vmatmul.mubr.bf16.vlgmr.msra.gmra.mxu1 %v1680_v12 }
  0x23   :  { %1579 = vmatprep.mubr.bf16.mxu0 %v1665_v11  ;;  %1611 = vmatprep.mubr.bf16.mxu1 %v1681_v13 }
  0x2a   :  { %1580 = vmatmul.mubr.bf16.gmra.mxu0 %v1666_v14  ;;  %1612 = vmatmul.mubr.bf16.gmra.mxu1 %v1682_v16 }
  0x2b   :  { %1583 = vmatprep.mubr.bf16.mxu0 %v1667_v15  ;;  %1615 = vmatprep.mubr.bf16.mxu1 %v1683_v17 }
  0x32   :  { %1584 = vmatmul.mubr.bf16.gmra.mxu0 %v1668_v18  ;;  %1616 = vmatmul.mubr.bf16.gmra.mxu1 %v1684_v19 }
  0x33   :  { %1587 = vmatprep.mubr.bf16.mxu0 %v1669_v20  ;;  %1619 = vmatprep.mubr.bf16.mxu1 %v1685_v21 }
  0x3a   :  { %1588 = vmatmul.mubr.bf16.gmra.mxu0 %v1670_v22  ;;  %1620 = vmatmul.mubr.bf16.gmra.mxu1 %v1686_v23 }
  0x3b   :  { %1591 = vmatprep.mubr.bf16.mxu0 %v1671_v24  ;;  %1623 = vmatprep.mubr.bf16.mxu1 %v1687_v25 }
  0x42   :  { %1592 = vmatmul.mubr.bf16.gmra.mxu0 %v1672_v26  ;;  %1624 = vmatmul.mubr.bf16.gmra.mxu1 %v1688_v27 }
  0x43   :  { %1595 = vmatprep.mubr.bf16.mxu0 %v1673_v28  ;;  %1627 = vmatprep.mubr.bf16.mxu1 %v1689_v29 }
  0x4a   :  { %1596 = vmatmul.mubr.bf16.gmra.mxu0 %v1674_v30  ;;  %1628 = vmatmul.mubr.bf16.gmra.mxu1 %v1690_v31 }
  0x4b   :  { %1599 = vmatprep.mubr.bf16.mxu0 %v1675_v32  ;;  %1631 = vmatprep.mubr.bf16.mxu1 %v1691_v33 }
  0x52   :  { %1600 = vmatmul.mubr.bf16.gmra.mxu0 %v1676_v34  ;;  %1632 = vmatmul.mubr.bf16.gmra.mxu1 %v1692_v35 }
  0x53   :  { %1603 = vmatprep.mubr.bf16.mxu0 %v1677_v36  ;;  %1635 = vmatprep.mubr.bf16.mxu1 %v1693_v37 }
  0x5a   :  { %1604 = vmatmul.mubr.bf16.gmra.mxu0 %v1678_v38  ;;  %1636 = vmatmul.mubr.bf16.gmra.mxu1 %v1694_v39 }
  0xe2   :  { %v1577_v40 = vpop.f32.mrf.mxu0  ;;  %v1835_v41 = vpop.f32.mrf.mxu1 }
  0xe3   :  { %v1014_v57 = vmul.f32 %v1577_v40, %v1577_v40 }
  0xe4   :  { %v368_v42 = vpop.f32.mrf.mxu0  ;;  %v1837_v43 = vpop.f32.mrf.mxu1 }
  0xe5   :  { %v1012_v48 = vmul.f32 %v368_v42, %v368_v42 }
  0xe6   :  { %v1578_v44 = vpop.f32.mrf.mxu0  ;;  %v1839_v45 = vpop.f32.mrf.mxu1 }
  0xe7   :  { %v1336_v46 = vpack.c.bf16 %v1578_v44, %v1577_v40  ;;  %v1416_v47 = vpack.c.bf16 %v1839_v45, %v1835_v41  ;;  %v1015_v62 = vmul.f32 %v1578_v44, %v1578_v44 }
  0xe8   :  { %v371_v49 = vpop.f32.mrf.mxu0  ;;  %v1843_v50 = vpop.f32.mrf.mxu1 }
  0xe9   :  { %1488 = vst [vmem:[%s2128_s2 + $0x8] sm:$0xff] %v1336_v46   ;;  %v1331_v51 = vpack.c.bf16 %v371_v49, %v368_v42  ;;  %v943_v52 = vadd.f32 %v371_v49, %v368_v42  ;;  %v1013_v53 = vmul.f32 %v371_v49, %v371_v49  ;;  %1504 = vst [vmem:[%s2128_s2 + $0x88] sm:$0xff] %v1416_v47  }
  0xea   :  { %v1411_v54 = vpack.c.bf16 %v1843_v50, %v1837_v43  ;;  %v1581_v55 = vpop.f32.mrf.mxu0  ;;  %v1853_v56 = vpop.f32.mrf.mxu1 }
  0xeb   :  { %1332 = vst [vmem:[%s2128_s2] sm:$0xff] %v1331_v51   ;;  %v944_v58 = vadd.f32 %v1577_v40, %v943_v52  ;;  %v1076_v59 = vadd.f32 %v1013_v53, %v1012_v48  ;;  %v1018_v17 = vmul.f32 %v1581_v55, %v1581_v55 }
  0xec   :  { %1503 = vst [vmem:[%s2128_s2 + $0x80] sm:$0xff] %v1411_v54   ;;  %v384_v60 = vpop.f32.mrf.mxu0  ;;  %v1861_v61 = vpop.f32.mrf.mxu1 }
  0xed   :  { %v1077_v63 = vadd.f32 %v1076_v59, %v1014_v57  ;;  %v945_v0 = vadd.f32 %v1578_v44, %v944_v58  ;;  %v1016_v4 = vmul.f32 %v384_v60, %v384_v60 }
  0xee   :  { %v1582_v1 = vpop.f32.mrf.mxu0  ;;  %v1863_v2 = vpop.f32.mrf.mxu1 }
  0xef   :  { %v946_v3 = vadd.f32 %v945_v0, %v384_v60  ;;  %v1078_v5 = vadd.f32 %v1077_v63, %v1015_v62  ;;  %v1346_v6 = vpack.c.bf16 %v1582_v1, %v1581_v55  ;;  %v1426_v8 = vpack.c.bf16 %v1863_v2, %v1853_v56 }
  0xf0   :  { %v387_v7 = vpop.f32.mrf.mxu0  ;;  %v1867_v9 = vpop.f32.mrf.mxu1  ;;  %v1019_v22 = vmul.f32 %v1582_v1, %v1582_v1 }
  0xf1   :  { %v1079_v10 = vadd.f32 %v1078_v5, %v1016_v4  ;;  %1490 = vst [vmem:[%s2128_s2 + $0x18] sm:$0xff] %v1346_v6   ;;  %v1341_v11 = vpack.c.bf16 %v387_v7, %v384_v60  ;;  %v947_v12 = vadd.f32 %v946_v3, %v387_v7  ;;  %v1017_v13 = vmul.f32 %v387_v7, %v387_v7 }
  0xf2   :  { %v1585_v14 = vpop.f32.mrf.mxu0  ;;  %1506 = vst [vmem:[%s2128_s2 + $0x98] sm:$0xff] %v1426_v8   ;;  %v1421_v15 = vpack.c.bf16 %v1867_v9, %v1861_v61  ;;  %v1877_v16 = vpop.f32.mrf.mxu1 }
  0xf3   :  { %1489 = vst [vmem:[%s2128_s2 + $0x10] sm:$0xff] %v1341_v11   ;;  %v948_v18 = vadd.f32 %v1581_v55, %v947_v12  ;;  %v1080_v19 = vadd.f32 %v1079_v10, %v1017_v13  ;;  %v1022_v42 = vmul.f32 %v1585_v14, %v1585_v14 }
  0xf4   :  { %v400_v20 = vpop.f32.mrf.mxu0  ;;  %1505 = vst [vmem:[%s2128_s2 + $0x90] sm:$0xff] %v1421_v15   ;;  %v1885_v21 = vpop.f32.mrf.mxu1 }
  0xf5   :  { %v1081_v23 = vadd.f32 %v1080_v19, %v1018_v17  ;;  %v949_v24 = vadd.f32 %v1582_v1, %v948_v18  ;;  %v1020_v28 = vmul.f32 %v400_v20, %v400_v20 }
  0xf6   :  { %v1586_v25 = vpop.f32.mrf.mxu0  ;;  %v1887_v26 = vpop.f32.mrf.mxu1 }
  0xf7   :  { %v950_v27 = vadd.f32 %v949_v24, %v400_v20  ;;  %v1082_v29 = vadd.f32 %v1081_v23, %v1019_v22  ;;  %v1356_v30 = vpack.c.bf16 %v1586_v25, %v1585_v14  ;;  %v1436_v32 = vpack.c.bf16 %v1887_v26, %v1877_v16 }
  0xf8   :  { %v403_v31 = vpop.f32.mrf.mxu0  ;;  %v1891_v33 = vpop.f32.mrf.mxu1  ;;  %v1023_v49 = vmul.f32 %v1586_v25, %v1586_v25 }
  0xf9   :  { %v1083_v34 = vadd.f32 %v1082_v29, %v1020_v28  ;;  %1492 = vst [vmem:[%s2128_s2 + $0x28] sm:$0xff] %v1356_v30   ;;  %v1351_v35 = vpack.c.bf16 %v403_v31, %v400_v20  ;;  %v951_v36 = vadd.f32 %v950_v27, %v403_v31  ;;  %v1021_v37 = vmul.f32 %v403_v31, %v403_v31 }
  0xfa   :  { %v1589_v38 = vpop.f32.mrf.mxu0  ;;  %1508 = vst [vmem:[%s2128_s2 + $0xa8] sm:$0xff] %v1436_v32   ;;  %v1431_v39 = vpack.c.bf16 %v1891_v33, %v1885_v21  ;;  %v1901_v40 = vpop.f32.mrf.mxu1 }
  0xfb   :  { %1491 = vst [vmem:[%s2128_s2 + $0x20] sm:$0xff] %v1351_v35   ;;  %v952_v44 = vadd.f32 %v1585_v14, %v951_v36  ;;  %v1084_v46 = vadd.f32 %v1083_v34, %v1021_v37  ;;  %v1026_v8 = vmul.f32 %v1589_v38, %v1589_v38 }
  0xfc   :  { %v416_v47 = vpop.f32.mrf.mxu0  ;;  %1507 = vst [vmem:[%s2128_s2 + $0xa0] sm:$0xff] %v1431_v39   ;;  %v1909_v48 = vpop.f32.mrf.mxu1 }
  0xfd   :  { %v1085_v51 = vadd.f32 %v1084_v46, %v1022_v42  ;;  %v953_v52 = vadd.f32 %v1586_v25, %v952_v44  ;;  %v1024_v57 = vmul.f32 %v416_v47, %v416_v47 }
  0xfe   :  { %v1590_v53 = vpop.f32.mrf.mxu0  ;;  %v1911_v54 = vpop.f32.mrf.mxu1 }
  0xff   :  { %v954_v55 = vadd.f32 %v953_v52, %v416_v47  ;;  %v1086_v58 = vadd.f32 %v1085_v51, %v1023_v49  ;;  %v1366_v59 = vpack.c.bf16 %v1590_v53, %v1589_v38  ;;  %v1446_v62 = vpack.c.bf16 %v1911_v54, %v1901_v40 }
 0x100   :  { %v419_v60 = vpop.f32.mrf.mxu0  ;;  %v1915_v63 = vpop.f32.mrf.mxu1  ;;  %v1027_v14 = vmul.f32 %v1590_v53, %v1590_v53 }
 0x101   :  { %v1087_v0 = vadd.f32 %v1086_v58, %v1024_v57  ;;  %1494 = vst [vmem:[%s2128_s2 + $0x38] sm:$0xff] %v1366_v59   ;;  %v1361_v1 = vpack.c.bf16 %v419_v60, %v416_v47  ;;  %v955_v3 = vadd.f32 %v954_v55, %v419_v60  ;;  %v1025_v4 = vmul.f32 %v419_v60, %v419_v60 }
 0x102   :  { %v1593_v5 = vpop.f32.mrf.mxu0  ;;  %1510 = vst [vmem:[%s2128_s2 + $0xb8] sm:$0xff] %v1446_v62   ;;  %v1441_v6 = vpack.c.bf16 %v1915_v63, %v1909_v48  ;;  %v1925_v7 = vpop.f32.mrf.mxu1 }
 0x103   :  { %1493 = vst [vmem:[%s2128_s2 + $0x30] sm:$0xff] %v1361_v1   ;;  %v956_v10 = vadd.f32 %v1589_v38, %v955_v3  ;;  %v1088_v11 = vadd.f32 %v1087_v0, %v1025_v4  ;;  %v1030_v37 = vmul.f32 %v1593_v5, %v1593_v5 }
 0x104   :  { %v432_v12 = vpop.f32.mrf.mxu0  ;;  %1509 = vst [vmem:[%s2128_s2 + $0xb0] sm:$0xff] %v1441_v6   ;;  %v1933_v13 = vpop.f32.mrf.mxu1 }
 0x105   :  { %v1089_v15 = vadd.f32 %v1088_v11, %v1026_v8  ;;  %v957_v17 = vadd.f32 %v1590_v53, %v956_v10  ;;  %v1028_v22 = vmul.f32 %v432_v12, %v432_v12 }
 0x106   :  { %v1594_v18 = vpop.f32.mrf.mxu0  ;;  %v1935_v19 = vpop.f32.mrf.mxu1 }
 0x107   :  { %v958_v20 = vadd.f32 %v957_v17, %v432_v12  ;;  %v1090_v23 = vadd.f32 %v1089_v15, %v1027_v14  ;;  %v1376_v24 = vpack.c.bf16 %v1594_v18, %v1593_v5  ;;  %v1456_v27 = vpack.c.bf16 %v1935_v19, %v1925_v7 }
 0x108   :  { %v435_v25 = vpop.f32.mrf.mxu0  ;;  %v1939_v28 = vpop.f32.mrf.mxu1  ;;  %v1031_v46 = vmul.f32 %v1594_v18, %v1594_v18 }
 0x109   :  { %v1091_v29 = vadd.f32 %v1090_v23, %v1028_v22  ;;  %1496 = vst [vmem:[%s2128_s2 + $0x48] sm:$0xff] %v1376_v24   ;;  %v1371_v30 = vpack.c.bf16 %v435_v25, %v432_v12  ;;  %v959_v31 = vadd.f32 %v958_v20, %v435_v25  ;;  %v1029_v32 = vmul.f32 %v435_v25, %v435_v25 }
 0x10a   :  { %v1597_v34 = vpop.f32.mrf.mxu0  ;;  %1512 = vst [vmem:[%s2128_s2 + $0xc8] sm:$0xff] %v1456_v27   ;;  %v1451_v35 = vpack.c.bf16 %v1939_v28, %v1933_v13  ;;  %v1949_v36 = vpop.f32.mrf.mxu1 }
 0x10b   :  { %1495 = vst [vmem:[%s2128_s2 + $0x40] sm:$0xff] %v1371_v30   ;;  %v960_v38 = vadd.f32 %v1593_v5, %v959_v31  ;;  %v1092_v39 = vadd.f32 %v1091_v29, %v1029_v32  ;;  %v1034_v10 = vmul.f32 %v1597_v34, %v1597_v34 }
 0x10c   :  { %v448_v42 = vpop.f32.mrf.mxu0  ;;  %1511 = vst [vmem:[%s2128_s2 + $0xc0] sm:$0xff] %v1451_v35   ;;  %v1957_v44 = vpop.f32.mrf.mxu1 }
 0x10d   :  { %v1093_v47 = vadd.f32 %v1092_v39, %v1030_v37  ;;  %v961_v49 = vadd.f32 %v1594_v18, %v960_v38  ;;  %v1032_v55 = vmul.f32 %v448_v42, %v448_v42 }
 0x10e   :  { %v1598_v51 = vpop.f32.mrf.mxu0  ;;  %v1959_v52 = vpop.f32.mrf.mxu1 }
 0x10f   :  { %v962_v53 = vadd.f32 %v961_v49, %v448_v42  ;;  %v1094_v57 = vadd.f32 %v1093_v47, %v1031_v46  ;;  %v1386_v58 = vpack.c.bf16 %v1598_v51, %v1597_v34  ;;  %v1466_v60 = vpack.c.bf16 %v1959_v52, %v1949_v36 }
 0x110   :  { %v451_v59 = vpop.f32.mrf.mxu0  ;;  %v1963_v62 = vpop.f32.mrf.mxu1  ;;  %v1035_v17 = vmul.f32 %v1598_v51, %v1598_v51 }
 0x111   :  { %v1095_v0 = vadd.f32 %v1094_v57, %v1032_v55  ;;  %1498 = vst [vmem:[%s2128_s2 + $0x58] sm:$0xff] %v1386_v58   ;;  %v1381_v1 = vpack.c.bf16 %v451_v59, %v448_v42  ;;  %v963_v3 = vadd.f32 %v962_v53, %v451_v59  ;;  %v1033_v4 = vmul.f32 %v451_v59, %v451_v59 }
 0x112   :  { %v1601_v5 = vpop.f32.mrf.mxu0  ;;  %1514 = vst [vmem:[%s2128_s2 + $0xd8] sm:$0xff] %v1466_v60   ;;  %v1461_v6 = vpack.c.bf16 %v1963_v62, %v1957_v44  ;;  %v1973_v8 = vpop.f32.mrf.mxu1 }
 0x113   :  { %1497 = vst [vmem:[%s2128_s2 + $0x50] sm:$0xff] %v1381_v1   ;;  %v964_v11 = vadd.f32 %v1597_v34, %v963_v3  ;;  %v1096_v12 = vadd.f32 %v1095_v0, %v1033_v4  ;;  %v1038_v47 = vmul.f32 %v1601_v5, %v1601_v5 }
 0x114   :  { %v464_v14 = vpop.f32.mrf.mxu0  ;;  %1513 = vst [vmem:[%s2128_s2 + $0xd0] sm:$0xff] %v1461_v6   ;;  %v1981_v15 = vpop.f32.mrf.mxu1 }
 0x115   :  { %v1097_v18 = vadd.f32 %v1096_v12, %v1034_v10  ;;  %v965_v20 = vadd.f32 %v1598_v51, %v964_v11  ;;  %v1036_v25 = vmul.f32 %v464_v14, %v464_v14 }
 0x116   :  { %v1602_v22 = vpop.f32.mrf.mxu0  ;;  %v1983_v23 = vpop.f32.mrf.mxu1 }
 0x117   :  { %v966_v24 = vadd.f32 %v965_v20, %v464_v14  ;;  %v1098_v27 = vadd.f32 %v1097_v18, %v1035_v17  ;;  %v1396_v29 = vpack.c.bf16 %v1602_v22, %v1601_v5  ;;  %v1476_v31 = vpack.c.bf16 %v1983_v23, %v1973_v8 }
 0x118   :  { %v467_v30 = vpop.f32.mrf.mxu0  ;;  %v1987_v32 = vpop.f32.mrf.mxu1  ;;  %v1039_v57 = vmul.f32 %v1602_v22, %v1602_v22 }
 0x119   :  { %v1099_v34 = vadd.f32 %v1098_v27, %v1036_v25  ;;  %1500 = vst [vmem:[%s2128_s2 + $0x68] sm:$0xff] %v1396_v29   ;;  %v1391_v35 = vpack.c.bf16 %v467_v30, %v464_v14  ;;  %v967_v37 = vadd.f32 %v966_v24, %v467_v30  ;;  %v1037_v38 = vmul.f32 %v467_v30, %v467_v30 }
 0x11a   :  { %v1605_v39 = vpop.f32.mrf.mxu0  ;;  %1516 = vst [vmem:[%s2128_s2 + $0xe8] sm:$0xff] %v1476_v31   ;;  %v1471_v42 = vpack.c.bf16 %v1987_v32, %v1981_v15  ;;  %v1997_v46 = vpop.f32.mrf.mxu1  ;;  %v1044_v31 = vmul.f32 %v1837_v43, %v1837_v43 }
 0x11b   :  { %1499 = vst [vmem:[%s2128_s2 + $0x60] sm:$0xff] %v1391_v35   ;;  %v968_v49 = vadd.f32 %v1601_v5, %v967_v37  ;;  %v1100_v51 = vadd.f32 %v1099_v34, %v1037_v38  ;;  %v1045_v38 = vmul.f32 %v1843_v50, %v1843_v50 }
 0x11c   :  { %v480_v53 = vpop.f32.mrf.mxu0  ;;  %1515 = vst [vmem:[%s2128_s2 + $0xe0] sm:$0xff] %v1471_v42   ;;  %v2005_v55 = vpop.f32.mrf.mxu1  ;;  %v1046_v42 = vmul.f32 %v1835_v41, %v1835_v41 }
 0x11d   :  { %v1101_v58 = vadd.f32 %v1100_v51, %v1038_v47  ;;  %v969_v59 = vadd.f32 %v1602_v22, %v968_v49  ;;  %v1040_v3 = vmul.f32 %v480_v53, %v480_v53  ;;  %v1042_v22 = vmul.f32 %v1605_v39, %v1605_v39 }
 0x11e   :  { %v1606_v60 = vpop.f32.mrf.mxu0  ;;  %v2007_v0 = vpop.f32.mrf.mxu1  ;;  %v1047_v51 = vmul.f32 %v1839_v45, %v1839_v45 }
 0x11f   :  { %v970_v1 = vadd.f32 %v969_v59, %v480_v53  ;;  %v1102_v4 = vadd.f32 %v1101_v58, %v1039_v57  ;;  %v1406_v6 = vpack.c.bf16 %v1606_v60, %v1605_v39  ;;  %v1486_v5 = vpack.c.bf16 %v2007_v0, %v1997_v46 }
 0x120   :  { %v483_v10 = vpop.f32.mrf.mxu0  ;;  %v2011_v11 = vpop.f32.mrf.mxu1  ;;  %v1043_v27 = vmul.f32 %v1606_v60, %v1606_v60  ;;  %v1048_v58 = vmul.f32 %v1861_v61, %v1861_v61 }
 0x121   :  { %v1103_v12 = vadd.f32 %v1102_v4, %v1040_v3  ;;  %1502 = vst [vmem:[%s2128_s2 + $0x78] sm:$0xff] %v1406_v6   ;;  %v1401_v14 = vpack.c.bf16 %v483_v10, %v480_v53  ;;  %v971_v17 = vadd.f32 %v970_v1, %v483_v10  ;;  %v1041_v18 = vmul.f32 %v483_v10, %v483_v10 }
 0x122   :  { %1518 = vst [vmem:[%s2128_s2 + $0xf8] sm:$0xff] %v1486_v5   ;;  %v1481_v20 = vpack.c.bf16 %v2011_v11, %v2005_v55  ;;  %v1049_v1 = vmul.f32 %v1867_v9, %v1867_v9  ;;  %v1052_v5 = vmul.f32 %v1885_v21, %v1885_v21 }
 0x123   :  { %1501 = vst [vmem:[%s2128_s2 + $0x70] sm:$0xff] %v1401_v14   ;;  %v972_v24 = vadd.f32 %v1605_v39, %v971_v17  ;;  %v1104_v25 = vadd.f32 %v1103_v12, %v1041_v18  ;;  %v1053_v17 = vmul.f32 %v1891_v33, %v1891_v33 }
 0x124   :  { %1517 = vst [vmem:[%s2128_s2 + $0xf0] sm:$0xff] %v1481_v20  }
 0x125   :  { %v973_v29 = vadd.f32 %v1606_v60, %v972_v24  ;;  %v1105_v30 = vadd.f32 %v1104_v25, %v1042_v22  ;;  %v1056_v25 = vmul.f32 %v1909_v48, %v1909_v48 }
 0x127   :  { %v1106_v34 = vadd.f32 %v1105_v30, %v1043_v27  ;;  %v974_v35 = vadd.f32 %v973_v29, %v1837_v43  ;;  %v1057_v30 = vmul.f32 %v1915_v63, %v1915_v63 }
 0x129   :  { %v975_v37 = vadd.f32 %v974_v35, %v1843_v50  ;;  %v1107_v39 = vadd.f32 %v1106_v34, %v1044_v31 }
 0x12b   :  { %v976_v47 = vadd.f32 %v1835_v41, %v975_v37  ;;  %v1108_v49 = vadd.f32 %v1107_v39, %v1045_v38  ;;  %v1050_v41 = vmul.f32 %v1853_v56, %v1853_v56  ;;  %v1060_v38 = vmul.f32 %v1933_v13, %v1933_v13 }
 0x12d   :  { %v1109_v53 = vadd.f32 %v1108_v49, %v1046_v42  ;;  %v977_v57 = vadd.f32 %v1839_v45, %v976_v47  ;;  %v1051_v45 = vmul.f32 %v1863_v2, %v1863_v2  ;;  %v1061_v47 = vmul.f32 %v1939_v28, %v1939_v28 }
 0x12f   :  { %v978_v43 = vadd.f32 %v977_v57, %v1861_v61  ;;  %v1110_v59 = vadd.f32 %v1109_v53, %v1047_v51 }
 0x131   :  { %v1111_v50 = vadd.f32 %v1110_v59, %v1048_v58  ;;  %v979_v60 = vadd.f32 %v978_v43, %v1867_v9  ;;  %v1064_v43 = vmul.f32 %v1957_v44, %v1957_v44 }
 0x133   :  { %v980_v3 = vadd.f32 %v1853_v56, %v979_v60  ;;  %v1112_v4 = vadd.f32 %v1111_v50, %v1049_v1  ;;  %v1054_v56 = vmul.f32 %v1877_v16, %v1877_v16  ;;  %v1065_v50 = vmul.f32 %v1963_v62, %v1963_v62 }
 0x135   :  { %v1113_v6 = vadd.f32 %v1112_v4, %v1050_v41  ;;  %v981_v10 = vadd.f32 %v1863_v2, %v980_v3  ;;  %v1055_v2 = vmul.f32 %v1887_v26, %v1887_v26  ;;  %v1068_v4 = vmul.f32 %v1981_v15, %v1981_v15 }
 0x137   :  { %v982_v61 = vadd.f32 %v981_v10, %v1885_v21  ;;  %v1114_v12 = vadd.f32 %v1113_v6, %v1051_v45  ;;  %v1069_v10 = vmul.f32 %v1987_v32, %v1987_v32 }
 0x139   :  { %v1115_v14 = vadd.f32 %v1114_v12, %v1052_v5  ;;  %v983_v9 = vadd.f32 %v982_v61, %v1891_v33 }
 0x13b   :  { %v984_v18 = vadd.f32 %v1877_v16, %v983_v9  ;;  %v1116_v20 = vadd.f32 %v1115_v14, %v1053_v17  ;;  %v1058_v16 = vmul.f32 %v1901_v40, %v1901_v40  ;;  %v1072_v9 = vmul.f32 %v2005_v55, %v2005_v55 }
 0x13d   :  { %v1117_v22 = vadd.f32 %v1116_v20, %v1054_v56  ;;  %v985_v24 = vadd.f32 %v1887_v26, %v984_v18  ;;  %v1059_v26 = vmul.f32 %v1911_v54, %v1911_v54  ;;  %v1073_v18 = vmul.f32 %v2011_v11, %v2011_v11 }
 0x13f   :  { %v986_v21 = vadd.f32 %v985_v24, %v1909_v48  ;;  %v1118_v27 = vadd.f32 %v1117_v22, %v1055_v2 }
 0x141   :  { %v1119_v29 = vadd.f32 %v1118_v27, %v1056_v25  ;;  %v987_v33 = vadd.f32 %v986_v21, %v1915_v63 }
 0x143   :  { %v988_v31 = vadd.f32 %v1901_v40, %v987_v33  ;;  %v1120_v34 = vadd.f32 %v1119_v29, %v1057_v30  ;;  %v1062_v40 = vmul.f32 %v1925_v7, %v1925_v7  ;;  %v1145_v29 = vlaneseq }
 0x145   :  { %v1121_v35 = vadd.f32 %v1120_v34, %v1058_v16  ;;  %v989_v37 = vadd.f32 %v1911_v54, %v988_v31  ;;  %v1063_v54 = vmul.f32 %v1935_v19, %v1935_v19  ;;  %v1146_v31 = vshrl.u32 %v1145_v29, 7 }
 0x147   :  { %v990_v48 = vadd.f32 %v989_v37, %v1933_v13  ;;  %v1122_v39 = vadd.f32 %v1121_v35, %v1059_v26  ;;  %vm1148_vm0 = vcmp.eq.s32.totalorder %v1146_v31, 1  ;;  %vm1147_vm1 = vcmp.eq.s32.totalorder %v1146_v31, 0 }
 0x149   :  { %v1123_v42 = vadd.f32 %v1122_v39, %v1060_v38  ;;  %v991_v63 = vadd.f32 %v990_v48, %v1939_v28 }
 0x14b   :  { %v992_v49 = vadd.f32 %v1925_v7, %v991_v63  ;;  %v1124_v51 = vadd.f32 %v1123_v42, %v1061_v47  ;;  %v1066_v7 = vmul.f32 %v1949_v36, %v1949_v36 }
 0x14d   :  { %v1125_v53 = vadd.f32 %v1124_v51, %v1062_v40  ;;  %v993_v57 = vadd.f32 %v1935_v19, %v992_v49  ;;  %v1067_v19 = vmul.f32 %v1959_v52, %v1959_v52 }
 0x14f   :  { %v994_v13 = vadd.f32 %v993_v57, %v1957_v44  ;;  %v1126_v58 = vadd.f32 %v1125_v53, %v1063_v54 }
 0x151   :  { %v1127_v59 = vadd.f32 %v1126_v58, %v1064_v43  ;;  %v995_v28 = vadd.f32 %v994_v13, %v1963_v62 }
 0x153   :  { %v996_v60 = vadd.f32 %v1949_v36, %v995_v28  ;;  %v1128_v1 = vadd.f32 %v1127_v59, %v1065_v50  ;;  %v1070_v36 = vmul.f32 %v1973_v8, %v1973_v8 }
 0x155   :  { %v1129_v41 = vadd.f32 %v1128_v1, %v1066_v7  ;;  %v997_v3 = vadd.f32 %v1959_v52, %v996_v60  ;;  %v1071_v52 = vmul.f32 %v1983_v23, %v1983_v23 }
 0x157   :  { %v998_v44 = vadd.f32 %v997_v3, %v1981_v15  ;;  %v1130_v45 = vadd.f32 %v1129_v41, %v1067_v19 }
 0x159   :  { %v1131_v6 = vadd.f32 %v1130_v45, %v1068_v4  ;;  %v999_v62 = vadd.f32 %v998_v44, %v1987_v32 }
 0x15b   :  { %v1000_v61 = vadd.f32 %v1973_v8, %v999_v62  ;;  %v1132_v5 = vadd.f32 %v1131_v6, %v1069_v10  ;;  %v1074_v8 = vmul.f32 %v1997_v46, %v1997_v46 }
 0x15d   :  { %v1133_v12 = vadd.f32 %v1132_v5, %v1070_v36  ;;  %v1001_v14 = vadd.f32 %v1983_v23, %v1000_v61  ;;  %v1075_v23 = vmul.f32 %v2007_v0, %v2007_v0 }
 0x15f   :  { %v1002_v15 = vadd.f32 %v1001_v14, %v2005_v55  ;;  %v1134_v17 = vadd.f32 %v1133_v12, %v1071_v52 }
 0x161   :  { %v1135_v56 = vadd.f32 %v1134_v17, %v1072_v9  ;;  %v1003_v32 = vadd.f32 %v1002_v15, %v2011_v11 }
 0x163   :  { %v1004_v20 = vadd.f32 %v1997_v46, %v1003_v32  ;;  %v1136_v2 = vadd.f32 %v1135_v56, %v1073_v18 }
 0x165   :  { %v1005_v22 = vadd.f32 %v2007_v0, %v1004_v20  ;;  %v1137_v24 = vadd.f32 %v1136_v2, %v1074_v8 }
 0x167   :  { %v1006_v55 = vrot.slane %v1005_v22, 4  ;;  %v1138_v21 = vadd.f32 %v1137_v24, %v1075_v23 }
 0x169   :  { %v1007_v25 = vadd.f32 %v1006_v55, %v1005_v22  ;;  %v1139_v27 = vrot.slane %v1138_v21, 4 }
 0x16b   :  { %v1008_v33 = vrot.slane %v1007_v25, 2  ;;  %v1140_v30 = vadd.f32 %v1139_v27, %v1138_v21 }
 0x16d   :  { %v1009_v11 = vadd.f32 %v1008_v33, %v1007_v25  ;;  %v1141_v16 = vrot.slane %v1140_v30, 2 }
 0x16f   :  { %v1142_v34 = vadd.f32 %v1141_v16, %v1140_v30  ;;  %v1010_v26 = vrot.slane %v1009_v11, 1 }
 0x171   :  { %v1143_v46 = vrot.slane %v1142_v34, 1  ;;  %v1011_v37 = vadd.f32 %v1010_v26, %v1009_v11 }
 0x173   :  { %v1144_v35 = vadd.f32 %v1143_v46, %v1142_v34 }
 0x175   :  { %v1149_v48 = vsel %vm1148_vm0, %v1144_v35, 0.0 }
 0x176   :  { %v1150_v0 = vsel %vm1147_vm1, %v1011_v37, %v1149_v48 }
 0x177   :  { %1151 = vst [vmem:[%s2129_s3] sm:$0xff] %v1150_v0 }

// kernel: discriminator_forward.10
= control target key start
LH: loop header
LB: loop body
LE: loop exit
PB: predicated region body
PF: predicated region fallthrough
CT: control target
= control target key end

     0   :  { %s1631_s0 = inlined_call_operand.vmem [shape: bf16[512,128], index: 0, kind: input, shape index: {}]   ;;  %s1632_s1 = inlined_call_operand.vmem [shape: f32[1,128], index: 1, kind: input, shape index: {}]   ;;  %s1633_s2 = inlined_call_operand.vmem [shape: f32[1,128], index: 2, kind: input, shape index: {}]   ;;  %s1634_s3 = inlined_call_operand.vmem [shape: bf16[512,128], index: 3, kind: output, shape index: {}]  }
   0x1   :  { %v931_v0 = vld [vmem:[%s1631_s0] sm:$0xff]   ;;  %v1218_v4 = vld [vmem:[%s1631_s0 + $0x8] sm:$0xff]   ;;  %v1219_v5 = vld [vmem:[%s1631_s0 + $0x10] sm:$0xff]  }
   0x2   :  { %v1306_v1 = vld [vmem:[%s1632_s1] ss:$0 sm:$0xff]  ;;  %v932_v2 = vunpack.c.l.bf16 %v931_v0  ;;  %v933_v3 = vunpack.c.h.bf16 %v931_v0  ;;  %v1220_v6 = vld [vmem:[%s1631_s0 + $0x18] sm:$0xff]   ;;  %v936_v8 = vunpack.c.l.bf16 %v1218_v4  ;;  %v937_v9 = vunpack.c.h.bf16 %v1218_v4  ;;  %v1222_v35 = vld [vmem:[%s1631_s0 + $0x28] sm:$0xff]  }
   0x3   :  { %v1320_v7 = vld [vmem:[%s1633_s2] ss:$0 sm:$0xff]  ;;  %v940_v10 = vunpack.c.l.bf16 %v1219_v5  ;;  %v941_v11 = vunpack.c.h.bf16 %v1219_v5  ;;  %v944_v14 = vunpack.c.l.bf16 %v1220_v6  ;;  %v945_v15 = vunpack.c.h.bf16 %v1220_v6  ;;  %v1223_v48 = vld [vmem:[%s1631_s0 + $0x30] sm:$0xff]   ;;  %v1224_v4 = vld [vmem:[%s1631_s0 + $0x38] sm:$0xff]  }
   0x4   :  { %v149_v12 = vmul.f32 %v932_v2, %v1306_v1  ;;  %v150_v13 = vmul.f32 %v933_v3, %v1306_v1  ;;  %v151_v16 = vmul.f32 %v936_v8, %v1306_v1  ;;  %v152_v17 = vmul.f32 %v937_v9, %v1306_v1  ;;  %v1221_v34 = vld [vmem:[%s1631_s0 + $0x20] sm:$0xff]  }
   0x5   :  { %v153_v18 = vmul.f32 %v940_v10, %v1306_v1  ;;  %v154_v19 = vmul.f32 %v941_v11, %v1306_v1  ;;  %v155_v22 = vmul.f32 %v944_v14, %v1306_v1  ;;  %v156_v23 = vmul.f32 %v945_v15, %v1306_v1  ;;  %v1225_v15 = vld [vmem:[%s1631_s0 + $0x40] sm:$0xff]  }
   0x6   :  { %v220_v20 = vadd.f32 %v1320_v7, %v149_v12  ;;  %v221_v21 = vadd.f32 %v1320_v7, %v150_v13  ;;  %v222_v24 = vadd.f32 %v1320_v7, %v151_v16  ;;  %v223_v25 = vadd.f32 %v1320_v7, %v152_v17 }
   0x7   :  { %v224_v26 = vadd.f32 %v1320_v7, %v153_v18  ;;  %v225_v27 = vadd.f32 %v1320_v7, %v154_v19  ;;  %v226_v42 = vadd.f32 %v1320_v7, %v155_v22  ;;  %v227_v43 = vadd.f32 %v1320_v7, %v156_v23 }
   0x8   :  { %vm284_vm0 = vcmp.gt.f32.partialorder %v220_v20, 0.0  ;;  %vm285_vm1 = vcmp.gt.f32.partialorder %v221_v21, 0.0  ;;  %v348_v28 = vmul.f32 0.2, %v220_v20  ;;  %v349_v29 = vmul.f32 0.2, %v221_v21 }
   0x9   :  { %vm286_vm2 = vcmp.gt.f32.partialorder %v222_v24, 0.0  ;;  %vm287_vm3 = vcmp.gt.f32.partialorder %v223_v25, 0.0  ;;  %v350_v30 = vmul.f32 0.2, %v222_v24  ;;  %v351_v31 = vmul.f32 0.2, %v223_v25 }
   0xa   :  { %v412_v32 = vsel %vm284_vm0, %v220_v20, %v348_v28  ;;  %v413_v33 = vsel %vm285_vm1, %v221_v21, %v349_v29  ;;  %vm288_vm4 = vcmp.gt.f32.partialorder %v224_v26, 0.0  ;;  %vm289_vm5 = vcmp.gt.f32.partialorder %v225_v27, 0.0 }
   0xb   :  { %v1061_v36 = vpack.c.bf16 %v413_v33, %v412_v32  ;;  %v414_v37 = vsel %vm286_vm2, %v222_v24, %v350_v30  ;;  %v415_v38 = vsel %vm287_vm3, %v223_v25, %v351_v31  ;;  %v352_v39 = vmul.f32 0.2, %v224_v26 }
   0xc   :  { %v1066_v40 = vpack.c.bf16 %v415_v38, %v414_v37  ;;  %v353_v41 = vmul.f32 0.2, %v225_v27  ;;  %v948_v45 = vunpack.c.l.bf16 %v1221_v34  ;;  %v949_v46 = vunpack.c.h.bf16 %v1221_v34 }
   0xd   :  { %1062 = vst [vmem:[%s1634_s3] sm:$0xff] %v1061_v36   ;;  %v416_v44 = vsel %vm288_vm4, %v224_v26, %v352_v39  ;;  %v952_v47 = vunpack.c.l.bf16 %v1222_v35  ;;  %vm290_vm6 = vcmp.gt.f32.partialorder %v226_v42, 0.0  ;;  %vm291_vm7 = vcmp.gt.f32.partialorder %v227_v43, 0.0  ;;  %v1226_v26 = vld [vmem:[%s1631_s0 + $0x48] sm:$0xff]  }
   0xe   :  { %1249 = vst [vmem:[%s1634_s3 + $0x8] sm:$0xff] %v1066_v40   ;;  %v417_v49 = vsel %vm289_vm5, %v225_v27, %v353_v41  ;;  %v354_v50 = vmul.f32 0.2, %v226_v42  ;;  %v355_v52 = vmul.f32 0.2, %v227_v43  ;;  %v157_v53 = vmul.f32 %v948_v45, %v1306_v1  ;;  %v1227_v27 = vld [vmem:[%s1631_s0 + $0x50] sm:$0xff]  }
   0xf   :  { %v1071_v51 = vpack.c.bf16 %v417_v49, %v416_v44  ;;  %v158_v54 = vmul.f32 %v949_v46, %v1306_v1  ;;  %v953_v56 = vunpack.c.h.bf16 %v1222_v35  ;;  %v159_v57 = vmul.f32 %v952_v47, %v1306_v1 }
  0x10   :  { %v418_v55 = vsel %vm290_vm6, %v226_v42, %v354_v50  ;;  %v956_v58 = vunpack.c.l.bf16 %v1223_v48  ;;  %v419_v59 = vsel %vm291_vm7, %v227_v43, %v355_v52  ;;  %v228_v60 = vadd.f32 %v1320_v7, %v157_v53 }
  0x11   :  { %1250 = vst [vmem:[%s1634_s3 + $0x10] sm:$0xff] %v1071_v51   ;;  %v229_v61 = vadd.f32 %v1320_v7, %v158_v54  ;;  %v957_v62 = vunpack.c.h.bf16 %v1223_v48  ;;  %v1076_v63 = vpack.c.bf16 %v419_v59, %v418_v55  ;;  %v160_v0 = vmul.f32 %v953_v56, %v1306_v1  ;;  %v1228_v55 = vld [vmem:[%s1631_s0 + $0x58] sm:$0xff]  }
  0x12   :  { %v230_v2 = vadd.f32 %v1320_v7, %v159_v57  ;;  %v161_v3 = vmul.f32 %v956_v58, %v1306_v1  ;;  %vm292_vm8 = vcmp.gt.f32.partialorder %v228_v60, 0.0  ;;  %v356_v5 = vmul.f32 0.2, %v228_v60 }
  0x13   :  { %vm293_vm9 = vcmp.gt.f32.partialorder %v229_v61, 0.0  ;;  %v357_v6 = vmul.f32 0.2, %v229_v61  ;;  %1251 = vst [vmem:[%s1634_s3 + $0x18] sm:$0xff] %v1076_v63   ;;  %v231_v8 = vadd.f32 %v1320_v7, %v160_v0  ;;  %v162_v10 = vmul.f32 %v957_v62, %v1306_v1 }
  0x14   :  { %vm294_vm10 = vcmp.gt.f32.partialorder %v230_v2, 0.0  ;;  %v358_v9 = vmul.f32 0.2, %v230_v2  ;;  %v420_v11 = vsel %vm292_vm8, %v228_v60, %v356_v5  ;;  %v232_v13 = vadd.f32 %v1320_v7, %v161_v3  ;;  %v1229_v60 = vld [vmem:[%s1631_s0 + $0x60] sm:$0xff]  }
  0x15   :  { %v421_v12 = vsel %vm293_vm9, %v229_v61, %v357_v6  ;;  %v960_v14 = vunpack.c.l.bf16 %v1224_v4  ;;  %vm295_vm11 = vcmp.gt.f32.partialorder %v231_v8, 0.0  ;;  %v359_v17 = vmul.f32 0.2, %v231_v8 }
  0x16   :  { %v1081_v16 = vpack.c.bf16 %v421_v12, %v420_v11  ;;  %v422_v18 = vsel %vm294_vm10, %v230_v2, %v358_v9  ;;  %v233_v19 = vadd.f32 %v1320_v7, %v162_v10  ;;  %vm296_vm12 = vcmp.gt.f32.partialorder %v232_v13, 0.0  ;;  %v1230_v9 = vld [vmem:[%s1631_s0 + $0x68] sm:$0xff]  }
  0x17   :  { %v360_v20 = vmul.f32 0.2, %v232_v13  ;;  %v961_v21 = vunpack.c.h.bf16 %v1224_v4  ;;  %v423_v22 = vsel %vm295_vm11, %v231_v8, %v359_v17  ;;  %v163_v23 = vmul.f32 %v960_v14, %v1306_v1 }
  0x18   :  { %1252 = vst [vmem:[%s1634_s3 + $0x20] sm:$0xff] %v1081_v16   ;;  %v964_v24 = vunpack.c.l.bf16 %v1225_v15  ;;  %v965_v25 = vunpack.c.h.bf16 %v1225_v15  ;;  %v1086_v28 = vpack.c.bf16 %v423_v22, %v422_v18  ;;  %vm297_vm13 = vcmp.gt.f32.partialorder %v233_v19, 0.0 }
  0x19   :  { %v361_v29 = vmul.f32 0.2, %v233_v19  ;;  %v424_v30 = vsel %vm296_vm12, %v232_v13, %v360_v20  ;;  %v164_v31 = vmul.f32 %v961_v21, %v1306_v1  ;;  %v234_v32 = vadd.f32 %v1320_v7, %v163_v23 }
  0x1a   :  { %v165_v33 = vmul.f32 %v964_v24, %v1306_v1  ;;  %v166_v34 = vmul.f32 %v965_v25, %v1306_v1  ;;  %1253 = vst [vmem:[%s1634_s3 + $0x28] sm:$0xff] %v1086_v28   ;;  %v968_v36 = vunpack.c.l.bf16 %v1226_v26  ;;  %v969_v37 = vunpack.c.h.bf16 %v1226_v26  ;;  %v1231_v28 = vld [vmem:[%s1631_s0 + $0x70] sm:$0xff]  }
  0x1b   :  { %v425_v35 = vsel %vm297_vm13, %v233_v19, %v361_v29  ;;  %v972_v38 = vunpack.c.l.bf16 %v1227_v27  ;;  %v235_v40 = vadd.f32 %v1320_v7, %v164_v31  ;;  %vm298_vm14 = vcmp.gt.f32.partialorder %v234_v32, 0.0 }
  0x1c   :  { %v1091_v39 = vpack.c.bf16 %v425_v35, %v424_v30  ;;  %v362_v41 = vmul.f32 0.2, %v234_v32  ;;  %v236_v42 = vadd.f32 %v1320_v7, %v165_v33  ;;  %v237_v43 = vadd.f32 %v1320_v7, %v166_v34 }
  0x1d   :  { %v167_v44 = vmul.f32 %v968_v36, %v1306_v1  ;;  %v168_v45 = vmul.f32 %v969_v37, %v1306_v1  ;;  %vm299_vm15 = vcmp.gt.f32.partialorder %v235_v40, 0.0  ;;  %v363_v46 = vmul.f32 0.2, %v235_v40  ;;  %v1232_v37 = vld [vmem:[%s1631_s0 + $0x78] sm:$0xff]  }
  0x1e   :  { %1254 = vst [vmem:[%s1634_s3 + $0x30] sm:$0xff] %v1091_v39   ;;  %v426_v47 = vsel %vm298_vm14, %v234_v32, %v362_v41  ;;  %v973_v48 = vunpack.c.h.bf16 %v1227_v27  ;;  %vm300_vm0 = vcmp.gt.f32.partialorder %v236_v42, 0.0  ;;  %vm301_vm1 = vcmp.gt.f32.partialorder %v237_v43, 0.0 }
  0x1f   :  { %v364_v49 = vmul.f32 0.2, %v236_v42  ;;  %v365_v50 = vmul.f32 0.2, %v237_v43  ;;  %v427_v51 = vsel %vm299_vm15, %v235_v40, %v363_v46  ;;  %v238_v52 = vadd.f32 %v1320_v7, %v167_v44 }
  0x20   :  { %v239_v53 = vadd.f32 %v1320_v7, %v168_v45  ;;  %v169_v54 = vmul.f32 %v972_v38, %v1306_v1  ;;  %v1096_v56 = vpack.c.bf16 %v427_v51, %v426_v47  ;;  %v170_v59 = vmul.f32 %v973_v48, %v1306_v1 }
  0x21   :  { %v428_v57 = vsel %vm300_vm0, %v236_v42, %v364_v49  ;;  %v429_v58 = vsel %vm301_vm1, %v237_v43, %v365_v50  ;;  %vm302_vm2 = vcmp.gt.f32.partialorder %v238_v52, 0.0  ;;  %v366_v62 = vmul.f32 0.2, %v238_v52  ;;  %v1233_v42 = vld [vmem:[%s1631_s0 + $0x80] sm:$0xff]   ;;  %v1234_v50 = vld [vmem:[%s1631_s0 + $0x88] sm:$0xff]  }
  0x22   :  { %v1101_v61 = vpack.c.bf16 %v429_v58, %v428_v57  ;;  %vm303_vm3 = vcmp.gt.f32.partialorder %v239_v53, 0.0  ;;  %1255 = vst [vmem:[%s1634_s3 + $0x38] sm:$0xff] %v1096_v56   ;;  %v367_v63 = vmul.f32 0.2, %v239_v53  ;;  %v240_v0 = vadd.f32 %v1320_v7, %v169_v54 }
  0x23   :  { %v241_v2 = vadd.f32 %v1320_v7, %v170_v59  ;;  %v976_v3 = vunpack.c.l.bf16 %v1228_v55  ;;  %v430_v4 = vsel %vm302_vm2, %v238_v52, %v366_v62  ;;  %v977_v5 = vunpack.c.h.bf16 %v1228_v55 }
  0x24   :  { %1256 = vst [vmem:[%s1634_s3 + $0x40] sm:$0xff] %v1101_v61   ;;  %v980_v6 = vunpack.c.l.bf16 %v1229_v60  ;;  %v981_v8 = vunpack.c.h.bf16 %v1229_v60  ;;  %v431_v10 = vsel %vm303_vm3, %v239_v53, %v367_v63  ;;  %vm304_vm4 = vcmp.gt.f32.partialorder %v240_v0, 0.0 }
  0x25   :  { %vm305_vm5 = vcmp.gt.f32.partialorder %v241_v2, 0.0  ;;  %v368_v11 = vmul.f32 0.2, %v240_v0  ;;  %v1106_v12 = vpack.c.bf16 %v431_v10, %v430_v4  ;;  %v369_v13 = vmul.f32 0.2, %v241_v2 }
  0x26   :  { %v171_v14 = vmul.f32 %v976_v3, %v1306_v1  ;;  %v172_v15 = vmul.f32 %v977_v5, %v1306_v1  ;;  %v173_v17 = vmul.f32 %v980_v6, %v1306_v1  ;;  %v174_v18 = vmul.f32 %v981_v8, %v1306_v1 }
  0x27   :  { %v432_v16 = vsel %vm304_vm4, %v240_v0, %v368_v11  ;;  %v984_v19 = vunpack.c.l.bf16 %v1230_v9  ;;  %1257 = vst [vmem:[%s1634_s3 + $0x48] sm:$0xff] %v1106_v12   ;;  %v433_v20 = vsel %vm305_vm5, %v241_v2, %v369_v13  ;;  %v985_v23 = vunpack.c.h.bf16 %v1230_v9 }
  0x28   :  { %v242_v21 = vadd.f32 %v1320_v7, %v171_v14  ;;  %v243_v22 = vadd.f32 %v1320_v7, %v172_v15  ;;  %v1111_v24 = vpack.c.bf16 %v433_v20, %v432_v16  ;;  %v244_v25 = vadd.f32 %v1320_v7, %v173_v17  ;;  %v1235_v15 = vld [vmem:[%s1631_s0 + $0x90] sm:$0xff]   ;;  %v1236_v20 = vld [vmem:[%s1631_s0 + $0x98] sm:$0xff]  }
  0x29   :  { %v245_v26 = vadd.f32 %v1320_v7, %v174_v18  ;;  %v175_v27 = vmul.f32 %v984_v19, %v1306_v1  ;;  %v176_v35 = vmul.f32 %v985_v23, %v1306_v1  ;;  %v988_v41 = vunpack.c.l.bf16 %v1231_v28 }
  0x2a   :  { %vm306_vm6 = vcmp.gt.f32.partialorder %v242_v21, 0.0  ;;  %vm307_vm7 = vcmp.gt.f32.partialorder %v243_v22, 0.0  ;;  %v370_v29 = vmul.f32 0.2, %v242_v21  ;;  %v371_v30 = vmul.f32 0.2, %v243_v22 }
  0x2b   :  { %1258 = vst [vmem:[%s1634_s3 + $0x50] sm:$0xff] %v1111_v24   ;;  %vm308_vm8 = vcmp.gt.f32.partialorder %v244_v25, 0.0  ;;  %vm309_vm9 = vcmp.gt.f32.partialorder %v245_v26, 0.0  ;;  %v372_v31 = vmul.f32 0.2, %v244_v25  ;;  %v246_v36 = vadd.f32 %v1320_v7, %v175_v27 }
  0x2c   :  { %v373_v32 = vmul.f32 0.2, %v245_v26  ;;  %v434_v33 = vsel %vm306_vm6, %v242_v21, %v370_v29  ;;  %v435_v34 = vsel %vm307_vm7, %v243_v22, %v371_v30  ;;  %v247_v44 = vadd.f32 %v1320_v7, %v176_v35  ;;  %v1237_v21 = vld [vmem:[%s1631_s0 + $0xa0] sm:$0xff]  }
  0x2d   :  { %v1116_v38 = vpack.c.bf16 %v435_v34, %v434_v33  ;;  %v436_v39 = vsel %vm308_vm8, %v244_v25, %v372_v31  ;;  %vm310_vm10 = vcmp.gt.f32.partialorder %v246_v36, 0.0  ;;  %v374_v45 = vmul.f32 0.2, %v246_v36 }
  0x2e   :  { %v437_v40 = vsel %vm309_vm9, %v245_v26, %v373_v32  ;;  %v989_v46 = vunpack.c.h.bf16 %v1231_v28  ;;  %v177_v47 = vmul.f32 %v988_v41, %v1306_v1  ;;  %v992_v48 = vunpack.c.l.bf16 %v1232_v37 }
  0x2f   :  { %v1121_v43 = vpack.c.bf16 %v437_v40, %v436_v39  ;;  %1259 = vst [vmem:[%s1634_s3 + $0x58] sm:$0xff] %v1116_v38   ;;  %v993_v49 = vunpack.c.h.bf16 %v1232_v37  ;;  %vm311_vm11 = vcmp.gt.f32.partialorder %v247_v44, 0.0  ;;  %v375_v51 = vmul.f32 0.2, %v247_v44  ;;  %v1238_v40 = vld [vmem:[%s1631_s0 + $0xa8] sm:$0xff]  }
  0x30   :  { %v438_v52 = vsel %vm310_vm10, %v246_v36, %v374_v45  ;;  %v996_v53 = vunpack.c.l.bf16 %v1233_v42  ;;  %v178_v54 = vmul.f32 %v989_v46, %v1306_v1  ;;  %v248_v55 = vadd.f32 %v1320_v7, %v177_v47 }
  0x31   :  { %1260 = vst [vmem:[%s1634_s3 + $0x60] sm:$0xff] %v1121_v43   ;;  %v179_v56 = vmul.f32 %v992_v48, %v1306_v1  ;;  %v180_v57 = vmul.f32 %v993_v49, %v1306_v1  ;;  %v439_v58 = vsel %vm311_vm11, %v247_v44, %v375_v51  ;;  %v997_v59 = vunpack.c.h.bf16 %v1233_v42 }
  0x32   :  { %v181_v60 = vmul.f32 %v996_v53, %v1306_v1  ;;  %v1000_v61 = vunpack.c.l.bf16 %v1234_v50  ;;  %v1126_v62 = vpack.c.bf16 %v439_v58, %v438_v52  ;;  %v249_v63 = vadd.f32 %v1320_v7, %v178_v54 }
  0x33   :  { %vm312_vm12 = vcmp.gt.f32.partialorder %v248_v55, 0.0  ;;  %v376_v0 = vmul.f32 0.2, %v248_v55  ;;  %v250_v2 = vadd.f32 %v1320_v7, %v179_v56  ;;  %v251_v3 = vadd.f32 %v1320_v7, %v180_v57 }
  0x34   :  { %v182_v4 = vmul.f32 %v997_v59, %v1306_v1  ;;  %v252_v5 = vadd.f32 %v1320_v7, %v181_v60  ;;  %1261 = vst [vmem:[%s1634_s3 + $0x68] sm:$0xff] %v1126_v62   ;;  %vm313_vm13 = vcmp.gt.f32.partialorder %v249_v63, 0.0  ;;  %v377_v6 = vmul.f32 0.2, %v249_v63 }
  0x35   :  { %v440_v8 = vsel %vm312_vm12, %v248_v55, %v376_v0  ;;  %v1001_v9 = vunpack.c.h.bf16 %v1234_v50  ;;  %vm314_vm14 = vcmp.gt.f32.partialorder %v250_v2, 0.0  ;;  %vm315_vm15 = vcmp.gt.f32.partialorder %v251_v3, 0.0  ;;  %v1239_v0 = vld [vmem:[%s1631_s0 + $0xb0] sm:$0xff]  }
  0x36   :  { %v378_v10 = vmul.f32 0.2, %v250_v2  ;;  %v379_v11 = vmul.f32 0.2, %v251_v3  ;;  %v441_v12 = vsel %vm313_vm13, %v249_v63, %v377_v6  ;;  %v253_v13 = vadd.f32 %v1320_v7, %v182_v4 }
  0x37   :  { %vm316_vm0 = vcmp.gt.f32.partialorder %v252_v5, 0.0  ;;  %v380_v14 = vmul.f32 0.2, %v252_v5  ;;  %v1131_v16 = vpack.c.bf16 %v441_v12, %v440_v8  ;;  %v183_v19 = vmul.f32 %v1000_v61, %v1306_v1 }
  0x38   :  { %v442_v17 = vsel %vm314_vm14, %v250_v2, %v378_v10  ;;  %v443_v18 = vsel %vm315_vm15, %v251_v3, %v379_v11  ;;  %vm317_vm1 = vcmp.gt.f32.partialorder %v253_v13, 0.0  ;;  %v381_v23 = vmul.f32 0.2, %v253_v13  ;;  %v1240_v2 = vld [vmem:[%s1631_s0 + $0xb8] sm:$0xff]  }
  0x39   :  { %v1136_v22 = vpack.c.bf16 %v443_v18, %v442_v17  ;;  %v444_v24 = vsel %vm316_vm0, %v252_v5, %v380_v14  ;;  %1262 = vst [vmem:[%s1634_s3 + $0x70] sm:$0xff] %v1131_v16   ;;  %v184_v25 = vmul.f32 %v1001_v9, %v1306_v1  ;;  %v254_v26 = vadd.f32 %v1320_v7, %v183_v19  ;;  %v1241_v18 = vld [vmem:[%s1631_s0 + $0xc0] sm:$0xff]  }
  0x3a   :  { %v1004_v27 = vunpack.c.l.bf16 %v1235_v15  ;;  %v1005_v28 = vunpack.c.h.bf16 %v1235_v15  ;;  %v445_v29 = vsel %vm317_vm1, %v253_v13, %v381_v23  ;;  %v1008_v30 = vunpack.c.l.bf16 %v1236_v20 }
  0x3b   :  { %1263 = vst [vmem:[%s1634_s3 + $0x78] sm:$0xff] %v1136_v22   ;;  %v1009_v31 = vunpack.c.h.bf16 %v1236_v20  ;;  %v1012_v32 = vunpack.c.l.bf16 %v1237_v21  ;;  %v1141_v33 = vpack.c.bf16 %v445_v29, %v444_v24  ;;  %v255_v34 = vadd.f32 %v1320_v7, %v184_v25 }
  0x3c   :  { %vm318_vm2 = vcmp.gt.f32.partialorder %v254_v26, 0.0  ;;  %v382_v35 = vmul.f32 0.2, %v254_v26  ;;  %v185_v36 = vmul.f32 %v1004_v27, %v1306_v1  ;;  %v186_v37 = vmul.f32 %v1005_v28, %v1306_v1 }
  0x3d   :  { %v187_v38 = vmul.f32 %v1008_v30, %v1306_v1  ;;  %v188_v39 = vmul.f32 %v1009_v31, %v1306_v1  ;;  %1264 = vst [vmem:[%s1634_s3 + $0x80] sm:$0xff] %v1141_v33   ;;  %vm319_vm3 = vcmp.gt.f32.partialorder %v255_v34, 0.0  ;;  %v383_v41 = vmul.f32 0.2, %v255_v34 }
  0x3e   :  { %v446_v42 = vsel %vm318_vm2, %v254_v26, %v382_v35  ;;  %v1013_v43 = vunpack.c.h.bf16 %v1237_v21  ;;  %v256_v44 = vadd.f32 %v1320_v7, %v185_v36  ;;  %v257_v45 = vadd.f32 %v1320_v7, %v186_v37  ;;  %v1242_v36 = vld [vmem:[%s1631_s0 + $0xc8] sm:$0xff]  }
  0x3f   :  { %v258_v46 = vadd.f32 %v1320_v7, %v187_v38  ;;  %v259_v47 = vadd.f32 %v1320_v7, %v188_v39  ;;  %v447_v48 = vsel %vm319_vm3, %v255_v34, %v383_v41  ;;  %v189_v49 = vmul.f32 %v1012_v32, %v1306_v1 }
  0x40   :  { %v190_v50 = vmul.f32 %v1013_v43, %v1306_v1  ;;  %v1016_v51 = vunpack.c.l.bf16 %v1238_v40  ;;  %v1146_v52 = vpack.c.bf16 %v447_v48, %v446_v42  ;;  %vm320_vm4 = vcmp.gt.f32.partialorder %v256_v44, 0.0  ;;  %v1243_v42 = vld [vmem:[%s1631_s0 + $0xd0] sm:$0xff]  }
  0x41   :  { %vm321_vm5 = vcmp.gt.f32.partialorder %v257_v45, 0.0  ;;  %v384_v53 = vmul.f32 0.2, %v256_v44  ;;  %v385_v54 = vmul.f32 0.2, %v257_v45  ;;  %vm322_vm6 = vcmp.gt.f32.partialorder %v258_v46, 0.0 }
  0x42   :  { %vm323_vm7 = vcmp.gt.f32.partialorder %v259_v47, 0.0  ;;  %v386_v55 = vmul.f32 0.2, %v258_v46  ;;  %1265 = vst [vmem:[%s1634_s3 + $0x88] sm:$0xff] %v1146_v52   ;;  %v387_v57 = vmul.f32 0.2, %v259_v47  ;;  %v260_v58 = vadd.f32 %v1320_v7, %v189_v49 }
  0x43   :  { %v448_v56 = vsel %vm320_vm4, %v256_v44, %v384_v53  ;;  %v261_v59 = vadd.f32 %v1320_v7, %v190_v50  ;;  %v449_v60 = vsel %vm321_vm5, %v257_v45, %v385_v54  ;;  %v1017_v62 = vunpack.c.h.bf16 %v1238_v40 }
  0x44   :  { %v450_v61 = vsel %vm322_vm6, %v258_v46, %v386_v55  ;;  %v191_v63 = vmul.f32 %v1016_v51, %v1306_v1  ;;  %v1151_v3 = vpack.c.bf16 %v449_v60, %v448_v56  ;;  %v451_v4 = vsel %vm323_vm7, %v259_v47, %v387_v57  ;;  %v1244_v55 = vld [vmem:[%s1631_s0 + $0xd8] sm:$0xff]  }
  0x45   :  { %vm324_vm8 = vcmp.gt.f32.partialorder %v260_v58, 0.0  ;;  %vm325_vm9 = vcmp.gt.f32.partialorder %v261_v59, 0.0  ;;  %v1156_v5 = vpack.c.bf16 %v451_v4, %v450_v61  ;;  %v388_v6 = vmul.f32 0.2, %v260_v58 }
  0x46   :  { %v389_v8 = vmul.f32 0.2, %v261_v59  ;;  %v192_v9 = vmul.f32 %v1017_v62, %v1306_v1  ;;  %1266 = vst [vmem:[%s1634_s3 + $0x90] sm:$0xff] %v1151_v3   ;;  %v262_v10 = vadd.f32 %v1320_v7, %v191_v63  ;;  %v1020_v11 = vunpack.c.l.bf16 %v1239_v0 }
  0x47   :  { %v1021_v12 = vunpack.c.h.bf16 %v1239_v0  ;;  %v1024_v13 = vunpack.c.l.bf16 %v1240_v2  ;;  %1267 = vst [vmem:[%s1634_s3 + $0x98] sm:$0xff] %v1156_v5   ;;  %v452_v14 = vsel %vm324_vm8, %v260_v58, %v388_v6  ;;  %v1025_v17 = vunpack.c.h.bf16 %v1240_v2 }
  0x48   :  { %v453_v15 = vsel %vm325_vm9, %v261_v59, %v389_v8  ;;  %v263_v16 = vadd.f32 %v1320_v7, %v192_v9  ;;  %vm326_vm10 = vcmp.gt.f32.partialorder %v262_v10, 0.0  ;;  %v390_v20 = vmul.f32 0.2, %v262_v10 }
  0x49   :  { %v1161_v19 = vpack.c.bf16 %v453_v15, %v452_v14  ;;  %v193_v21 = vmul.f32 %v1020_v11, %v1306_v1  ;;  %v194_v23 = vmul.f32 %v1021_v12, %v1306_v1  ;;  %v195_v24 = vmul.f32 %v1024_v13, %v1306_v1  ;;  %v1246_v14 = vld [vmem:[%s1631_s0 + $0xe8] sm:$0xff]  }
  0x4a   :  { %vm327_vm11 = vcmp.gt.f32.partialorder %v263_v16, 0.0  ;;  %v391_v22 = vmul.f32 0.2, %v263_v16  ;;  %v454_v25 = vsel %vm326_vm10, %v262_v10, %v390_v20  ;;  %v196_v27 = vmul.f32 %v1025_v17, %v1306_v1  ;;  %v1245_v10 = vld [vmem:[%s1631_s0 + $0xe0] sm:$0xff]  }
  0x4b   :  { %1268 = vst [vmem:[%s1634_s3 + $0xa0] sm:$0xff] %v1161_v19   ;;  %v264_v26 = vadd.f32 %v1320_v7, %v193_v21  ;;  %v1028_v28 = vunpack.c.l.bf16 %v1241_v18  ;;  %v265_v30 = vadd.f32 %v1320_v7, %v194_v23  ;;  %v266_v31 = vadd.f32 %v1320_v7, %v195_v24 }
  0x4c   :  { %v455_v29 = vsel %vm327_vm11, %v263_v16, %v391_v22  ;;  %v1029_v32 = vunpack.c.h.bf16 %v1241_v18  ;;  %v267_v35 = vadd.f32 %v1320_v7, %v196_v27  ;;  %v1032_v46 = vunpack.c.l.bf16 %v1242_v36 }
  0x4d   :  { %v1166_v33 = vpack.c.bf16 %v455_v29, %v454_v25  ;;  %vm328_vm12 = vcmp.gt.f32.partialorder %v264_v26, 0.0  ;;  %v392_v34 = vmul.f32 0.2, %v264_v26  ;;  %vm329_vm13 = vcmp.gt.f32.partialorder %v265_v30, 0.0 }
  0x4e   :  { %v393_v37 = vmul.f32 0.2, %v265_v30  ;;  %vm330_vm14 = vcmp.gt.f32.partialorder %v266_v31, 0.0  ;;  %v394_v38 = vmul.f32 0.2, %v266_v31  ;;  %vm331_vm15 = vcmp.gt.f32.partialorder %v267_v35, 0.0 }
  0x4f   :  { %1269 = vst [vmem:[%s1634_s3 + $0xa8] sm:$0xff] %v1166_v33   ;;  %v456_v39 = vsel %vm328_vm12, %v264_v26, %v392_v34  ;;  %v395_v40 = vmul.f32 0.2, %v267_v35  ;;  %v197_v41 = vmul.f32 %v1028_v28, %v1306_v1  ;;  %v198_v45 = vmul.f32 %v1029_v32, %v1306_v1 }
  0x50   :  { %v457_v43 = vsel %vm329_vm13, %v265_v30, %v393_v37  ;;  %v458_v44 = vsel %vm330_vm14, %v266_v31, %v394_v38  ;;  %v1033_v50 = vunpack.c.h.bf16 %v1242_v36  ;;  %v199_v53 = vmul.f32 %v1032_v46, %v1306_v1  ;;  %v1247_v30 = vld [vmem:[%s1631_s0 + $0xf0] sm:$0xff]  }
  0x51   :  { %v1171_v47 = vpack.c.bf16 %v457_v43, %v456_v39  ;;  %v459_v48 = vsel %vm331_vm15, %v267_v35, %v395_v40  ;;  %v268_v49 = vadd.f32 %v1320_v7, %v197_v41  ;;  %v269_v52 = vadd.f32 %v1320_v7, %v198_v45 }
  0x52   :  { %v1176_v51 = vpack.c.bf16 %v459_v48, %v458_v44  ;;  %v1036_v54 = vunpack.c.l.bf16 %v1243_v42  ;;  %v200_v57 = vmul.f32 %v1033_v50, %v1306_v1  ;;  %v1037_v58 = vunpack.c.h.bf16 %v1243_v42  ;;  %v1248_v44 = vld [vmem:[%s1631_s0 + $0xf8] sm:$0xff]  }
  0x53   :  { %1270 = vst [vmem:[%s1634_s3 + $0xb0] sm:$0xff] %v1171_v47   ;;  %vm332_vm0 = vcmp.gt.f32.partialorder %v268_v49, 0.0  ;;  %v396_v56 = vmul.f32 0.2, %v268_v49  ;;  %vm333_vm1 = vcmp.gt.f32.partialorder %v269_v52, 0.0  ;;  %v270_v60 = vadd.f32 %v1320_v7, %v199_v53 }
  0x54   :  { %1271 = vst [vmem:[%s1634_s3 + $0xb8] sm:$0xff] %v1176_v51   ;;  %v397_v59 = vmul.f32 0.2, %v269_v52  ;;  %v201_v61 = vmul.f32 %v1036_v54, %v1306_v1  ;;  %v271_v63 = vadd.f32 %v1320_v7, %v200_v57  ;;  %v202_v0 = vmul.f32 %v1037_v58, %v1306_v1 }
  0x55   :  { %v460_v62 = vsel %vm332_vm0, %v268_v49, %v396_v56  ;;  %v1040_v2 = vunpack.c.l.bf16 %v1244_v55  ;;  %vm334_vm2 = vcmp.gt.f32.partialorder %v270_v60, 0.0  ;;  %v398_v4 = vmul.f32 0.2, %v270_v60 }
  0x56   :  { %v461_v3 = vsel %vm333_vm1, %v269_v52, %v397_v59  ;;  %v272_v5 = vadd.f32 %v1320_v7, %v201_v61  ;;  %vm335_vm3 = vcmp.gt.f32.partialorder %v271_v63, 0.0  ;;  %v399_v8 = vmul.f32 0.2, %v271_v63 }
  0x57   :  { %v1181_v6 = vpack.c.bf16 %v461_v3, %v460_v62  ;;  %v273_v9 = vadd.f32 %v1320_v7, %v202_v0  ;;  %v462_v11 = vsel %vm334_vm2, %v270_v60, %v398_v4  ;;  %v1041_v13 = vunpack.c.h.bf16 %v1244_v55 }
  0x58   :  { %vm336_vm4 = vcmp.gt.f32.partialorder %v272_v5, 0.0  ;;  %v400_v12 = vmul.f32 0.2, %v272_v5  ;;  %v463_v15 = vsel %vm335_vm3, %v271_v63, %v399_v8  ;;  %v203_v17 = vmul.f32 %v1040_v2, %v1306_v1 }
  0x59   :  { %1272 = vst [vmem:[%s1634_s3 + $0xc0] sm:$0xff] %v1181_v6   ;;  %vm337_vm5 = vcmp.gt.f32.partialorder %v273_v9, 0.0  ;;  %v401_v16 = vmul.f32 0.2, %v273_v9  ;;  %v1186_v18 = vpack.c.bf16 %v463_v15, %v462_v11  ;;  %v204_v20 = vmul.f32 %v1041_v13, %v1306_v1 }
  0x5a   :  { %v464_v19 = vsel %vm336_vm4, %v272_v5, %v400_v12  ;;  %v1044_v21 = vunpack.c.l.bf16 %v1245_v10  ;;  %v274_v23 = vadd.f32 %v1320_v7, %v203_v17  ;;  %v1045_v24 = vunpack.c.h.bf16 %v1245_v10 }
  0x5b   :  { %v465_v22 = vsel %vm337_vm5, %v273_v9, %v401_v16  ;;  %v1048_v25 = vunpack.c.l.bf16 %v1246_v14  ;;  %1273 = vst [vmem:[%s1634_s3 + $0xc8] sm:$0xff] %v1186_v18   ;;  %v275_v27 = vadd.f32 %v1320_v7, %v204_v20  ;;  %v1049_v29 = vunpack.c.h.bf16 %v1246_v14 }
  0x5c   :  { %v1191_v26 = vpack.c.bf16 %v465_v22, %v464_v19  ;;  %v205_v28 = vmul.f32 %v1044_v21, %v1306_v1  ;;  %vm338_vm6 = vcmp.gt.f32.partialorder %v274_v23, 0.0  ;;  %v402_v31 = vmul.f32 0.2, %v274_v23 }
  0x5d   :  { %v206_v32 = vmul.f32 %v1045_v24, %v1306_v1  ;;  %v207_v33 = vmul.f32 %v1048_v25, %v1306_v1  ;;  %vm339_vm7 = vcmp.gt.f32.partialorder %v275_v27, 0.0  ;;  %v403_v34 = vmul.f32 0.2, %v275_v27 }
  0x5e   :  { %1274 = vst [vmem:[%s1634_s3 + $0xd0] sm:$0xff] %v1191_v26   ;;  %v276_v35 = vadd.f32 %v1320_v7, %v205_v28  ;;  %v208_v36 = vmul.f32 %v1049_v29, %v1306_v1  ;;  %v466_v37 = vsel %vm338_vm6, %v274_v23, %v402_v31  ;;  %v1052_v40 = vunpack.c.l.bf16 %v1247_v30 }
  0x5f   :  { %v277_v38 = vadd.f32 %v1320_v7, %v206_v32  ;;  %v278_v39 = vadd.f32 %v1320_v7, %v207_v33  ;;  %v467_v41 = vsel %vm339_vm7, %v275_v27, %v403_v34  ;;  %v1053_v51 = vunpack.c.h.bf16 %v1247_v30 }
  0x60   :  { %vm340_vm8 = vcmp.gt.f32.partialorder %v276_v35, 0.0  ;;  %v404_v42 = vmul.f32 0.2, %v276_v35  ;;  %v279_v43 = vadd.f32 %v1320_v7, %v208_v36  ;;  %v1196_v45 = vpack.c.bf16 %v467_v41, %v466_v37 }
  0x61   :  { %vm341_vm9 = vcmp.gt.f32.partialorder %v277_v38, 0.0  ;;  %v405_v46 = vmul.f32 0.2, %v277_v38  ;;  %vm342_vm10 = vcmp.gt.f32.partialorder %v278_v39, 0.0  ;;  %v406_v48 = vmul.f32 0.2, %v278_v39 }
  0x62   :  { %v468_v47 = vsel %vm340_vm8, %v276_v35, %v404_v42  ;;  %vm343_vm11 = vcmp.gt.f32.partialorder %v279_v43, 0.0  ;;  %v407_v49 = vmul.f32 0.2, %v279_v43  ;;  %1275 = vst [vmem:[%s1634_s3 + $0xd8] sm:$0xff] %v1196_v45   ;;  %v209_v52 = vmul.f32 %v1052_v40, %v1306_v1 }
  0x63   :  { %v469_v50 = vsel %vm341_vm9, %v277_v38, %v405_v46  ;;  %v1056_v53 = vunpack.c.l.bf16 %v1248_v44  ;;  %v470_v55 = vsel %vm342_vm10, %v278_v39, %v406_v48  ;;  %v1057_v57 = vunpack.c.h.bf16 %v1248_v44 }
  0x64   :  { %v1201_v54 = vpack.c.bf16 %v469_v50, %v468_v47  ;;  %v471_v56 = vsel %vm343_vm11, %v279_v43, %v407_v49  ;;  %v210_v59 = vmul.f32 %v1053_v51, %v1306_v1  ;;  %v280_v60 = vadd.f32 %v1320_v7, %v209_v52 }
  0x65   :  { %v1206_v58 = vpack.c.bf16 %v471_v56, %v470_v55  ;;  %v211_v61 = vmul.f32 %v1056_v53, %v1306_v1  ;;  %v212_v62 = vmul.f32 %v1057_v57, %v1306_v1 }
  0x66   :  { %1276 = vst [vmem:[%s1634_s3 + $0xe0] sm:$0xff] %v1201_v54   ;;  %v281_v63 = vadd.f32 %v1320_v7, %v210_v59  ;;  %vm344_vm12 = vcmp.gt.f32.partialorder %v280_v60, 0.0  ;;  %v408_v0 = vmul.f32 0.2, %v280_v60 }
  0x67   :  { %1277 = vst [vmem:[%s1634_s3 + $0xe8] sm:$0xff] %v1206_v58   ;;  %v282_v2 = vadd.f32 %v1320_v7, %v211_v61  ;;  %v283_v3 = vadd.f32 %v1320_v7, %v212_v62 }
  0x68   :  { %vm345_vm13 = vcmp.gt.f32.partialorder %v281_v63, 0.0  ;;  %v409_v4 = vmul.f32 0.2, %v281_v63  ;;  %v472_v5 = vsel %vm344_vm12, %v280_v60, %v408_v0 }
  0x69   :  { %vm346_vm14 = vcmp.gt.f32.partialorder %v282_v2, 0.0  ;;  %vm347_vm15 = vcmp.gt.f32.partialorder %v283_v3, 0.0  ;;  %v410_v6 = vmul.f32 0.2, %v282_v2  ;;  %v411_v8 = vmul.f32 0.2, %v283_v3 }
  0x6a   :  { %v473_v1 = vsel %vm345_vm13, %v281_v63, %v409_v4 }
  0x6b   :  { %v1211_v9 = vpack.c.bf16 %v473_v1, %v472_v5  ;;  %v474_v10 = vsel %vm346_vm14, %v282_v2, %v410_v6  ;;  %v475_v11 = vsel %vm347_vm15, %v283_v3, %v411_v8 }
  0x6c   :  { %v1216_v12 = vpack.c.bf16 %v475_v11, %v474_v10 }
  0x6d   :  { %1278 = vst [vmem:[%s1634_s3 + $0xf0] sm:$0xff] %v1211_v9  }
  0x6e   :  { %1279 = vst [vmem:[%s1634_s3 + $0xf8] sm:$0xff] %v1216_v12  }

// kernel: discriminator_forward.11
= control target key start
LH: loop header
LB: loop body
LE: loop exit
PB: predicated region body
PF: predicated region fallthrough
CT: control target
= control target key end

     0   :  { %s886_s1 = inlined_call_operand.vmem [shape: bf16[256,128], index: 1, kind: input, shape index: {}]   ;;  %s887_s0 = inlined_call_operand.vmem [shape: bf16[128,256], index: 0, kind: input, shape index: {}]   ;;  %s888_s2 = inlined_call_operand.vmem [shape: bf16[128,128], index: 2, kind: output, shape index: {0}]   ;;  %s889_s3 = inlined_call_operand.vmem [shape: f32[8,128], index: 3, kind: output, shape index: {1}]  }
   0x1   :  { %v679_v0 = vld [vmem:[%s886_s1 + $0x78] sm:$0xff]   ;;  %v681_v2 = vld [vmem:[%s886_s1 + $0x70] sm:$0xff]   ;;  %v683_v4 = vld [vmem:[%s886_s1 + $0x68] sm:$0xff]  }
   0x2   :  { %v680_v1 = vld [vmem:[%s886_s1 + $0x38] sm:$0xff]   ;;  %599 = vmatprep.subr.bf16.mxu0 %v679_v0  ;;  %663 = vmatprep.subr.bf16.mxu1 %v679_v0  ;;  %v682_v3 = vld [vmem:[%s886_s1 + $0x30] sm:$0xff]   ;;  %v684_v5 = vld [vmem:[%s886_s1 + $0x28] sm:$0xff]  }
   0x3   :  { %600 = vmatpush3.bf16.msra.mxu0 %v680_v1  ;;  %671 = vmatpush3.bf16.msra.mxu1 %v680_v1  ;;  %v685_v6 = vld [vmem:[%s886_s1 + $0x60] sm:$0xff]   ;;  %v687_v8 = vld [vmem:[%s886_s1 + $0x58] sm:$0xff]   ;;  %v689_v10 = vld [vmem:[%s886_s1 + $0x50] sm:$0xff]  }
   0x4   :  { %601 = vmatprep.subr.bf16.mxu0 %v681_v2  ;;  %664 = vmatprep.subr.bf16.mxu1 %v681_v2  ;;  %v686_v7 = vld [vmem:[%s886_s1 + $0x20] sm:$0xff]   ;;  %v688_v9 = vld [vmem:[%s886_s1 + $0x18] sm:$0xff]   ;;  %v690_v12 = vld [vmem:[%s886_s1 + $0x10] sm:$0xff]  }
   0x5   :  { %v697_v11 = vld [vmem:[%s887_s0 + $0x4] ss:$8 sps:$4 sm:$0xff]   ;;  %v695_v18 = vld [vmem:[%s887_s0] ss:$8 sps:$4 sm:$0xff]   ;;  %v698_v20 = vld [vmem:[%s887_s0 + $0x14] ss:$8 sps:$4 sm:$0xff]  }
   0x6   :  { %v703_v13 = vld [vmem:[%s887_s0 + $0x44] ss:$8 sps:$4 sm:$0xff]   ;;  %270 = vmatprep.mubr.bf16.mxu0 %v697_v11  ;;  %v701_v19 = vld [vmem:[%s887_s0 + $0x40] ss:$8 sps:$4 sm:$0xff]   ;;  %v707_v21 = vld [vmem:[%s887_s0 + $0x54] ss:$8 sps:$4 sm:$0xff]  }
   0x7   :  { %602 = vmatpush3.bf16.msra.mxu0 %v682_v3  ;;  %672 = vmatpush3.bf16.msra.mxu1 %v682_v3  ;;  %v691_v14 = vld [vmem:[%s886_s1 + $0x48] sm:$0xff]   ;;  %v693_v16 = vld [vmem:[%s886_s1 + $0x40] sm:$0xff]   ;;  %v700_v22 = vld [vmem:[%s887_s0 + $0x10] ss:$8 sps:$4 sm:$0xff]  }
   0x8   :  { %603 = vmatprep.subr.bf16.mxu0 %v683_v4  ;;  %665 = vmatprep.subr.bf16.mxu1 %v683_v4  ;;  %v692_v15 = vld [vmem:[%s886_s1 + $0x8] sm:$0xff]   ;;  %v694_v17 = vld [vmem:[%s886_s1] sm:$0xff]   ;;  %v709_v23 = vld [vmem:[%s887_s0 + $0x50] ss:$8 sps:$4 sm:$0xff]  }
   0x9   :  { %302 = vmatprep.mubr.bf16.mxu1 %v703_v13  ;;  %v704_v24 = vld [vmem:[%s887_s0 + $0x24] ss:$8 sps:$4 sm:$0xff]   ;;  %v706_v26 = vld [vmem:[%s887_s0 + $0x20] ss:$8 sps:$4 sm:$0xff]   ;;  %v710_v28 = vld [vmem:[%s887_s0 + $0x34] ss:$8 sps:$4 sm:$0xff]  }
   0xa   :  { %v713_v25 = vld [vmem:[%s887_s0 + $0x64] ss:$8 sps:$4 sm:$0xff]   ;;  %v715_v27 = vld [vmem:[%s887_s0 + $0x60] ss:$8 sps:$4 sm:$0xff]   ;;  %v716_v29 = vld [vmem:[%s887_s0 + $0x74] ss:$8 sps:$4 sm:$0xff]  }
   0xb   :  { %604 = vmatpush3.bf16.msra.mxu0 %v684_v5  ;;  %673 = vmatpush3.bf16.msra.mxu1 %v684_v5  ;;  %v712_v30 = vld [vmem:[%s887_s0 + $0x30] ss:$8 sps:$4 sm:$0xff]  }
   0xc   :  { %605 = vmatprep.subr.bf16.mxu0 %v685_v6  ;;  %666 = vmatprep.subr.bf16.mxu1 %v685_v6  ;;  %v718_v31 = vld [vmem:[%s887_s0 + $0x70] ss:$8 sps:$4 sm:$0xff]  }
   0xf   :  { %606 = vmatpush3.bf16.msra.mxu0 %v686_v7  ;;  %674 = vmatpush3.bf16.msra.mxu1 %v686_v7 }
  0x10   :  { %607 = vmatprep.subr.bf16.mxu0 %v687_v8  ;;  %667 = vmatprep.subr.bf16.mxu1 %v687_v8 }
  0x13   :  { %608 = vmatpush3.bf16.msra.mxu0 %v688_v9  ;;  %675 = vmatpush3.bf16.msra.mxu1 %v688_v9 }
  0x14   :  { %609 = vmatprep.subr.bf16.mxu0 %v689_v10  ;;  %668 = vmatprep.subr.bf16.mxu1 %v689_v10 }
  0x17   :  { %610 = vmatpush3.bf16.msra.mxu0 %v690_v12  ;;  %676 = vmatpush3.bf16.msra.mxu1 %v690_v12 }
  0x18   :  { %611 = vmatprep.subr.bf16.mxu0 %v691_v14  ;;  %669 = vmatprep.subr.bf16.mxu1 %v691_v14 }
  0x1b   :  { %612 = vmatpush3.bf16.msra.mxu0 %v692_v15  ;;  %677 = vmatpush3.bf16.msra.mxu1 %v692_v15 }
  0x1c   :  { %613 = vmatprep.subr.bf16.mxu0 %v693_v16  ;;  %670 = vmatprep.subr.bf16.mxu1 %v693_v16 }
  0x1f   :  { %614 = vmatpush3.bf16.msra.mxu0 %v694_v17  ;;  %678 = vmatpush3.bf16.msra.mxu1 %v694_v17 }
  0x22   :  { %271 = vmatmul.mubr.bf16.vlgmr.msra.gmra.mxu0 %v695_v18  ;;  %303 = vmatmul.mubr.bf16.vlgmr.msra.gmra.mxu1 %v701_v19 }
  0x23   :  { %278 = vmatprep.mubr.bf16.mxu0 %v698_v20  ;;  %310 = vmatprep.mubr.bf16.mxu1 %v707_v21 }
  0x2a   :  { %279 = vmatmul.mubr.bf16.gmra.mxu0 %v700_v22  ;;  %311 = vmatmul.mubr.bf16.gmra.mxu1 %v709_v23 }
  0x2b   :  { %286 = vmatprep.mubr.bf16.mxu0 %v704_v24  ;;  %318 = vmatprep.mubr.bf16.mxu1 %v713_v25 }
  0x32   :  { %287 = vmatmul.mubr.bf16.gmra.mxu0 %v706_v26  ;;  %319 = vmatmul.mubr.bf16.gmra.mxu1 %v715_v27 }
  0x33   :  { %294 = vmatprep.mubr.bf16.mxu0 %v710_v28  ;;  %326 = vmatprep.mubr.bf16.mxu1 %v716_v29 }
  0x3a   :  { %295 = vmatmul.mubr.bf16.gmra.mxu0 %v712_v30  ;;  %327 = vmatmul.mubr.bf16.gmra.mxu1 %v718_v31 }
  0xe2   :  { %v615_v32 = vpop.f32.mrf.mxu0  ;;  %v639_v33 = vpop.f32.mrf.mxu1 }
  0xe4   :  { %v616_v34 = vpop.f32.mrf.mxu0  ;;  %v640_v35 = vpop.f32.mrf.mxu1 }
  0xe5   :  { %v835_v38 = vadd.f32 %v640_v35, %v639_v33  ;;  %v617_v41 = vadd.f32 %v616_v34, %v615_v32 }
  0xe6   :  { %v618_v36 = vpop.f32.mrf.mxu0  ;;  %v642_v37 = vpop.f32.mrf.mxu1 }
  0xe7   :  { %v436_v1 = vmul.f32 %v617_v41, %v617_v41 }
  0xe8   :  { %v619_v39 = vpop.f32.mrf.mxu0  ;;  %v643_v40 = vpop.f32.mrf.mxu1 }
  0xe9   :  { %v620_v42 = vadd.f32 %v619_v39, %v618_v36  ;;  %v837_v43 = vadd.f32 %v643_v40, %v642_v37 }
  0xea   :  { %v621_v44 = vpop.f32.mrf.mxu0  ;;  %v645_v45 = vpop.f32.mrf.mxu1 }
  0xeb   :  { %v555_v46 = vpack.c.bf16 %v620_v42, %v617_v41  ;;  %v575_v47 = vpack.c.bf16 %v837_v43, %v835_v38  ;;  %v437_v62 = vmul.f32 %v620_v42, %v620_v42  ;;  %v415_v6 = vadd.f32 %v620_v42, %v617_v41 }
  0xec   :  { %v622_v48 = vpop.f32.mrf.mxu0  ;;  %v646_v49 = vpop.f32.mrf.mxu1 }
  0xed   :  { %556 = vst [vmem:[%s888_s2] sm:$0xff] %v555_v46   ;;  %595 = vst [vmem:[%s888_s2 + $0x20] sm:$0xff] %v575_v47   ;;  %v847_v52 = vadd.f32 %v646_v49, %v645_v45  ;;  %v623_v55 = vadd.f32 %v622_v48, %v621_v44  ;;  %v452_v8 = vadd.f32 %v437_v62, %v436_v1 }
  0xee   :  { %v624_v50 = vpop.f32.mrf.mxu0  ;;  %v648_v51 = vpop.f32.mrf.mxu1  ;;  %v444_v47 = vmul.f32 %v835_v38, %v835_v38 }
  0xef   :  { %v438_v2 = vmul.f32 %v623_v55, %v623_v55  ;;  %v416_v12 = vadd.f32 %v623_v55, %v415_v6 }
  0xf0   :  { %v625_v53 = vpop.f32.mrf.mxu0  ;;  %v649_v54 = vpop.f32.mrf.mxu1 }
  0xf1   :  { %v626_v56 = vadd.f32 %v625_v53, %v624_v50  ;;  %v849_v57 = vadd.f32 %v649_v54, %v648_v51  ;;  %v453_v15 = vadd.f32 %v452_v8, %v438_v2  ;;  %v445_v50 = vmul.f32 %v837_v43, %v837_v43 }
  0xf2   :  { %v627_v58 = vpop.f32.mrf.mxu0  ;;  %v651_v59 = vpop.f32.mrf.mxu1  ;;  %v446_v54 = vmul.f32 %v847_v52, %v847_v52 }
  0xf3   :  { %v560_v60 = vpack.c.bf16 %v626_v56, %v623_v55  ;;  %v580_v61 = vpack.c.bf16 %v849_v57, %v847_v52  ;;  %v439_v9 = vmul.f32 %v626_v56, %v626_v56  ;;  %v417_v19 = vadd.f32 %v626_v56, %v416_v12 }
  0xf4   :  { %v628_v63 = vpop.f32.mrf.mxu0  ;;  %v652_v0 = vpop.f32.mrf.mxu1 }
  0xf5   :  { %592 = vst [vmem:[%s888_s2 + $0x8] sm:$0xff] %v560_v60   ;;  %596 = vst [vmem:[%s888_s2 + $0x28] sm:$0xff] %v580_v61   ;;  %v629_v3 = vadd.f32 %v628_v63, %v627_v58  ;;  %v653_v7 = vadd.f32 %v652_v0, %v651_v59  ;;  %v454_v22 = vadd.f32 %v453_v15, %v439_v9 }
  0xf6   :  { %v630_v4 = vpop.f32.mrf.mxu0  ;;  %v654_v5 = vpop.f32.mrf.mxu1 }
  0xf7   :  { %v440_v16 = vmul.f32 %v629_v3, %v629_v3  ;;  %v418_v26 = vadd.f32 %v629_v3, %v417_v19  ;;  %v448_v60 = vmul.f32 %v653_v7, %v653_v7 }
  0xf8   :  { %v631_v10 = vpop.f32.mrf.mxu0  ;;  %v655_v11 = vpop.f32.mrf.mxu1 }
  0xf9   :  { %v632_v13 = vadd.f32 %v631_v10, %v630_v4  ;;  %v656_v14 = vadd.f32 %v655_v11, %v654_v5  ;;  %v455_v28 = vadd.f32 %v454_v22, %v440_v16  ;;  %v473_v11 = vlaneseq }
  0xfa   :  { %v633_v17 = vpop.f32.mrf.mxu0  ;;  %v657_v18 = vpop.f32.mrf.mxu1 }
  0xfb   :  { %v565_v20 = vpack.c.bf16 %v632_v13, %v629_v3  ;;  %v585_v21 = vpack.c.bf16 %v656_v14, %v653_v7  ;;  %v441_v23 = vmul.f32 %v632_v13, %v632_v13  ;;  %v419_v31 = vadd.f32 %v632_v13, %v418_v26 }
  0xfc   :  { %v634_v24 = vpop.f32.mrf.mxu0  ;;  %v658_v25 = vpop.f32.mrf.mxu1  ;;  %v449_v0 = vmul.f32 %v656_v14, %v656_v14 }
  0xfd   :  { %593 = vst [vmem:[%s888_s2 + $0x10] sm:$0xff] %v565_v20   ;;  %v635_v27 = vadd.f32 %v634_v24, %v633_v17  ;;  %597 = vst [vmem:[%s888_s2 + $0x30] sm:$0xff] %v585_v21   ;;  %v659_v33 = vadd.f32 %v658_v25, %v657_v18  ;;  %v456_v34 = vadd.f32 %v455_v28, %v441_v23 }
  0xfe   :  { %v636_v29 = vpop.f32.mrf.mxu0  ;;  %v660_v30 = vpop.f32.mrf.mxu1 }
  0xff   :  { %v442_v32 = vmul.f32 %v635_v27, %v635_v27  ;;  %v420_v37 = vadd.f32 %v635_v27, %v419_v31  ;;  %v450_v3 = vmul.f32 %v659_v33, %v659_v33 }
 0x100   :  { %v637_v35 = vpop.f32.mrf.mxu0  ;;  %v661_v36 = vpop.f32.mrf.mxu1 }
 0x101   :  { %v638_v39 = vadd.f32 %v637_v35, %v636_v29  ;;  %v662_v40 = vadd.f32 %v661_v36, %v660_v30  ;;  %v457_v41 = vadd.f32 %v456_v34, %v442_v32 }
 0x103   :  { %v570_v42 = vpack.c.bf16 %v638_v39, %v635_v27  ;;  %v421_v44 = vadd.f32 %v638_v39, %v420_v37  ;;  %v443_v45 = vmul.f32 %v638_v39, %v638_v39  ;;  %v590_v46 = vpack.c.bf16 %v662_v40, %v659_v33 }
 0x104   :  { %v451_v6 = vmul.f32 %v662_v40, %v662_v40 }
 0x105   :  { %594 = vst [vmem:[%s888_s2 + $0x18] sm:$0xff] %v570_v42   ;;  %v422_v48 = vadd.f32 %v835_v38, %v421_v44  ;;  %v458_v49 = vadd.f32 %v457_v41, %v443_v45  ;;  %598 = vst [vmem:[%s888_s2 + $0x38] sm:$0xff] %v590_v46   ;;  %v447_v38 = vmul.f32 %v849_v57, %v849_v57 }
 0x107   :  { %v423_v51 = vadd.f32 %v837_v43, %v422_v48  ;;  %v459_v53 = vadd.f32 %v458_v49, %v444_v47 }
 0x109   :  { %v460_v55 = vadd.f32 %v459_v53, %v445_v50  ;;  %v424_v56 = vadd.f32 %v847_v52, %v423_v51 }
 0x10b   :  { %v425_v58 = vadd.f32 %v849_v57, %v424_v56  ;;  %v461_v59 = vadd.f32 %v460_v55, %v446_v54 }
 0x10d   :  { %v426_v61 = vadd.f32 %v653_v7, %v425_v58  ;;  %v462_v62 = vadd.f32 %v461_v59, %v447_v38  ;;  %v474_v7 = vshrl.u32 %v473_v11, 7 }
 0x10f   :  { %v427_v63 = vadd.f32 %v656_v14, %v426_v61  ;;  %v463_v1 = vadd.f32 %v462_v62, %v448_v60  ;;  %vm476_vm0 = vcmp.eq.s32.totalorder %v474_v7, 1  ;;  %vm475_vm1 = vcmp.eq.s32.totalorder %v474_v7, 0 }
 0x111   :  { %v464_v43 = vadd.f32 %v463_v1, %v449_v0  ;;  %v428_v2 = vadd.f32 %v659_v33, %v427_v63 }
 0x113   :  { %v465_v4 = vadd.f32 %v464_v43, %v450_v3  ;;  %v429_v5 = vadd.f32 %v662_v40, %v428_v2 }
 0x115   :  { %v430_v8 = vrot.slane %v429_v5, 4  ;;  %v466_v52 = vadd.f32 %v465_v4, %v451_v6 }
 0x117   :  { %v431_v9 = vadd.f32 %v430_v8, %v429_v5  ;;  %v467_v10 = vrot.slane %v466_v52, 4 }
 0x119   :  { %v432_v12 = vrot.slane %v431_v9, 2  ;;  %v468_v57 = vadd.f32 %v467_v10, %v466_v52 }
 0x11b   :  { %v433_v13 = vadd.f32 %v432_v12, %v431_v9  ;;  %v469_v15 = vrot.slane %v468_v57, 2 }
 0x11d   :  { %v470_v16 = vadd.f32 %v469_v15, %v468_v57  ;;  %v434_v17 = vrot.slane %v433_v13, 1 }
 0x11f   :  { %v471_v14 = vrot.slane %v470_v16, 1  ;;  %v435_v19 = vadd.f32 %v434_v17, %v433_v13 }
 0x121   :  { %v472_v18 = vadd.f32 %v471_v14, %v470_v16 }
 0x123   :  { %v477_v20 = vsel %vm476_vm0, %v472_v18, 0.0 }
 0x124   :  { %v478_v21 = vsel %vm475_vm1, %v435_v19, %v477_v20 }
 0x125   :  { %479 = vst [vmem:[%s889_s3] sm:$0xff] %v478_v21 }

// kernel: discriminator_forward.12
= control target key start
LH: loop header
LB: loop body
LE: loop exit
PB: predicated region body
PF: predicated region fallthrough
CT: control target
= control target key end

     0   :  { %s455_s0 = inlined_call_operand.vmem [shape: bf16[128,128], index: 0, kind: input, shape index: {}]   ;;  %s456_s1 = inlined_call_operand.vmem [shape: f32[1,128], index: 1, kind: input, shape index: {}]   ;;  %s457_s2 = inlined_call_operand.vmem [shape: f32[1,128], index: 2, kind: input, shape index: {}]   ;;  %s458_s3 = inlined_call_operand.vmem [shape: bf16[128,128], index: 3, kind: output, shape index: {}]  }
   0x1   :  { %v259_v0 = vld [vmem:[%s455_s0] sm:$0xff]   ;;  %v330_v4 = vld [vmem:[%s455_s0 + $0x8] sm:$0xff]   ;;  %v331_v5 = vld [vmem:[%s455_s0 + $0x10] sm:$0xff]  }
   0x2   :  { %v370_v1 = vld [vmem:[%s456_s1] ss:$0 sm:$0xff]  ;;  %v260_v2 = vunpack.c.l.bf16 %v259_v0  ;;  %v261_v3 = vunpack.c.h.bf16 %v259_v0  ;;  %v332_v6 = vld [vmem:[%s455_s0 + $0x18] sm:$0xff]   ;;  %v264_v8 = vunpack.c.l.bf16 %v330_v4  ;;  %v265_v9 = vunpack.c.h.bf16 %v330_v4  ;;  %v334_v35 = vld [vmem:[%s455_s0 + $0x28] sm:$0xff]  }
   0x3   :  { %v384_v7 = vld [vmem:[%s457_s2] ss:$0 sm:$0xff]  ;;  %v268_v10 = vunpack.c.l.bf16 %v331_v5  ;;  %v269_v11 = vunpack.c.h.bf16 %v331_v5  ;;  %v272_v14 = vunpack.c.l.bf16 %v332_v6  ;;  %v273_v15 = vunpack.c.h.bf16 %v332_v6  ;;  %v335_v48 = vld [vmem:[%s455_s0 + $0x30] sm:$0xff]   ;;  %v336_v4 = vld [vmem:[%s455_s0 + $0x38] sm:$0xff]  }
   0x4   :  { %v53_v12 = vmul.f32 %v260_v2, %v370_v1  ;;  %v54_v13 = vmul.f32 %v261_v3, %v370_v1  ;;  %v55_v16 = vmul.f32 %v264_v8, %v370_v1  ;;  %v56_v17 = vmul.f32 %v265_v9, %v370_v1  ;;  %v333_v34 = vld [vmem:[%s455_s0 + $0x20] sm:$0xff]  }
   0x5   :  { %v57_v18 = vmul.f32 %v268_v10, %v370_v1  ;;  %v58_v19 = vmul.f32 %v269_v11, %v370_v1  ;;  %v59_v22 = vmul.f32 %v272_v14, %v370_v1  ;;  %v60_v23 = vmul.f32 %v273_v15, %v370_v1 }
   0x6   :  { %v76_v20 = vadd.f32 %v384_v7, %v53_v12  ;;  %v77_v21 = vadd.f32 %v384_v7, %v54_v13  ;;  %v78_v24 = vadd.f32 %v384_v7, %v55_v16  ;;  %v79_v25 = vadd.f32 %v384_v7, %v56_v17 }
   0x7   :  { %v80_v26 = vadd.f32 %v384_v7, %v57_v18  ;;  %v81_v27 = vadd.f32 %v384_v7, %v58_v19  ;;  %v82_v42 = vadd.f32 %v384_v7, %v59_v22  ;;  %v83_v43 = vadd.f32 %v384_v7, %v60_v23 }
   0x8   :  { %vm92_vm0 = vcmp.gt.f32.partialorder %v76_v20, 0.0  ;;  %vm93_vm1 = vcmp.gt.f32.partialorder %v77_v21, 0.0  ;;  %v108_v28 = vmul.f32 0.2, %v76_v20  ;;  %v109_v29 = vmul.f32 0.2, %v77_v21 }
   0x9   :  { %vm94_vm2 = vcmp.gt.f32.partialorder %v78_v24, 0.0  ;;  %vm95_vm3 = vcmp.gt.f32.partialorder %v79_v25, 0.0  ;;  %v110_v30 = vmul.f32 0.2, %v78_v24  ;;  %v111_v31 = vmul.f32 0.2, %v79_v25 }
   0xa   :  { %v124_v32 = vsel %vm92_vm0, %v76_v20, %v108_v28  ;;  %v125_v33 = vsel %vm93_vm1, %v77_v21, %v109_v29  ;;  %vm96_vm4 = vcmp.gt.f32.partialorder %v80_v26, 0.0  ;;  %vm97_vm5 = vcmp.gt.f32.partialorder %v81_v27, 0.0 }
   0xb   :  { %v293_v36 = vpack.c.bf16 %v125_v33, %v124_v32  ;;  %v126_v37 = vsel %vm94_vm2, %v78_v24, %v110_v30  ;;  %v127_v38 = vsel %vm95_vm3, %v79_v25, %v111_v31  ;;  %v112_v39 = vmul.f32 0.2, %v80_v26 }
   0xc   :  { %v298_v40 = vpack.c.bf16 %v127_v38, %v126_v37  ;;  %v113_v41 = vmul.f32 0.2, %v81_v27  ;;  %v276_v45 = vunpack.c.l.bf16 %v333_v34  ;;  %v277_v46 = vunpack.c.h.bf16 %v333_v34 }
   0xd   :  { %294 = vst [vmem:[%s458_s3] sm:$0xff] %v293_v36   ;;  %v128_v44 = vsel %vm96_vm4, %v80_v26, %v112_v39  ;;  %v280_v47 = vunpack.c.l.bf16 %v334_v35  ;;  %vm98_vm6 = vcmp.gt.f32.partialorder %v82_v42, 0.0  ;;  %vm99_vm7 = vcmp.gt.f32.partialorder %v83_v43, 0.0 }
   0xe   :  { %337 = vst [vmem:[%s458_s3 + $0x8] sm:$0xff] %v298_v40   ;;  %v129_v49 = vsel %vm97_vm5, %v81_v27, %v113_v41  ;;  %v114_v50 = vmul.f32 0.2, %v82_v42  ;;  %v115_v52 = vmul.f32 0.2, %v83_v43  ;;  %v61_v53 = vmul.f32 %v276_v45, %v370_v1 }
   0xf   :  { %v303_v51 = vpack.c.bf16 %v129_v49, %v128_v44  ;;  %v62_v54 = vmul.f32 %v277_v46, %v370_v1  ;;  %v281_v56 = vunpack.c.h.bf16 %v334_v35  ;;  %v63_v57 = vmul.f32 %v280_v47, %v370_v1 }
  0x10   :  { %v130_v55 = vsel %vm98_vm6, %v82_v42, %v114_v50  ;;  %v284_v58 = vunpack.c.l.bf16 %v335_v48  ;;  %v131_v59 = vsel %vm99_vm7, %v83_v43, %v115_v52  ;;  %v84_v60 = vadd.f32 %v384_v7, %v61_v53 }
  0x11   :  { %338 = vst [vmem:[%s458_s3 + $0x10] sm:$0xff] %v303_v51   ;;  %v85_v61 = vadd.f32 %v384_v7, %v62_v54  ;;  %v285_v62 = vunpack.c.h.bf16 %v335_v48  ;;  %v308_v63 = vpack.c.bf16 %v131_v59, %v130_v55  ;;  %v64_v0 = vmul.f32 %v281_v56, %v370_v1 }
  0x12   :  { %v86_v2 = vadd.f32 %v384_v7, %v63_v57  ;;  %v65_v3 = vmul.f32 %v284_v58, %v370_v1  ;;  %vm100_vm8 = vcmp.gt.f32.partialorder %v84_v60, 0.0  ;;  %v116_v5 = vmul.f32 0.2, %v84_v60 }
  0x13   :  { %vm101_vm9 = vcmp.gt.f32.partialorder %v85_v61, 0.0  ;;  %v117_v6 = vmul.f32 0.2, %v85_v61  ;;  %339 = vst [vmem:[%s458_s3 + $0x18] sm:$0xff] %v308_v63   ;;  %v87_v8 = vadd.f32 %v384_v7, %v64_v0  ;;  %v66_v10 = vmul.f32 %v285_v62, %v370_v1 }
  0x14   :  { %vm102_vm10 = vcmp.gt.f32.partialorder %v86_v2, 0.0  ;;  %v118_v9 = vmul.f32 0.2, %v86_v2  ;;  %v132_v11 = vsel %vm100_vm8, %v84_v60, %v116_v5  ;;  %v88_v13 = vadd.f32 %v384_v7, %v65_v3 }
  0x15   :  { %v133_v12 = vsel %vm101_vm9, %v85_v61, %v117_v6  ;;  %v288_v14 = vunpack.c.l.bf16 %v336_v4  ;;  %vm103_vm11 = vcmp.gt.f32.partialorder %v87_v8, 0.0  ;;  %v119_v16 = vmul.f32 0.2, %v87_v8 }
  0x16   :  { %v313_v15 = vpack.c.bf16 %v133_v12, %v132_v11  ;;  %v134_v17 = vsel %vm102_vm10, %v86_v2, %v118_v9  ;;  %v89_v18 = vadd.f32 %v384_v7, %v66_v10  ;;  %vm104_vm12 = vcmp.gt.f32.partialorder %v88_v13, 0.0 }
  0x17   :  { %v120_v19 = vmul.f32 0.2, %v88_v13  ;;  %v289_v20 = vunpack.c.h.bf16 %v336_v4  ;;  %v135_v21 = vsel %vm103_vm11, %v87_v8, %v119_v16  ;;  %v67_v22 = vmul.f32 %v288_v14, %v370_v1 }
  0x18   :  { %340 = vst [vmem:[%s458_s3 + $0x20] sm:$0xff] %v313_v15   ;;  %v318_v23 = vpack.c.bf16 %v135_v21, %v134_v17  ;;  %vm105_vm13 = vcmp.gt.f32.partialorder %v89_v18, 0.0  ;;  %v121_v24 = vmul.f32 0.2, %v89_v18 }
  0x19   :  { %v136_v25 = vsel %vm104_vm12, %v88_v13, %v120_v19  ;;  %v68_v26 = vmul.f32 %v289_v20, %v370_v1  ;;  %v90_v27 = vadd.f32 %v384_v7, %v67_v22 }
  0x1a   :  { %341 = vst [vmem:[%s458_s3 + $0x28] sm:$0xff] %v318_v23   ;;  %v137_v28 = vsel %vm105_vm13, %v89_v18, %v121_v24 }
  0x1b   :  { %v323_v29 = vpack.c.bf16 %v137_v28, %v136_v25  ;;  %v91_v30 = vadd.f32 %v384_v7, %v68_v26  ;;  %vm106_vm14 = vcmp.gt.f32.partialorder %v90_v27, 0.0  ;;  %v122_v31 = vmul.f32 0.2, %v90_v27 }
  0x1d   :  { %342 = vst [vmem:[%s458_s3 + $0x30] sm:$0xff] %v323_v29   ;;  %vm107_vm15 = vcmp.gt.f32.partialorder %v91_v30, 0.0  ;;  %v123_v32 = vmul.f32 0.2, %v91_v30  ;;  %v138_v33 = vsel %vm106_vm14, %v90_v27, %v122_v31 }
  0x1f   :  { %v139_v1 = vsel %vm107_vm15, %v91_v30, %v123_v32 }
  0x20   :  { %v328_v34 = vpack.c.bf16 %v139_v1, %v138_v33 }
  0x22   :  { %343 = vst [vmem:[%s458_s3 + $0x38] sm:$0xff] %v328_v34  }

// kernel: discriminator_forward.14
= control target key start
LH: loop header
LB: loop body
LE: loop exit
PB: predicated region body
PF: predicated region fallthrough
CT: control target
= control target key end

     0   :  { %s148_s0 = inlined_call_operand.vmem [shape: bf16[32,128], index: 0, kind: input, shape index: {}]   ;;  %s149_s1 = inlined_call_operand.vmem [shape: f32[1,128], index: 1, kind: input, shape index: {}]   ;;  %s150_s2 = inlined_call_operand.vmem [shape: f32[1,128], index: 2, kind: input, shape index: {}]   ;;  %s151_s3 = inlined_call_operand.vmem [shape: bf16[32,128], index: 3, kind: output, shape index: {}]  }
   0x1   :  { %v91_v0 = vld [vmem:[%s148_s0] sm:$0xff]   ;;  %v108_v4 = vld [vmem:[%s148_s0 + $0x8] sm:$0xff]  }
   0x2   :  { %v80_v1 = vld [vmem:[%s149_s1] ss:$0 sm:$0xff]  ;;  %v92_v2 = vunpack.c.l.bf16 %v91_v0  ;;  %v93_v3 = vunpack.c.h.bf16 %v91_v0  ;;  %v96_v6 = vunpack.c.l.bf16 %v108_v4  ;;  %v97_v7 = vunpack.c.h.bf16 %v108_v4 }
   0x3   :  { %v81_v5 = vld [vmem:[%s150_s2] ss:$0 sm:$0xff] }
   0x4   :  { %v29_v8 = vmul.f32 %v92_v2, %v80_v1  ;;  %v30_v9 = vmul.f32 %v93_v3, %v80_v1  ;;  %v31_v10 = vmul.f32 %v96_v6, %v80_v1  ;;  %v32_v11 = vmul.f32 %v97_v7, %v80_v1 }
   0x6   :  { %v40_v12 = vadd.f32 %v81_v5, %v29_v8  ;;  %v41_v13 = vadd.f32 %v81_v5, %v30_v9  ;;  %v42_v14 = vadd.f32 %v81_v5, %v31_v10  ;;  %v43_v15 = vadd.f32 %v81_v5, %v32_v11 }
   0x8   :  { %vm44_vm0 = vcmp.gt.f32.partialorder %v40_v12, 0.0  ;;  %vm45_vm1 = vcmp.gt.f32.partialorder %v41_v13, 0.0  ;;  %v48_v16 = vmul.f32 0.2, %v40_v12  ;;  %v49_v17 = vmul.f32 0.2, %v41_v13 }
   0x9   :  { %vm46_vm2 = vcmp.gt.f32.partialorder %v42_v14, 0.0  ;;  %vm47_vm3 = vcmp.gt.f32.partialorder %v43_v15, 0.0  ;;  %v50_v18 = vmul.f32 0.2, %v42_v14  ;;  %v51_v19 = vmul.f32 0.2, %v43_v15 }
   0xa   :  { %v52_v20 = vsel %vm44_vm0, %v40_v12, %v48_v16  ;;  %v53_v21 = vsel %vm45_vm1, %v41_v13, %v49_v17 }
   0xb   :  { %v101_v22 = vpack.c.bf16 %v53_v21, %v52_v20  ;;  %v54_v23 = vsel %vm46_vm2, %v42_v14, %v50_v18  ;;  %v55_v24 = vsel %vm47_vm3, %v43_v15, %v51_v19 }
   0xc   :  { %v106_v25 = vpack.c.bf16 %v55_v24, %v54_v23 }
   0xd   :  { %102 = vst [vmem:[%s151_s3] sm:$0xff] %v101_v22  }
   0xe   :  { %109 = vst [vmem:[%s151_s3 + $0x8] sm:$0xff] %v106_v25  }

// kernel: discriminator_forward.13
= control target key start
LH: loop header
LB: loop body
LE: loop exit
PB: predicated region body
PF: predicated region fallthrough
CT: control target
= control target key end

     0   :  { %s781_s1 = inlined_call_operand.vmem [shape: bf16[512,128], index: 1, kind: input, shape index: {}]   ;;  %s782_s0 = inlined_call_operand.vmem [shape: bf16[32,512], index: 0, kind: input, shape index: {}]   ;;  %s783_s2 = inlined_call_operand.vmem [shape: bf16[32,128], index: 2, kind: output, shape index: {0}]   ;;  %s784_s3 = inlined_call_operand.vmem [shape: f32[8,128], index: 3, kind: output, shape index: {1}]  }
   0x1   :  { %v588_v0 = vld [vmem:[%s781_s1 + $0x78] sm:$0xff]   ;;  %v592_v4 = vld [vmem:[%s781_s1 + $0x70] sm:$0xff]   ;;  %v596_v8 = vld [vmem:[%s781_s1 + $0x68] sm:$0xff]  }
   0x2   :  { %v589_v1 = vld [vmem:[%s781_s1 + $0xf8] sm:$0xff]   ;;  %532 = vmatprep.subr.bf16.mxu0 %v588_v0  ;;  %v593_v5 = vld [vmem:[%s781_s1 + $0xf0] sm:$0xff]   ;;  %v597_v9 = vld [vmem:[%s781_s1 + $0xe8] sm:$0xff]  }
   0x3   :  { %v590_v2 = vld [vmem:[%s781_s1 + $0x38] sm:$0xff]   ;;  %560 = vmatprep.subr.bf16.mxu1 %v589_v1  ;;  %v594_v6 = vld [vmem:[%s781_s1 + $0x30] sm:$0xff]   ;;  %v598_v10 = vld [vmem:[%s781_s1 + $0x28] sm:$0xff]  }
   0x4   :  { %v591_v3 = vld [vmem:[%s781_s1 + $0xb8] sm:$0xff]   ;;  %533 = vmatpush3.bf16.msra.mxu0 %v590_v2  ;;  %v595_v7 = vld [vmem:[%s781_s1 + $0xb0] sm:$0xff]   ;;  %v599_v11 = vld [vmem:[%s781_s1 + $0xa8] sm:$0xff]  }
   0x5   :  { %561 = vmatpush3.bf16.msra.mxu1 %v591_v3  ;;  %534 = vmatprep.subr.bf16.mxu0 %v592_v4  ;;  %v600_v12 = vld [vmem:[%s781_s1 + $0x60] sm:$0xff]   ;;  %v604_v16 = vld [vmem:[%s781_s1 + $0x58] sm:$0xff]   ;;  %v608_v20 = vld [vmem:[%s781_s1 + $0x50] sm:$0xff]  }
   0x6   :  { %562 = vmatprep.subr.bf16.mxu1 %v593_v5  ;;  %v601_v13 = vld [vmem:[%s781_s1 + $0xe0] sm:$0xff]   ;;  %v605_v17 = vld [vmem:[%s781_s1 + $0xd8] sm:$0xff]   ;;  %v609_v21 = vld [vmem:[%s781_s1 + $0xd0] sm:$0xff]  }
   0x7   :  { %v602_v14 = vld [vmem:[%s781_s1 + $0x20] sm:$0xff]   ;;  %v606_v18 = vld [vmem:[%s781_s1 + $0x18] sm:$0xff]   ;;  %v610_v22 = vld [vmem:[%s781_s1 + $0x10] sm:$0xff]  }
   0x8   :  { %535 = vmatpush3.bf16.msra.mxu0 %v594_v6  ;;  %v603_v15 = vld [vmem:[%s781_s1 + $0xa0] sm:$0xff]   ;;  %v607_v19 = vld [vmem:[%s781_s1 + $0x98] sm:$0xff]   ;;  %v611_v23 = vld [vmem:[%s781_s1 + $0x90] sm:$0xff]  }
   0x9   :  { %563 = vmatpush3.bf16.msra.mxu1 %v595_v7  ;;  %536 = vmatprep.subr.bf16.mxu0 %v596_v8  ;;  %v612_v24 = vld [vmem:[%s781_s1 + $0x48] sm:$0xff]   ;;  %v616_v28 = vld [vmem:[%s781_s1 + $0x40] sm:$0xff]  }
   0xa   :  { %564 = vmatprep.subr.bf16.mxu1 %v597_v9  ;;  %v613_v25 = vld [vmem:[%s781_s1 + $0xc8] sm:$0xff]   ;;  %v617_v29 = vld [vmem:[%s781_s1 + $0xc0] sm:$0xff]  }
   0xb   :  { %v614_v26 = vld [vmem:[%s781_s1 + $0x8] sm:$0xff]   ;;  %v618_v30 = vld [vmem:[%s781_s1] sm:$0xff]  }
   0xc   :  { %537 = vmatpush3.bf16.msra.mxu0 %v598_v10  ;;  %v615_v27 = vld [vmem:[%s781_s1 + $0x88] sm:$0xff]   ;;  %v619_v31 = vld [vmem:[%s781_s1 + $0x80] sm:$0xff]  }
   0xd   :  { %565 = vmatpush3.bf16.msra.mxu1 %v599_v11  ;;  %538 = vmatprep.subr.bf16.mxu0 %v600_v12  ;;  %v620_v32 = vld [vmem:[%s782_s0] ss:$16 sps:$4 sm:$0xff]   ;;  %v622_v33 = vld [vmem:[%s782_s0 + $0x4] ss:$16 sps:$4 sm:$0xff]   ;;  %v623_v34 = vld [vmem:[%s782_s0 + $0x8] ss:$16 sps:$4 sm:$0xff]  }
   0xe   :  { %566 = vmatprep.subr.bf16.mxu1 %v601_v13  ;;  %v625_v35 = vld [vmem:[%s782_s0 + $0xc] ss:$16 sps:$4 sm:$0xff]   ;;  %350 = vmatprep.mubr.bf16.mxu0 %v622_v33  ;;  %v626_v36 = vld [vmem:[%s782_s0 + $0x24] ss:$16 sps:$4 sm:$0xff]   ;;  %v630_v38 = vld [vmem:[%s782_s0 + $0x20] ss:$16 sps:$4 sm:$0xff]  }
   0xf   :  { %399 = vmatprep.mubr.bf16.mxu1 %v625_v35  ;;  %v628_v37 = vld [vmem:[%s782_s0 + $0x2c] ss:$16 sps:$4 sm:$0xff]   ;;  %v631_v39 = vld [vmem:[%s782_s0 + $0x28] ss:$16 sps:$4 sm:$0xff]  }
  0x10   :  { %539 = vmatpush3.bf16.msra.mxu0 %v602_v14 }
  0x11   :  { %567 = vmatpush3.bf16.msra.mxu1 %v603_v15  ;;  %540 = vmatprep.subr.bf16.mxu0 %v604_v16 }
  0x12   :  { %568 = vmatprep.subr.bf16.mxu1 %v605_v17 }
  0x14   :  { %541 = vmatpush3.bf16.msra.mxu0 %v606_v18 }
  0x15   :  { %569 = vmatpush3.bf16.msra.mxu1 %v607_v19  ;;  %542 = vmatprep.subr.bf16.mxu0 %v608_v20  ;;  %v458_v19 = vlaneseq }
  0x16   :  { %570 = vmatprep.subr.bf16.mxu1 %v609_v21 }
  0x18   :  { %543 = vmatpush3.bf16.msra.mxu0 %v610_v22 }
  0x19   :  { %571 = vmatpush3.bf16.msra.mxu1 %v611_v23  ;;  %544 = vmatprep.subr.bf16.mxu0 %v612_v24  ;;  %v459_v24 = vshrl.u32 %v458_v19, 7 }
  0x1a   :  { %572 = vmatprep.subr.bf16.mxu1 %v613_v25 }
  0x1b   :  { %vm461_vm0 = vcmp.eq.s32.totalorder %v459_v24, 1  ;;  %vm460_vm1 = vcmp.eq.s32.totalorder %v459_v24, 0 }
  0x1c   :  { %545 = vmatpush3.bf16.msra.mxu0 %v614_v26 }
  0x1d   :  { %573 = vmatpush3.bf16.msra.mxu1 %v615_v27  ;;  %546 = vmatprep.subr.bf16.mxu0 %v616_v28 }
  0x1e   :  { %574 = vmatprep.subr.bf16.mxu1 %v617_v29 }
  0x20   :  { %547 = vmatpush3.bf16.msra.mxu0 %v618_v30 }
  0x21   :  { %575 = vmatpush3.bf16.msra.mxu1 %v619_v31 }
  0x23   :  { %351 = vmatmul.mubr.bf16.vlgmr.msra.gmra.mxu0 %v620_v32 }
  0x24   :  { %400 = vmatmul.mubr.bf16.vlgmr.msra.gmra.mxu1 %v623_v34  ;;  %358 = vmatprep.mubr.bf16.mxu0 %v626_v36 }
  0x25   :  { %407 = vmatprep.mubr.bf16.mxu1 %v628_v37 }
  0x2b   :  { %359 = vmatmul.mubr.bf16.gmra.mxu0 %v630_v38 }
  0x2c   :  { %408 = vmatmul.mubr.bf16.gmra.mxu1 %v631_v39 }
  0xe3   :  { %v548_v40 = vpop.f32.mrf.mxu0 }
  0xe4   :  { %v576_v41 = vpop.f32.mrf.mxu1 }
  0xe5   :  { %v549_v42 = vpop.f32.mrf.mxu0 }
  0xe6   :  { %v577_v43 = vpop.f32.mrf.mxu1  ;;  %v550_v46 = vadd.f32 %v549_v42, %v548_v40 }
  0xe7   :  { %v551_v44 = vpop.f32.mrf.mxu0  ;;  %v578_v47 = vadd.f32 %v577_v43, %v576_v41 }
  0xe8   :  { %v579_v45 = vpop.f32.mrf.mxu1 }
  0xe9   :  { %v552_v48 = vpop.f32.mrf.mxu0  ;;  %v402_v54 = vadd.f32 %v578_v47, %v550_v46 }
  0xea   :  { %v553_v49 = vadd.f32 %v552_v48, %v551_v44  ;;  %v580_v50 = vpop.f32.mrf.mxu1 }
  0xeb   :  { %v581_v51 = vadd.f32 %v580_v50, %v579_v45  ;;  %v554_v52 = vpop.f32.mrf.mxu0  ;;  %v445_v4 = vmul.f32 %v402_v54, %v402_v54 }
  0xec   :  { %v582_v53 = vpop.f32.mrf.mxu1 }
  0xed   :  { %v405_v55 = vadd.f32 %v581_v51, %v553_v49  ;;  %v555_v56 = vpop.f32.mrf.mxu0 }
  0xee   :  { %v556_v57 = vadd.f32 %v555_v56, %v554_v52  ;;  %v583_v58 = vpop.f32.mrf.mxu1 }
  0xef   :  { %v524_v59 = vpack.c.bf16 %v405_v55, %v402_v54  ;;  %v584_v60 = vadd.f32 %v583_v58, %v582_v53  ;;  %v557_v61 = vpop.f32.mrf.mxu0  ;;  %v446_v63 = vmul.f32 %v405_v55, %v405_v55  ;;  %v436_v5 = vadd.f32 %v405_v55, %v402_v54 }
  0xf0   :  { %v585_v62 = vpop.f32.mrf.mxu1 }
  0xf1   :  { %525 = vst [vmem:[%s783_s2] sm:$0xff] %v524_v59   ;;  %v410_v0 = vadd.f32 %v584_v60, %v556_v57  ;;  %v558_v1 = vpop.f32.mrf.mxu0  ;;  %v449_v8 = vadd.f32 %v446_v63, %v445_v4 }
  0xf2   :  { %v559_v2 = vadd.f32 %v558_v1, %v557_v61  ;;  %v586_v3 = vpop.f32.mrf.mxu1 }
  0xf3   :  { %v447_v6 = vmul.f32 %v410_v0, %v410_v0  ;;  %v587_v7 = vadd.f32 %v586_v3, %v585_v62  ;;  %v437_v9 = vadd.f32 %v436_v5, %v410_v0 }
  0xf5   :  { %v413_v10 = vadd.f32 %v587_v7, %v559_v2  ;;  %v450_v11 = vadd.f32 %v449_v8, %v447_v6 }
  0xf7   :  { %v529_v12 = vpack.c.bf16 %v413_v10, %v410_v0  ;;  %v438_v13 = vadd.f32 %v437_v9, %v413_v10  ;;  %v448_v14 = vmul.f32 %v413_v10, %v413_v10 }
  0xf9   :  { %531 = vst [vmem:[%s783_s2 + $0x8] sm:$0xff] %v529_v12   ;;  %v439_v15 = vrot.slane %v438_v13, 4  ;;  %v451_v16 = vadd.f32 %v450_v11, %v448_v14 }
  0xfb   :  { %v440_v17 = vadd.f32 %v439_v15, %v438_v13  ;;  %v452_v18 = vrot.slane %v451_v16, 4 }
  0xfd   :  { %v441_v20 = vrot.slane %v440_v17, 2  ;;  %v453_v21 = vadd.f32 %v452_v18, %v451_v16 }
  0xff   :  { %v442_v22 = vadd.f32 %v441_v20, %v440_v17  ;;  %v454_v23 = vrot.slane %v453_v21, 2 }
 0x101   :  { %v455_v25 = vadd.f32 %v454_v23, %v453_v21  ;;  %v443_v26 = vrot.slane %v442_v22, 1 }
 0x103   :  { %v456_v27 = vrot.slane %v455_v25, 1  ;;  %v444_v29 = vadd.f32 %v443_v26, %v442_v22 }
 0x105   :  { %v457_v28 = vadd.f32 %v456_v27, %v455_v25 }
 0x107   :  { %v462_v30 = vsel %vm461_vm0, %v457_v28, 0.0 }
 0x108   :  { %v463_v31 = vsel %vm460_vm1, %v444_v29, %v462_v30 }
 0x109   :  { %464 = vst [vmem:[%s784_s3] sm:$0xff] %v463_v31 }

// kernel: discriminator_forward.15
= control target key start
LH: loop header
LB: loop body
LE: loop exit
PB: predicated region body
PF: predicated region fallthrough
CT: control target
= control target key end

     0   :  { %v40_v0 = vlaneseq  ;;  %vm158_vm0 = vcmask 7168   ;;  %s223_s0 = inlined_call_operand.vmem [shape: bf16[16,1024], index: 0, kind: input, shape index: {}]   ;;  %s224_s1 = inlined_call_operand.vmem [shape: bf16[1,1024], index: 1, kind: input, shape index: {}]   ;;  %s225_s2 = inlined_call_operand.vmem [shape: f32[16,1], index: 2, kind: output, shape index: {}]  }
   0x1   :  { %v11_v1 = vld [vmem:[%s223_s0] sm:$0xff]  ;;  %v12_v3 = vld [vmem:[%s223_s0 + $0x8] sm:$0xff]  ;;  %v13_v18 = vld [vmem:[%s223_s0 + $0x10] sm:$0xff] }
   0x2   :  { %v35_v2 = vld [vmem:[%s224_s1] sm:$0xff]  ;;  %v41_v5 = vshrl.u32 %v40_v0, 7  ;;  %v19_v7 = vunpack.c.l.bf16 %v11_v1  ;;  %v16_v13 = vld [vmem:[%s223_s0 + $0x28] sm:$0xff]  ;;  %v20_v14 = vunpack.c.h.bf16 %v11_v1  ;;  %v21_v15 = vunpack.c.l.bf16 %v12_v3  ;;  %v17_v31 = vld [vmem:[%s223_s0 + $0x30] sm:$0xff] }
   0x3   :  { %v36_v4 = vunpack.c.l.bf16 %v35_v2  ;;  %v15_v6 = vld [vmem:[%s223_s0 + $0x20] sm:$0xff]  ;;  %v37_v8 = vunpack.c.h.bf16 %v35_v2  ;;  %v22_v16 = vunpack.c.h.bf16 %v12_v3  ;;  %v29_v26 = vunpack.c.l.bf16 %v16_v13  ;;  %v14_v36 = vld [vmem:[%s223_s0 + $0x18] sm:$0xff] }
   0x4   :  { %v42_v9 = vsub.s32 0, %v41_v5  ;;  %v46_v10 = vsub.s32 2, %v41_v5  ;;  %v50_v11 = vsub.s32 4, %v41_v5  ;;  %v54_v12 = vsub.s32 6, %v41_v5  ;;  %v18_v46 = vld [vmem:[%s223_s0 + $0x38] sm:$0xff] }
   0x5   :  { %v27_v17 = vunpack.c.l.bf16 %v15_v6  ;;  %v28_v25 = vunpack.c.h.bf16 %v15_v6  ;;  %v23_v32 = vunpack.c.l.bf16 %v13_v18  ;;  %v24_v33 = vunpack.c.h.bf16 %v13_v18 }
   0x6   :  { %v43_v19 = vrot.slane %v36_v4, %v42_v9  ;;  %v47_v20 = vrot.slane %v36_v4, %v46_v10  ;;  %v51_v21 = vrot.slane %v36_v4, %v50_v11  ;;  %v55_v22 = vrot.slane %v36_v4, %v54_v12 }
   0x7   :  { %v59_v23 = vrot.slane %v37_v8, %v42_v9  ;;  %v63_v24 = vrot.slane %v37_v8, %v46_v10  ;;  %v67_v34 = vrot.slane %v37_v8, %v50_v11  ;;  %v30_v35 = vunpack.c.h.bf16 %v16_v13 }
   0x8   :  { %v83_v27 = vrot.slane %v43_v19, %v42_v9  ;;  %v87_v28 = vrot.slane %v47_v20, %v42_v9  ;;  %v91_v29 = vrot.slane %v51_v21, %v42_v9  ;;  %v95_v30 = vrot.slane %v55_v22, %v42_v9 }
   0x9   :  { %v99_v37 = vrot.slane %v59_v23, %v42_v9  ;;  %v71_v41 = vrot.slane %v37_v8, %v54_v12  ;;  %v103_v42 = vrot.slane %v63_v24, %v42_v9  ;;  %v31_v44 = vunpack.c.l.bf16 %v17_v31 }
   0xa   :  { %v112_v38 = vmul.f32 %v83_v27, %v19_v7  ;;  %v113_v39 = vmul.f32 %v87_v28, %v20_v14  ;;  %v114_v40 = vmul.f32 %v91_v29, %v21_v15  ;;  %v115_v43 = vmul.f32 %v95_v30, %v22_v16 }
   0xb   :  { %v120_v47 = vmul.f32 %v83_v27, %v27_v17  ;;  %v121_v48 = vmul.f32 %v87_v28, %v28_v25  ;;  %v122_v49 = vmul.f32 %v91_v29, %v29_v26  ;;  %v25_v50 = vunpack.c.l.bf16 %v14_v36 }
   0xc   :  { %v128_v45 = vadd.f32 %v113_v39, %v112_v38  ;;  %v107_v51 = vrot.slane %v67_v34, %v42_v9  ;;  %v32_v52 = vunpack.c.h.bf16 %v17_v31  ;;  %v116_v53 = vmul.f32 %v99_v37, %v23_v32 }
   0xd   :  { %v123_v55 = vmul.f32 %v95_v30, %v30_v35  ;;  %v137_v56 = vadd.f32 %v121_v48, %v120_v47  ;;  %v26_v57 = vunpack.c.h.bf16 %v14_v36  ;;  %v111_v58 = vrot.slane %v71_v41, %v42_v9 }
   0xe   :  { %v129_v54 = vadd.f32 %v128_v45, %v114_v40  ;;  %v33_v59 = vunpack.c.l.bf16 %v18_v46  ;;  %v117_v60 = vmul.f32 %v103_v42, %v24_v33  ;;  %v124_v62 = vmul.f32 %v99_v37, %v31_v44 }
   0xf   :  { %v138_v63 = vadd.f32 %v137_v56, %v122_v49  ;;  %v34_v0 = vunpack.c.h.bf16 %v18_v46  ;;  %v118_v1 = vmul.f32 %v107_v51, %v25_v50  ;;  %v125_v3 = vmul.f32 %v103_v42, %v32_v52 }
  0x10   :  { %v130_v61 = vadd.f32 %v129_v54, %v115_v43  ;;  %v119_v5 = vmul.f32 %v111_v58, %v26_v57  ;;  %v126_v7 = vmul.f32 %v107_v51, %v33_v59 }
  0x11   :  { %v139_v4 = vadd.f32 %v138_v63, %v123_v55  ;;  %v127_v11 = vmul.f32 %v111_v58, %v34_v0 }
  0x12   :  { %v131_v2 = vadd.f32 %v130_v61, %v116_v53 }
  0x13   :  { %v140_v8 = vadd.f32 %v139_v4, %v124_v62 }
  0x14   :  { %v132_v6 = vadd.f32 %v131_v2, %v117_v60 }
  0x15   :  { %v141_v12 = vadd.f32 %v140_v8, %v125_v3 }
  0x16   :  { %v133_v10 = vadd.f32 %v132_v6, %v118_v1 }
  0x17   :  { %v142_v14 = vadd.f32 %v141_v12, %v126_v7 }
  0x18   :  { %v134_v13 = vadd.f32 %v133_v10, %v119_v5 }
  0x19   :  { %v143_v9 = vadd.f32 %v142_v14, %v127_v11 }
  0x1a   :  { %135 = vadd.xlane.f32.xlu0 %v134_v13 }
  0x1e   :  { %144 = vadd.xlane.f32.xlu0 %v143_v9 }
  0xa3   :  { %v136_v15 = vpop.xlane.xlu0 %135 }
  0xa4   :  { %v165_v16 = vmul.f32 -1.442695, %v136_v15 }
  0xa6   :  { %167 = vpow2.f32 %v165_v16 }
  0xa7   :  { %v145_v17 = vpop.xlane.xlu0 %144 }
  0xa8   :  { %v166_v18 = vmul.f32 -1.442695, %v145_v17 }
  0xaa   :  { %169 = vpow2.f32 %v166_v18 }
  0xb3   :  { %v168_v19 = vpop.eup %167 }
  0xb4   :  { %v152_v20 = vadd.f32 1.0, %v168_v19 }
  0xb6   :  { %171 = vrcp.f32 %v152_v20 }
  0xb7   :  { %v170_v21 = vpop.eup %169 }
  0xb8   :  { %v153_v22 = vadd.f32 1.0, %v170_v21 }
  0xba   :  { %173 = vrcp.f32 %v153_v22 }
  0xc3   :  { %v172_v23 = vpop.eup %171 }
  0xc4   :  { %159 = vst.msk [vmem:[%s225_s2] sm:$0xff] %vm158_vm0, %v172_v23 }
  0xc7   :  { %v174_v24 = vpop.eup %173 }
  0xc8   :  { %160 = vst.msk [vmem:[%s225_s2 + $0x8] sm:$0xff] %vm158_vm0, %v174_v24 }

</bundles_post_ra>
